<compile_context>
chip_gen: v5e
topology: v5e:2x2
jax: 0.10.0
libtpu: 0.0.40
codegen_flags: <defaults>
</compile_context>

<pallas_src>
import functools

import jax
import jax.numpy as jnp
from jax import lax
from jax.experimental import pallas as pl
from jax.experimental.pallas import tpu as pltpu


def _round_up(x, m):
    return (x + m - 1) // m * m


def emos_kernel(idx_ref, feat_ref, table_ref, out_ref, *, K):
    """One grid step processes TB batch rows.

    idx_ref   : (K, TB)  int32  flat table-row indices for this batch block
    feat_ref  : (D1, TB) f32    transposed features (constant-1 row appended)
    table_ref : (D1, R)  f32    VMEM-resident transposed fused [weights | bias] table
    out_ref   : (1, TB)  f32    lane-dense predictions for this block
    """
    R = table_ref.shape[1]
    TB = out_ref.shape[1]
    inv_k = jnp.float32(1.0 / K)

    # Scaled one-hot "counts" matrix: counts[j, r] = (1/K) * sum_k [idx[k, r] == j].
    row_iota = lax.broadcasted_iota(jnp.int32, (R, TB), 0)
    counts = jnp.zeros((R, TB), jnp.float32)
    for k in range(K):                       # K is small; unrolled (VPU compares)
        idx_k = idx_ref[pl.ds(k, 1), :]      # (1, TB), broadcast over sublanes
        counts = counts + jnp.where(row_iota == idx_k, inv_k, jnp.float32(0.0))

    # gathered^T = table^T @ counts^T : one MXU matmul replaces the whole gather.
    gathered = jnp.dot(table_ref[...], counts,
                       preferred_element_type=jnp.float32)        # (D1, TB)

    # mean_k(w)·f + mean_k(b)  ==  sum over the D1 (sublane) axis.
    out_ref[...] = jnp.sum(gathered * feat_ref[...],
                           axis=0, keepdims=True).astype(out_ref.dtype)


def _selectors(station_id, forecast_id, step_id, *, n_forecast, n_steps,
               F, fd, L, ld):
    """Reproduce the PyTorch selector arithmetic (returns (B,F), (B,L) int32)."""
    forecast_sel = (jnp.arange(0, F * fd, fd, dtype=jnp.int32)[None, :]
                    + forecast_id[:, None].astype(jnp.int32)
                    - F * fd // 2) % n_forecast                          # (B, F)
    step_sel = (jnp.arange(0, L * ld, ld, dtype=jnp.int32)[None, :]
                + step_id[:, None].astype(jnp.int32)
                - L * ld // 2)                                           # (B, L)
    invalid = (step_sel < 0) | (step_sel >= n_steps)
    step_sel = jnp.where(invalid, step_id[:, None].astype(jnp.int32), step_sel)
    return forecast_sel, step_sel


def _vmem_cap_bytes():
    """Physical-VMEM-aware cap with headroom (~50 MiB on v7x, ~100 MiB v5e/v6e)."""
    phys = 64 << 20
    try:
        info = pltpu.get_tpu_info()
        phys = int(getattr(info, "vmem_capacity_bytes", 0)) or phys
    except Exception:
        pass
    return int(phys * 25 // 32)   # ~78% of physical


def emos_forward(features, station_id, forecast_id, step_id, weights, biases, *,
                 forecast_filter_size=1, forecast_filter_dilation=1,
                 lead_filter_size=1, lead_filter_dilation=1, block_rows=256):
    B, in_features = features.shape
    S, n_forecast, n_steps, _ = weights.shape
    F, fd = forecast_filter_size, forecast_filter_dilation
    L, ld = lead_filter_size, lead_filter_dilation
    K = F * L
    D1 = in_features + 1
    R = S * n_forecast * n_steps

    # Batch tiling: TB a multiple of 128, big enough to amortize per-step cost.
    TB = min(block_rows, _round_up(max(B, 1), 128))
    B_pad = _round_up(max(B, 1), TB)
    num_blocks = B_pad // TB
    pad = B_pad - B

    # Pad the selector ids with 0 (valid indices); padded feature rows are zero
    # so their contributions are exactly zero and get sliced away anyway.
    sid = jnp.pad(station_id.astype(jnp.int32), (0, pad))
    fid = jnp.pad(forecast_id.astype(jnp.int32), (0, pad))
    lid = jnp.pad(step_id.astype(jnp.int32), (0, pad))

    forecast_sel, step_sel = _selectors(
        sid, fid, lid, n_forecast=n_forecast, n_steps=n_steps,
        F=F, fd=fd, L=L, ld=ld)

    # Flat row indices into the (R, D1) fused table, delivered per block as a
    # lane-dense (K, TB) int32 VMEM tile (no SMEM scalar prefetch).
    flat_idx = (sid[:, None, None] * (n_forecast * n_steps)
                + forecast_sel[:, :, None] * n_steps
                + step_sel[:, None, :]).reshape(B_pad, K).astype(jnp.int32)
    idx_t = flat_idx.T                                            # (K, B_pad)

    # Transposed (lane-dense) fused [weights | bias] table and [features | 1].
    w_table_t = jnp.concatenate(
        [weights.reshape(R, in_features), biases.reshape(R, 1)], axis=1
    ).astype(jnp.float32).T                                       # (D1, R)
    feats1_t = jnp.concatenate(
        [features.astype(jnp.float32), jnp.ones((B, 1), jnp.float32)], axis=1).T
    feats1_t = jnp.pad(feats1_t, ((0, 0), (0, pad)))              # (D1, B_pad)

    # VMEM budget: double-buffered small blocks + resident table + counts temps.
    R_pad = _round_up(R, 128)
    D1_pad = _round_up(D1, 8)
    K_pad = _round_up(K, 8)
    table_bytes = D1_pad * R_pad * 4
    counts_bytes = R_pad * TB * 4
    block_bytes = (K_pad + D1_pad + 8) * TB * 4
    vmem_needed = 2 * table_bytes + 2 * block_bytes + (K + 4) * counts_bytes + (1 << 21)
    vmem_limit = int(min(_vmem_cap_bytes(), max(32 << 20, vmem_needed)))

    grid_spec = pltpu.PrefetchScalarGridSpec(
        num_scalar_prefetch=0,
        grid=(num_blocks,),
        in_specs=[
            pl.BlockSpec((K, TB), lambda b: (0, b)),    # per-block flat indices
            pl.BlockSpec((D1, TB), lambda b: (0, b)),   # per-block features^T
            pl.BlockSpec((D1, R), lambda b: (0, 0)),    # whole table^T, VMEM-resident
        ],
        out_specs=pl.BlockSpec((1, TB), lambda b: (0, b)),
    )

    out = pl.pallas_call(
        functools.partial(emos_kernel, K=K),
        out_shape=jax.ShapeDtypeStruct((1, B_pad), jnp.float32),
        grid_spec=grid_spec,
        compiler_params=pltpu.CompilerParams(
            dimension_semantics=("parallel",),
            vmem_limit_bytes=vmem_limit),
    )(idx_t, feats1_t, w_table_t)

    return out[0, :B]


def emos_reference(features, station_id, forecast_id, step_id, weights, biases, *,
                   forecast_filter_size, forecast_filter_dilation,
                   lead_filter_size, lead_filter_dilation):
    """Plain-JAX reimplementation of the PyTorch forward, for verification."""
    B, _ = features.shape
    S, n_forecast, n_steps, _ = weights.shape
    F, fd = forecast_filter_size, forecast_filter_dilation
    L, ld = lead_filter_size, lead_filter_dilation

    forecast_sel, step_sel = _selectors(
        station_id, forecast_id, step_id,
        n_forecast=n_forecast, n_steps=n_steps, F=F, fd=fd, L=L, ld=ld)

    station_sel3 = jnp.broadcast_to(station_id[:, None, None].astype(jnp.int32), (B, F, L))
    forecast_sel3 = jnp.broadcast_to(forecast_sel[:, :, None], (B, F, L))
    step_sel3 = jnp.broadcast_to(step_sel[:, None, :], (B, F, L))

    gathered_w = weights[station_sel3, forecast_sel3, step_sel3]   # (B, F, L, in_features)
    gathered_b = biases[station_sel3, forecast_sel3, step_sel3]    # (B, F, L, 1)

    pred = (gathered_w * features[:, None, None, :]).mean(axis=(1, 2)).sum(axis=1)
    pred = pred + gathered_b.mean(axis=(1, 2))[:, 0]
    return pred


if __name__ == "__main__":
    key = jax.random.PRNGKey(0)
    k1, k2, k3, k4, k5, k6 = jax.random.split(key, 6)

    # Small shapes consistent with the module
    n_stations, in_features = 4, 8
    n_forecast, n_steps = 16, 8
    B = 8
    F, fd = 3, 1
    L, ld = 3, 1

    # Module __init__: zeros with weights[..., 0] = 1.0; add a small deterministic
    # perturbation so that the data-dependent gather is actually exercised.
    weights = jnp.zeros((n_stations, n_forecast, n_steps, in_features), jnp.float32)
    weights = weights.at[..., 0].set(1.0)
    weights = weights + 0.01 * jax.random.normal(k1, weights.shape, jnp.float32)
    biases = 0.01 * jax.random.normal(k2, (n_stations, n_forecast, n_steps, 1), jnp.float32)

    features = jax.random.normal(k3, (B, in_features), jnp.float32)
    station_id = jax.random.randint(k4, (B,), 0, n_stations, jnp.int32)
    forecast_id = jax.random.randint(k5, (B,), 0, n_forecast, jnp.int32)
    step_id = jax.random.randint(k6, (B,), 0, n_steps, jnp.int32)

    pred = emos_forward(
        features, station_id, forecast_id, step_id, weights, biases,
        forecast_filter_size=F, forecast_filter_dilation=fd,
        lead_filter_size=L, lead_filter_dilation=ld)
    pred = jax.block_until_ready(pred)

    ref = emos_reference(
        features, station_id, forecast_id, step_id, weights, biases,
        forecast_filter_size=F, forecast_filter_dilation=fd,
        lead_filter_size=L, lead_filter_dilation=ld)

    assert pred.shape == (B,)
    assert jnp.allclose(pred, ref, atol=1e-5, rtol=1e-5), (pred, ref)
    print("KERNEL_OK")
</pallas_src>

<mosaic_0001>
module attributes {stable_mosaic.version = 11 : i64} {
  func.func @emos_kernel(%arg0: i32, %arg1: memref<9x128xi32, #tpu.memory_space<vmem>>, %arg2: memref<9x128xf32, #tpu.memory_space<vmem>>, %arg3: memref<9x512xf32, #tpu.memory_space<vmem>>, %arg4: memref<1x128xf32, #tpu.memory_space<vmem>>) attributes {dimension_semantics = [#tpu.dimension_semantics<parallel>], iteration_bounds = array<i64: 1>, scalar_prefetch = 0 : i64, scratch_operands = 0 : i64, tpu.core_type = #tpu.core_type<tc>, window_params = [{transform_indices = @transform_0, window_bounds = array<i64: 9, 128>}, {transform_indices = @transform_1, window_bounds = array<i64: 9, 128>}, {pipeline_mode = #tpu.pipeline_mode<synchronous>, transform_indices = @transform_2, window_bounds = array<i64: 9, 512>}, {transform_indices = @transform_3, window_bounds = array<i64: 1, 128>}]} {
    %0 = tpu.iota {dimensions = array<i32: 0>} : vector<512x128xi32>
    %cst = arith.constant 0.000000e+00 : f32
    %1 = vector.broadcast %cst : f32 to vector<512x128xf32>
    %c0 = arith.constant 0 : index
    %c0_0 = arith.constant 0 : index
    %2 = vector.load %arg1[%c0, %c0_0] : memref<9x128xi32, #tpu.memory_space<vmem>>, vector<1x128xi32>
    %3 = vector.broadcast %2 : vector<1x128xi32> to vector<512x128xi32>
    %4 = arith.cmpi eq, %0, %3 : vector<512x128xi32>
    %cst_1 = arith.constant 0.111111112 : f32
    %cst_2 = arith.constant 0.000000e+00 : f32
    %5 = vector.broadcast %cst_1 : f32 to vector<512x128xf32>
    %6 = vector.broadcast %cst_2 : f32 to vector<512x128xf32>
    %7 = arith.select %4, %5, %6 : vector<512x128xi1>, vector<512x128xf32>
    %8 = arith.addf %1, %7 : vector<512x128xf32>
    %c1 = arith.constant 1 : index
    %c0_3 = arith.constant 0 : index
    %9 = vector.load %arg1[%c1, %c0_3] : memref<9x128xi32, #tpu.memory_space<vmem>>, vector<1x128xi32>
    %10 = vector.broadcast %9 : vector<1x128xi32> to vector<512x128xi32>
    %11 = arith.cmpi eq, %0, %10 : vector<512x128xi32>
    %cst_4 = arith.constant 0.111111112 : f32
    %cst_5 = arith.constant 0.000000e+00 : f32
    %12 = vector.broadcast %cst_4 : f32 to vector<512x128xf32>
    %13 = vector.broadcast %cst_5 : f32 to vector<512x128xf32>
    %14 = arith.select %11, %12, %13 : vector<512x128xi1>, vector<512x128xf32>
    %15 = arith.addf %8, %14 : vector<512x128xf32>
    %c2 = arith.constant 2 : index
    %c0_6 = arith.constant 0 : index
    %16 = vector.load %arg1[%c2, %c0_6] : memref<9x128xi32, #tpu.memory_space<vmem>>, vector<1x128xi32>
    %17 = vector.broadcast %16 : vector<1x128xi32> to vector<512x128xi32>
    %18 = arith.cmpi eq, %0, %17 : vector<512x128xi32>
    %cst_7 = arith.constant 0.111111112 : f32
    %cst_8 = arith.constant 0.000000e+00 : f32
    %19 = vector.broadcast %cst_7 : f32 to vector<512x128xf32>
    %20 = vector.broadcast %cst_8 : f32 to vector<512x128xf32>
    %21 = arith.select %18, %19, %20 : vector<512x128xi1>, vector<512x128xf32>
    %22 = arith.addf %15, %21 : vector<512x128xf32>
    %c3 = arith.constant 3 : index
    %c0_9 = arith.constant 0 : index
    %23 = vector.load %arg1[%c3, %c0_9] : memref<9x128xi32, #tpu.memory_space<vmem>>, vector<1x128xi32>
    %24 = vector.broadcast %23 : vector<1x128xi32> to vector<512x128xi32>
    %25 = arith.cmpi eq, %0, %24 : vector<512x128xi32>
    %cst_10 = arith.constant 0.111111112 : f32
    %cst_11 = arith.constant 0.000000e+00 : f32
    %26 = vector.broadcast %cst_10 : f32 to vector<512x128xf32>
    %27 = vector.broadcast %cst_11 : f32 to vector<512x128xf32>
    %28 = arith.select %25, %26, %27 : vector<512x128xi1>, vector<512x128xf32>
    %29 = arith.addf %22, %28 : vector<512x128xf32>
    %c4 = arith.constant 4 : index
    %c0_12 = arith.constant 0 : index
    %30 = vector.load %arg1[%c4, %c0_12] : memref<9x128xi32, #tpu.memory_space<vmem>>, vector<1x128xi32>
    %31 = vector.broadcast %30 : vector<1x128xi32> to vector<512x128xi32>
    %32 = arith.cmpi eq, %0, %31 : vector<512x128xi32>
    %cst_13 = arith.constant 0.111111112 : f32
    %cst_14 = arith.constant 0.000000e+00 : f32
    %33 = vector.broadcast %cst_13 : f32 to vector<512x128xf32>
    %34 = vector.broadcast %cst_14 : f32 to vector<512x128xf32>
    %35 = arith.select %32, %33, %34 : vector<512x128xi1>, vector<512x128xf32>
    %36 = arith.addf %29, %35 : vector<512x128xf32>
    %c5 = arith.constant 5 : index
    %c0_15 = arith.constant 0 : index
    %37 = vector.load %arg1[%c5, %c0_15] : memref<9x128xi32, #tpu.memory_space<vmem>>, vector<1x128xi32>
    %38 = vector.broadcast %37 : vector<1x128xi32> to vector<512x128xi32>
    %39 = arith.cmpi eq, %0, %38 : vector<512x128xi32>
    %cst_16 = arith.constant 0.111111112 : f32
    %cst_17 = arith.constant 0.000000e+00 : f32
    %40 = vector.broadcast %cst_16 : f32 to vector<512x128xf32>
    %41 = vector.broadcast %cst_17 : f32 to vector<512x128xf32>
    %42 = arith.select %39, %40, %41 : vector<512x128xi1>, vector<512x128xf32>
    %43 = arith.addf %36, %42 : vector<512x128xf32>
    %c6 = arith.constant 6 : index
    %c0_18 = arith.constant 0 : index
    %44 = vector.load %arg1[%c6, %c0_18] : memref<9x128xi32, #tpu.memory_space<vmem>>, vector<1x128xi32>
    %45 = vector.broadcast %44 : vector<1x128xi32> to vector<512x128xi32>
    %46 = arith.cmpi eq, %0, %45 : vector<512x128xi32>
    %cst_19 = arith.constant 0.111111112 : f32
    %cst_20 = arith.constant 0.000000e+00 : f32
    %47 = vector.broadcast %cst_19 : f32 to vector<512x128xf32>
    %48 = vector.broadcast %cst_20 : f32 to vector<512x128xf32>
    %49 = arith.select %46, %47, %48 : vector<512x128xi1>, vector<512x128xf32>
    %50 = arith.addf %43, %49 : vector<512x128xf32>
    %c7 = arith.constant 7 : index
    %c0_21 = arith.constant 0 : index
    %51 = vector.load %arg1[%c7, %c0_21] : memref<9x128xi32, #tpu.memory_space<vmem>>, vector<1x128xi32>
    %52 = vector.broadcast %51 : vector<1x128xi32> to vector<512x128xi32>
    %53 = arith.cmpi eq, %0, %52 : vector<512x128xi32>
    %cst_22 = arith.constant 0.111111112 : f32
    %cst_23 = arith.constant 0.000000e+00 : f32
    %54 = vector.broadcast %cst_22 : f32 to vector<512x128xf32>
    %55 = vector.broadcast %cst_23 : f32 to vector<512x128xf32>
    %56 = arith.select %53, %54, %55 : vector<512x128xi1>, vector<512x128xf32>
    %57 = arith.addf %50, %56 : vector<512x128xf32>
    %c8 = arith.constant 8 : index
    %c0_24 = arith.constant 0 : index
    %58 = vector.load %arg1[%c8, %c0_24] : memref<9x128xi32, #tpu.memory_space<vmem>>, vector<1x128xi32>
    %59 = vector.broadcast %58 : vector<1x128xi32> to vector<512x128xi32>
    %60 = arith.cmpi eq, %0, %59 : vector<512x128xi32>
    %cst_25 = arith.constant 0.111111112 : f32
    %cst_26 = arith.constant 0.000000e+00 : f32
    %61 = vector.broadcast %cst_25 : f32 to vector<512x128xf32>
    %62 = vector.broadcast %cst_26 : f32 to vector<512x128xf32>
    %63 = arith.select %60, %61, %62 : vector<512x128xi1>, vector<512x128xf32>
    %64 = arith.addf %57, %63 : vector<512x128xf32>
    %c0_27 = arith.constant 0 : index
    %c0_28 = arith.constant 0 : index
    %65 = vector.load %arg3[%c0_27, %c0_28] : memref<9x512xf32, #tpu.memory_space<vmem>>, vector<9x512xf32>
    %cst_29 = arith.constant dense<0.000000e+00> : vector<9x128xf32>
    %66 = tpu.matmul %65, %64, %cst_29 {dimension_numbers = #tpu.dot_dimension_numbers<[1], [0], [0], [1], [0, 0, 1, 1], [], []>} : vector<9x512xf32>, vector<512x128xf32>, vector<9x128xf32> -> vector<9x128xf32>
    %c0_30 = arith.constant 0 : index
    %c0_31 = arith.constant 0 : index
    %67 = vector.load %arg2[%c0_30, %c0_31] : memref<9x128xf32, #tpu.memory_space<vmem>>, vector<9x128xf32>
    %68 = arith.mulf %66, %67 : vector<9x128xf32>
    %cst_32 = arith.constant dense<0.000000e+00> : vector<128xf32>
    %69 = vector.multi_reduction <add>, %68, %cst_32 [0] : vector<9x128xf32> to vector<128xf32>
    %70 = vector.shape_cast %69 : vector<128xf32> to vector<1x128xf32>
    %c0_33 = arith.constant 0 : index
    %c0_34 = arith.constant 0 : index
    %71 = vector.load %arg4[%c0_33, %c0_34] : memref<1x128xf32, #tpu.memory_space<vmem>>, vector<1x128xf32>
    tpu.vector_store %arg4[%c0_33, %c0_34], %70 {strides = array<i32>} : memref<1x128xf32, #tpu.memory_space<vmem>>, vector<1x128xf32>,
    return
  }
  func.func @transform_0(%arg0: i32) -> (i32, i32) {
    %c0_i32 = arith.constant 0 : i32
    %c0_i32_0 = arith.constant 0 : i32
    return %c0_i32, %arg0 : i32, i32
  }
  func.func @transform_1(%arg0: i32) -> (i32, i32) {
    %c0_i32 = arith.constant 0 : i32
    %c0_i32_0 = arith.constant 0 : i32
    return %c0_i32, %arg0 : i32, i32
  }
  func.func @transform_2(%arg0: i32) -> (i32, i32) {
    %c0_i32 = arith.constant 0 : i32
    %c0_i32_0 = arith.constant 0 : i32
    %c0_i32_1 = arith.constant 0 : i32
    return %c0_i32, %c0_i32_0 : i32, i32
  }
  func.func @transform_3(%arg0: i32) -> (i32, i32) {
    %c0_i32 = arith.constant 0 : i32
    %c0_i32_0 = arith.constant 0 : i32
    return %c0_i32, %arg0 : i32, i32
  }
}

</mosaic_0001>

<bundles_post_ra>
// kernel: tpu_custom_call.1
= control target key start
LH: loop header
LB: loop body
LE: loop exit
PB: predicated region body
PF: predicated region fallthrough
CT: control target
= control target key end

     0   :  { %8 = vsyncpa [#allocation3], 0  ;;  %s4063_s0 = inlined_call_operand.hbm [shape: s32[9,128], index: 0, kind: input, shape index: {}]   ;;  %s4064_s1 = inlined_call_operand.hbm [shape: f32[9,128], index: 1, kind: input, shape index: {}]   ;;  %s4065_s2 = inlined_call_operand.hbm [shape: f32[9,512], index: 2, kind: input, shape index: {}]   ;;  %s4066_s3 = inlined_call_operand.hbm [shape: f32[1,128], index: 3, kind: output, shape index: {}]  }
   0x1   :  { %9 = vsyncpa [#allocation6], 0 }
   0x2   :  { %10 = vsyncpa [#allocation4], 0  ;;  %s28_s14 = sshll.u32 %s4064_s1, 4  ;;  %s2152_s15 = smov [#allocation5]   ;;  %s29_s14 = int_to_ptr.hbm [resolvable:$true] %s28_s14 }
   0x3   :  { %s30_s16 = sshll.u32 %s2152_s15, 4  ;;  %s15_s19 = sshll.u32 %s4063_s0, 4  ;;  %s31_s16 = int_to_ptr.vmem [resolvable:$true] %s30_s16  ;;  %s16_s19 = int_to_ptr.hbm [resolvable:$true] %s15_s19 }
   0x4   :  { %s2153_s20 = smov 128   ;;  %s2154_s21 = smov 8  }
   0x5   :  { %36 = dma.hbm_to_vmem [thread:$0]  %s29_s14, 256, %s31_s16, [#allocation6], %s2153_s20, %s2153_s20, %s2154_s21  }
   0x6   :  { %s2155_s22 = smov [#allocation2]   ;;  %s41_s26 = sshll.u32 %s4065_s2, 4  ;;  %s42_s26 = int_to_ptr.hbm [resolvable:$true] %s41_s26 }
   0x7   :  { %s17_s23 = sshll.u32 %s2155_s22, 4  ;;  %s2156_s1 = smov [#allocation7]   ;;  %s18_s23 = int_to_ptr.vmem [resolvable:$true] %s17_s23 }
   0x8   :  { %23 = dma.hbm_to_vmem [thread:$0]  %s16_s19, 256, %s18_s23, [#allocation3], %s2153_s20, %s2153_s20, %s2154_s21  }
   0x9   :  { %s43_s27 = sshll.u32 %s2156_s1, 4  ;;  %s2157_s28 = smov 512   ;;  %s44_s27 = int_to_ptr.vmem [resolvable:$true] %s43_s27 }
   0xa   :  { %s2158_s29 = smov 32  }
   0xb   :  { %49 = dma.hbm_to_vmem [thread:$0]  %s42_s26, 1024, %s44_s27, [#allocation6], %s2157_s28, %s2157_s28, %s2158_s29  }
   0xc   :  { %2146 = dma.done.wait [#allocation3], 256  }
   0xd   :  { %2147 = vsyncadd [#allocation3], 4294967040 }
   0xe   :  { %2148 = dma.done.wait [#allocation6], 1280  }
   0xf   :  { %2149 = vsyncadd [#allocation6], 4294966016  ;;  %v62_v0 = vlaneseq  ;;  %v2211_v9 = vld [vmem:[#allocation2] ss:$0 sm:$0xff]  ;;  %v2213_v10 = vld [vmem:[#allocation2 + $0x1] ss:$0 sm:$0xff] }
  0x10   :  { %v2215_v11 = vld [vmem:[#allocation2 + $0x2] ss:$0 sm:$0xff]  ;;  %v2217_v12 = vld [vmem:[#allocation2 + $0x3] ss:$0 sm:$0xff]  ;;  %v2222_v13 = vld [vmem:[#allocation2 + $0x4] ss:$0 sm:$0xff] }
  0x11   :  { %v2190_v1 = vshrl.u32 %v62_v0, 7  ;;  %v2224_v14 = vld [vmem:[#allocation2 + $0x5] ss:$0 sm:$0xff]  ;;  %v2232_v15 = vld [vmem:[#allocation2 + $0x6] ss:$0 sm:$0xff]  ;;  %v2159_v18 = vmov 0.0  }
  0x12   :  { %v2241_v16 = vld [vmem:[#allocation2 + $0x7] ss:$0 sm:$0xff]  ;;  %v2243_v17 = vld [vmem:[#allocation2 + $0x8] ss:$0 sm:$0xff]  ;;  %s2160_s0 = smov [#allocation8]   ;;  %s1994_s5 = sshll.u32 %s4066_s3, 4  ;;  %s1995_s5 = int_to_ptr.hbm [resolvable:$true] %s1994_s5 }
  0x13   :  { %v110_v2 = vadd.s32 376, %v2190_v1  ;;  %v2194_v3 = vadd.s32 368, %v2190_v1  ;;  %v2197_v4 = vadd.s32 504, %v2190_v1  ;;  %v2200_v5 = vadd.s32 120, %v2190_v1  ;;  %s1992_s2 = sshll.u32 %s2160_s0, 4  ;;  %s1993_s2 = int_to_ptr.vmem [resolvable:$true] %s1992_s2 }
  0x14   :  { %v2203_v6 = vadd.s32 248, %v2190_v1  ;;  %v2206_v7 = vadd.s32 360, %v2190_v1  ;;  %v2209_v8 = vadd.s32 496, %v2190_v1 }
  0x15   :  { %vm176_vm0 = vcmp.eq.s32.totalorder %v110_v2, %v2211_v9  ;;  %vm175_vm1 = vcmp.eq.s32.totalorder %v2194_v3, %v2211_v9  ;;  %vm370_vm2 = vcmp.eq.s32.totalorder %v110_v2, %v2213_v10  ;;  %vm564_vm3 = vcmp.eq.s32.totalorder %v110_v2, %v2215_v11 }
  0x16   :  { %vm369_vm4 = vcmp.eq.s32.totalorder %v2194_v3, %v2213_v10  ;;  %vm192_vm5 = vcmp.eq.s32.totalorder %v2197_v4, %v2211_v9  ;;  %vm758_vm6 = vcmp.eq.s32.totalorder %v110_v2, %v2217_v12  ;;  %vm563_vm7 = vcmp.eq.s32.totalorder %v2194_v3, %v2215_v11 }
  0x17   :  { %vm757_vm8 = vcmp.eq.s32.totalorder %v2194_v3, %v2217_v12  ;;  %vm386_vm9 = vcmp.eq.s32.totalorder %v2197_v4, %v2213_v10  ;;  %vm952_vm10 = vcmp.eq.s32.totalorder %v110_v2, %v2222_v13  ;;  %vm1146_vm11 = vcmp.eq.s32.totalorder %v110_v2, %v2224_v14 }
  0x18   :  { %vm951_vm12 = vcmp.eq.s32.totalorder %v2194_v3, %v2222_v13  ;;  %vm580_vm13 = vcmp.eq.s32.totalorder %v2197_v4, %v2215_v11  ;;  %v240_v19 = vsel %vm176_vm0, 0.11111111, %v2159_v18  ;;  %v434_v20 = vsel %vm370_vm2, 0.11111111, %v2159_v18 }
  0x19   :  { %v628_v21 = vsel %vm564_vm3, 0.11111111, %v2159_v18  ;;  %vm1340_vm14 = vcmp.eq.s32.totalorder %v110_v2, %v2232_v15  ;;  %v498_v22 = vadd.f32 %v434_v20, %v240_v19  ;;  %v822_v23 = vsel %vm758_vm6, 0.11111111, %v2159_v18 }
  0x1a   :  { %v1016_v24 = vsel %vm952_vm10, 0.11111111, %v2159_v18  ;;  %vm1145_vm15 = vcmp.eq.s32.totalorder %v2194_v3, %v2224_v14  ;;  %v1210_v25 = vsel %vm1146_vm11, 0.11111111, %v2159_v18  ;;  %vm1534_vm0 = vcmp.eq.s32.totalorder %v110_v2, %v2241_v16 }
  0x1b   :  { %vm1728_vm2 = vcmp.eq.s32.totalorder %v110_v2, %v2243_v17  ;;  %v239_v26 = vsel %vm175_vm1, 0.11111111, %v2159_v18  ;;  %vm144_vm3 = vcmp.eq.s32.totalorder %v2200_v5, %v2211_v9  ;;  %v692_v27 = vadd.f32 %v628_v21, %v498_v22 }
  0x1c   :  { %v1404_v28 = vsel %vm1340_vm14, 0.11111111, %v2159_v18  ;;  %v1598_v29 = vsel %vm1534_vm0, 0.11111111, %v2159_v18  ;;  %v433_v30 = vsel %vm369_vm4, 0.11111111, %v2159_v18  ;;  %vm1339_vm1 = vcmp.eq.s32.totalorder %v2194_v3, %v2232_v15 }
  0x1d   :  { %v1792_v31 = vsel %vm1728_vm2, 0.11111111, %v2159_v18  ;;  %v497_v32 = vadd.f32 %v433_v30, %v239_v26  ;;  %v627_v33 = vsel %vm563_vm7, 0.11111111, %v2159_v18  ;;  %v821_v34 = vsel %vm757_vm8, 0.11111111, %v2159_v18 }
  0x1e   :  { %v886_v35 = vadd.f32 %v822_v23, %v692_v27  ;;  %v1015_v36 = vsel %vm951_vm12, 0.11111111, %v2159_v18  ;;  %vm1533_vm4 = vcmp.eq.s32.totalorder %v2194_v3, %v2241_v16  ;;  %v1209_v38 = vsel %vm1145_vm15, 0.11111111, %v2159_v18 }
  0x1f   :  { %v691_v37 = vadd.f32 %v627_v33, %v497_v32  ;;  %v1403_v39 = vsel %vm1339_vm1, 0.11111111, %v2159_v18  ;;  %v1597_v40 = vsel %vm1533_vm4, 0.11111111, %v2159_v18  ;;  %vm1727_vm6 = vcmp.eq.s32.totalorder %v2194_v3, %v2243_v17 }
  0x20   :  { %v1080_v41 = vadd.f32 %v1016_v24, %v886_v35  ;;  %v256_v42 = vsel %vm192_vm5, 0.11111111, %v2159_v18  ;;  %v450_v43 = vsel %vm386_vm9, 0.11111111, %v2159_v18  ;;  %v644_v46 = vsel %vm580_vm13, 0.11111111, %v2159_v18 }
  0x21   :  { %v885_v44 = vadd.f32 %v821_v34, %v691_v37  ;;  %v514_v45 = vadd.f32 %v450_v43, %v256_v42  ;;  %vm774_vm7 = vcmp.eq.s32.totalorder %v2197_v4, %v2217_v12  ;;  %vm968_vm5 = vcmp.eq.s32.totalorder %v2197_v4, %v2222_v13 }
  0x22   :  { %v1274_v47 = vadd.f32 %v1210_v25, %v1080_v41  ;;  %v838_v48 = vsel %vm774_vm7, 0.11111111, %v2159_v18  ;;  %vm1162_vm8 = vcmp.eq.s32.totalorder %v2197_v4, %v2224_v14  ;;  %v1791_v50 = vsel %vm1727_vm6, 0.11111111, %v2159_v18 }
  0x23   :  { %v1079_v49 = vadd.f32 %v1015_v36, %v885_v44  ;;  %v708_v51 = vadd.f32 %v644_v46, %v514_v45  ;;  %v1032_v52 = vsel %vm968_vm5, 0.11111111, %v2159_v18  ;;  %v1226_v54 = vsel %vm1162_vm8, 0.11111111, %v2159_v18 }
  0x24   :  { %v1468_v53 = vadd.f32 %v1404_v28, %v1274_v47  ;;  %vm1356_vm9 = vcmp.eq.s32.totalorder %v2197_v4, %v2232_v15  ;;  %vm1550_vm10 = vcmp.eq.s32.totalorder %v2197_v4, %v2241_v16  ;;  %vm1744_vm11 = vcmp.eq.s32.totalorder %v2197_v4, %v2243_v17 }
  0x25   :  { %v1273_v55 = vadd.f32 %v1209_v38, %v1079_v49  ;;  %v902_v56 = vadd.f32 %v838_v48, %v708_v51  ;;  %v1420_v57 = vsel %vm1356_vm9, 0.11111111, %v2159_v18  ;;  %v1614_v59 = vsel %vm1550_vm10, 0.11111111, %v2159_v18 }
  0x26   :  { %v1662_v58 = vadd.f32 %v1598_v29, %v1468_v53  ;;  %v208_v60 = vsel %vm144_vm3, 0.11111111, %v2159_v18  ;;  %vm338_vm12 = vcmp.eq.s32.totalorder %v2200_v5, %v2213_v10  ;;  %vm532_vm13 = vcmp.eq.s32.totalorder %v2200_v5, %v2215_v11 }
  0x27   :  { %v1467_v61 = vadd.f32 %v1403_v39, %v1273_v55  ;;  %v1096_v62 = vadd.f32 %v1032_v52, %v902_v56  ;;  %v402_v63 = vsel %vm338_vm12, 0.11111111, %v2159_v18  ;;  %v596_v3 = vsel %vm532_vm13, 0.11111111, %v2159_v18 }
  0x28   :  { %v1856_v0 = vadd.f32 %v1792_v31, %v1662_v58  ;;  %v466_v2 = vadd.f32 %v402_v63, %v208_v60  ;;  %vm726_vm14 = vcmp.eq.s32.totalorder %v2200_v5, %v2217_v12  ;;  %vm920_vm15 = vcmp.eq.s32.totalorder %v2200_v5, %v2222_v13 }
  0x29   :  { %v1661_v19 = vadd.f32 %v1597_v40, %v1467_v61  ;;  %v1290_v20 = vadd.f32 %v1226_v54, %v1096_v62  ;;  %v790_v21 = vsel %vm726_vm14, 0.11111111, %v2159_v18  ;;  %v1808_v22 = vsel %vm1744_vm11, 0.11111111, %v2159_v18 }
  0x2a   :  { %1927 = vmatpush.msra.mxu2 %v1856_v0  ;;  %v660_v23 = vadd.f32 %v596_v3, %v466_v2  ;;  %vm1114_vm0 = vcmp.eq.s32.totalorder %v2200_v5, %v2224_v14  ;;  %vm1308_vm2 = vcmp.eq.s32.totalorder %v2200_v5, %v2232_v15  ;;  %v984_v26 = vsel %vm920_vm15, 0.11111111, %v2159_v18 }
  0x2b   :  { %v1855_v24 = vadd.f32 %v1791_v50, %v1661_v19  ;;  %v1484_v25 = vadd.f32 %v1420_v57, %v1290_v20  ;;  %v1178_v27 = vsel %vm1114_vm0, 0.11111111, %v2159_v18  ;;  %vm1502_vm3 = vcmp.eq.s32.totalorder %v2200_v5, %v2241_v16 }
  0x2c   :  { %v854_v28 = vadd.f32 %v790_v21, %v660_v23  ;;  %vm1696_vm1 = vcmp.eq.s32.totalorder %v2200_v5, %v2243_v17  ;;  %vm160_vm4 = vcmp.eq.s32.totalorder %v2203_v6, %v2211_v9  ;;  %v1372_v29 = vsel %vm1308_vm2, 0.11111111, %v2159_v18 }
  0x2d   :  { %1928 = vmatpush.msra.mxu2 %v1855_v24  ;;  %v1678_v4 = vadd.f32 %v1614_v59, %v1484_v25  ;;  %v1566_v30 = vsel %vm1502_vm3, 0.11111111, %v2159_v18  ;;  %v224_v31 = vsel %vm160_vm4, 0.11111111, %v2159_v18  ;;  %vm354_vm6 = vcmp.eq.s32.totalorder %v2203_v6, %v2213_v10 }
  0x2e   :  { %v1048_v32 = vadd.f32 %v984_v26, %v854_v28  ;;  %vm548_vm7 = vcmp.eq.s32.totalorder %v2203_v6, %v2215_v11  ;;  %vm742_vm5 = vcmp.eq.s32.totalorder %v2203_v6, %v2217_v12  ;;  %v1760_v33 = vsel %vm1696_vm1, 0.11111111, %v2159_v18 }
  0x2f   :  { %v1872_v5 = vadd.f32 %v1808_v22, %v1678_v4  ;;  %v418_v34 = vsel %vm354_vm6, 0.11111111, %v2159_v18  ;;  %v612_v35 = vsel %vm548_vm7, 0.11111111, %v2159_v18  ;;  %vm936_vm8 = vcmp.eq.s32.totalorder %v2203_v6, %v2222_v13 }
  0x30   :  { %v1242_v36 = vadd.f32 %v1178_v27, %v1048_v32  ;;  %v482_v37 = vadd.f32 %v418_v34, %v224_v31  ;;  %vm1130_vm9 = vcmp.eq.s32.totalorder %v2203_v6, %v2224_v14  ;;  %v806_v38 = vsel %vm742_vm5, 0.11111111, %v2159_v18 }
  0x31   :  { %1950 = vmatpush.msra.mxu3 %v1872_v5  ;;  %v1000_v39 = vsel %vm936_vm8, 0.11111111, %v2159_v18  ;;  %vm1324_vm10 = vcmp.eq.s32.totalorder %v2203_v6, %v2232_v15  ;;  %vm1518_vm11 = vcmp.eq.s32.totalorder %v2203_v6, %v2241_v16  ;;  %v1194_v42 = vsel %vm1130_vm9, 0.11111111, %v2159_v18 }
  0x32   :  { %v1436_v40 = vadd.f32 %v1372_v29, %v1242_v36  ;;  %v676_v41 = vadd.f32 %v612_v35, %v482_v37  ;;  %v1388_v43 = vsel %vm1324_vm10, 0.11111111, %v2159_v18  ;;  %vm1712_vm12 = vcmp.eq.s32.totalorder %v2203_v6, %v2243_v17 }
  0x33   :  { %vm174_vm13 = vcmp.eq.s32.totalorder %v2206_v7, %v2211_v9  ;;  %vm368_vm14 = vcmp.eq.s32.totalorder %v2206_v7, %v2213_v10  ;;  %vm562_vm15 = vcmp.eq.s32.totalorder %v2206_v7, %v2215_v11  ;;  %v1582_v46 = vsel %vm1518_vm11, 0.11111111, %v2159_v18 }
  0x34   :  { %v1630_v44 = vadd.f32 %v1566_v30, %v1436_v40  ;;  %v870_v45 = vadd.f32 %v806_v38, %v676_v41  ;;  %v238_v47 = vsel %vm174_vm13, 0.11111111, %v2159_v18  ;;  %v432_v48 = vsel %vm368_vm14, 0.11111111, %v2159_v18 }
  0x35   :  { %v626_v49 = vsel %vm562_vm15, 0.11111111, %v2159_v18  ;;  %vm756_vm0 = vcmp.eq.s32.totalorder %v2206_v7, %v2217_v12  ;;  %vm950_vm2 = vcmp.eq.s32.totalorder %v2206_v7, %v2222_v13  ;;  %v1776_v51 = vsel %vm1712_vm12, 0.11111111, %v2159_v18 }
  0x36   :  { %v1824_v6 = vadd.f32 %v1760_v33, %v1630_v44  ;;  %v1064_v50 = vadd.f32 %v1000_v39, %v870_v45  ;;  %v496_v52 = vadd.f32 %v432_v48, %v238_v47  ;;  %v820_v53 = vsel %vm756_vm0, 0.11111111, %v2159_v18 }
  0x37   :  { %vm1144_vm3 = vcmp.eq.s32.totalorder %v2206_v7, %v2224_v14  ;;  %vm1338_vm1 = vcmp.eq.s32.totalorder %v2206_v7, %v2232_v15  ;;  %vm1532_vm4 = vcmp.eq.s32.totalorder %v2206_v7, %v2241_v16  ;;  %v1014_v56 = vsel %vm950_vm2, 0.11111111, %v2159_v18 }
  0x38   :  { %1881 = vmatpush.msra.mxu0 %v1824_v6  ;;  %v1258_v54 = vadd.f32 %v1194_v42, %v1064_v50  ;;  %v690_v55 = vadd.f32 %v626_v49, %v496_v52  ;;  %v1208_v57 = vsel %vm1144_vm3, 0.11111111, %v2159_v18  ;;  %v1402_v58 = vsel %vm1338_vm1, 0.11111111, %v2159_v18 }
  0x39   :  { %v1596_v59 = vsel %vm1532_vm4, 0.11111111, %v2159_v18  ;;  %vm191_vm6 = vcmp.eq.s32.totalorder %v2209_v8, %v2211_v9  ;;  %vm385_vm7 = vcmp.eq.s32.totalorder %v2209_v8, %v2213_v10  ;;  %vm1726_vm5 = vcmp.eq.s32.totalorder %v2206_v7, %v2243_v17 }
  0x3a   :  { %v1452_v60 = vadd.f32 %v1388_v43, %v1258_v54  ;;  %v884_v61 = vadd.f32 %v820_v53, %v690_v55  ;;  %v255_v62 = vsel %vm191_vm6, 0.11111111, %v2159_v18  ;;  %v449_v63 = vsel %vm385_vm7, 0.11111111, %v2159_v18 }
  0x3b   :  { %vm579_vm8 = vcmp.eq.s32.totalorder %v2209_v8, %v2215_v11  ;;  %vm773_vm9 = vcmp.eq.s32.totalorder %v2209_v8, %v2217_v12  ;;  %vm967_vm10 = vcmp.eq.s32.totalorder %v2209_v8, %v2222_v13  ;;  %v513_v3 = vadd.f32 %v449_v63, %v255_v62 }
  0x3c   :  { %v1646_v0 = vadd.f32 %v1582_v46, %v1452_v60  ;;  %v1078_v2 = vadd.f32 %v1014_v56, %v884_v61  ;;  %v643_v19 = vsel %vm579_vm8, 0.11111111, %v2159_v18  ;;  %v1790_v7 = vsel %vm1726_vm5, 0.11111111, %v2159_v18 }
  0x3d   :  { %v837_v20 = vsel %vm773_vm9, 0.11111111, %v2159_v18  ;;  %vm1161_vm11 = vcmp.eq.s32.totalorder %v2209_v8, %v2224_v14  ;;  %vm1355_vm12 = vcmp.eq.s32.totalorder %v2209_v8, %v2232_v15  ;;  %v707_v23 = vadd.f32 %v643_v19, %v513_v3 }
  0x3e   :  { %v1840_v21 = vadd.f32 %v1776_v51, %v1646_v0  ;;  %v1272_v22 = vadd.f32 %v1208_v57, %v1078_v2  ;;  %v1031_v24 = vsel %vm967_vm10, 0.11111111, %v2159_v18  ;;  %v1225_v25 = vsel %vm1161_vm11, 0.11111111, %v2159_v18 }
  0x3f   :  { %v1419_v26 = vsel %vm1355_vm12, 0.11111111, %v2159_v18  ;;  %vm1549_vm13 = vcmp.eq.s32.totalorder %v2209_v8, %v2241_v16  ;;  %v77_v27 = vadd.s32 112, %v2190_v1  ;;  %v901_v4 = vadd.f32 %v837_v20, %v707_v23 }
  0x40   :  { %1904 = vmatpush.msra.mxu1 %v1840_v21  ;;  %v1466_v28 = vadd.f32 %v1402_v58, %v1272_v22  ;;  %v1613_v29 = vsel %vm1549_vm13, 0.11111111, %v2159_v18  ;;  %vm1743_vm14 = vcmp.eq.s32.totalorder %v2209_v8, %v2243_v17  ;;  %v93_v46 = vadd.s32 240, %v2190_v1 }
  0x41   :  { %vm143_vm15 = vcmp.eq.s32.totalorder %v77_v27, %v2211_v9  ;;  %vm337_vm0 = vcmp.eq.s32.totalorder %v77_v27, %v2213_v10  ;;  %vm531_vm2 = vcmp.eq.s32.totalorder %v77_v27, %v2215_v11  ;;  %vm725_vm3 = vcmp.eq.s32.totalorder %v77_v27, %v2217_v12 }
  0x42   :  { %v1660_v30 = vadd.f32 %v1596_v59, %v1466_v28  ;;  %v1095_v31 = vadd.f32 %v1031_v24, %v901_v4  ;;  %v207_v32 = vsel %vm143_vm15, 0.11111111, %v2159_v18  ;;  %v401_v5 = vsel %vm337_vm0, 0.11111111, %v2159_v18 }
  0x43   :  { %v1807_v33 = vsel %vm1743_vm14, 0.11111111, %v2159_v18  ;;  %v465_v34 = vadd.f32 %v401_v5, %v207_v32  ;;  %v595_v35 = vsel %vm531_vm2, 0.11111111, %v2159_v18  ;;  %vm919_vm1 = vcmp.eq.s32.totalorder %v77_v27, %v2222_v13 }
  0x44   :  { %v1854_v8 = vadd.f32 %v1790_v7, %v1660_v30  ;;  %v1289_v36 = vadd.f32 %v1225_v25, %v1095_v31  ;;  %v789_v37 = vsel %vm725_vm3, 0.11111111, %v2159_v18  ;;  %vm1113_vm4 = vcmp.eq.s32.totalorder %v77_v27, %v2224_v14 }
  0x45   :  { %v659_v38 = vadd.f32 %v595_v35, %v465_v34  ;;  %v983_v39 = vsel %vm919_vm1, 0.11111111, %v2159_v18  ;;  %vm1307_vm6 = vcmp.eq.s32.totalorder %v77_v27, %v2232_v15  ;;  %vm1501_vm7 = vcmp.eq.s32.totalorder %v77_v27, %v2241_v16 }
  0x46   :  { %1929 = vmatpush.msra.mxu2 %v1854_v8  ;;  %v1483_v40 = vadd.f32 %v1419_v26, %v1289_v36  ;;  %v1177_v41 = vsel %vm1113_vm4, 0.11111111, %v2159_v18  ;;  %v1371_v42 = vsel %vm1307_vm6, 0.11111111, %v2159_v18  ;;  %vm1695_vm5 = vcmp.eq.s32.totalorder %v77_v27, %v2243_v17 }
  0x47   :  { %v853_v43 = vadd.f32 %v789_v37, %v659_v38  ;;  %v1565_v44 = vsel %vm1501_vm7, 0.11111111, %v2159_v18  ;;  %v1759_v45 = vsel %vm1695_vm5, 0.11111111, %v2159_v18  ;;  %v2471_v48 = vadd.s32 352, %v2190_v1 }
  0x48   :  { %v1677_v47 = vadd.f32 %v1613_v29, %v1483_v40  ;;  %v2474_v49 = vadd.s32 488, %v2190_v1  ;;  %v2477_v6 = vadd.s32 104, %v2190_v1  ;;  %vm159_vm8 = vcmp.eq.s32.totalorder %v93_v46, %v2211_v9 }
  0x49   :  { %v1047_v50 = vadd.f32 %v983_v39, %v853_v43  ;;  %vm353_vm9 = vcmp.eq.s32.totalorder %v93_v46, %v2213_v10  ;;  %vm547_vm10 = vcmp.eq.s32.totalorder %v93_v46, %v2215_v11  ;;  %v223_v52 = vsel %vm159_vm8, 0.11111111, %v2159_v18 }
  0x4a   :  { %v1871_v51 = vadd.f32 %v1807_v33, %v1677_v47  ;;  %v417_v53 = vsel %vm353_vm9, 0.11111111, %v2159_v18  ;;  %v611_v54 = vsel %vm547_vm10, 0.11111111, %v2159_v18  ;;  %vm741_vm11 = vcmp.eq.s32.totalorder %v93_v46, %v2217_v12 }
  0x4b   :  { %v1241_v55 = vadd.f32 %v1177_v41, %v1047_v50  ;;  %v481_v56 = vadd.f32 %v417_v53, %v223_v52  ;;  %vm935_vm12 = vcmp.eq.s32.totalorder %v93_v46, %v2222_v13  ;;  %v805_v57 = vsel %vm741_vm11, 0.11111111, %v2159_v18 }
  0x4c   :  { %1951 = vmatpush.msra.mxu3 %v1871_v51  ;;  %vm1129_vm13 = vcmp.eq.s32.totalorder %v93_v46, %v2224_v14  ;;  %vm1323_vm14 = vcmp.eq.s32.totalorder %v93_v46, %v2232_v15  ;;  %v2491_v58 = vadd.s32 232, %v2190_v1  ;;  %v999_v61 = vsel %vm935_vm12, 0.11111111, %v2159_v18 }
  0x4d   :  { %v1435_v59 = vadd.f32 %v1371_v42, %v1241_v55  ;;  %v675_v60 = vadd.f32 %v611_v54, %v481_v56  ;;  %v1193_v62 = vsel %vm1129_vm13, 0.11111111, %v2159_v18  ;;  %v1387_v63 = vsel %vm1323_vm14, 0.11111111, %v2159_v18 }
  0x4e   :  { %vm1517_vm15 = vcmp.eq.s32.totalorder %v93_v46, %v2241_v16  ;;  %vm173_vm0 = vcmp.eq.s32.totalorder %v2471_v48, %v2211_v9  ;;  %vm367_vm2 = vcmp.eq.s32.totalorder %v2471_v48, %v2213_v10  ;;  %vm1711_vm3 = vcmp.eq.s32.totalorder %v93_v46, %v2243_v17 }
  0x4f   :  { %v1629_v0 = vadd.f32 %v1565_v44, %v1435_v59  ;;  %v869_v2 = vadd.f32 %v805_v57, %v675_v60  ;;  %v1581_v3 = vsel %vm1517_vm15, 0.11111111, %v2159_v18  ;;  %v237_v19 = vsel %vm173_vm0, 0.11111111, %v2159_v18 }
  0x50   :  { %v431_v7 = vsel %vm367_vm2, 0.11111111, %v2159_v18  ;;  %vm561_vm1 = vcmp.eq.s32.totalorder %v2471_v48, %v2215_v11  ;;  %vm755_vm4 = vcmp.eq.s32.totalorder %v2471_v48, %v2217_v12  ;;  %vm949_vm6 = vcmp.eq.s32.totalorder %v2471_v48, %v2222_v13 }
  0x51   :  { %v1823_v20 = vadd.f32 %v1759_v45, %v1629_v0  ;;  %v1063_v21 = vadd.f32 %v999_v61, %v869_v2  ;;  %v495_v22 = vadd.f32 %v431_v7, %v237_v19  ;;  %v625_v23 = vsel %vm561_vm1, 0.11111111, %v2159_v18 }
  0x52   :  { %v819_v24 = vsel %vm755_vm4, 0.11111111, %v2159_v18  ;;  %vm1143_vm7 = vcmp.eq.s32.totalorder %v2471_v48, %v2224_v14  ;;  %vm1337_vm5 = vcmp.eq.s32.totalorder %v2471_v48, %v2232_v15  ;;  %v1775_v26 = vsel %vm1711_vm3, 0.11111111, %v2159_v18 }
  0x53   :  { %1882 = vmatpush.msra.mxu0 %v1823_v20  ;;  %v1257_v25 = vadd.f32 %v1193_v62, %v1063_v21  ;;  %v689_v27 = vadd.f32 %v625_v23, %v495_v22  ;;  %v1013_v28 = vsel %vm949_vm6, 0.11111111, %v2159_v18  ;;  %v1207_v4 = vsel %vm1143_vm7, 0.11111111, %v2159_v18 }
  0x54   :  { %v1401_v29 = vsel %vm1337_vm5, 0.11111111, %v2159_v18  ;;  %vm1531_vm8 = vcmp.eq.s32.totalorder %v2471_v48, %v2241_v16  ;;  %vm190_vm9 = vcmp.eq.s32.totalorder %v2474_v49, %v2211_v9  ;;  %vm1725_vm10 = vcmp.eq.s32.totalorder %v2471_v48, %v2243_v17 }
  0x55   :  { %v1451_v30 = vadd.f32 %v1387_v63, %v1257_v25  ;;  %v883_v31 = vadd.f32 %v819_v24, %v689_v27  ;;  %v1595_v32 = vsel %vm1531_vm8, 0.11111111, %v2159_v18  ;;  %v254_v5 = vsel %vm190_vm9, 0.11111111, %v2159_v18 }
  0x56   :  { %vm384_vm11 = vcmp.eq.s32.totalorder %v2474_v49, %v2213_v10  ;;  %vm578_vm12 = vcmp.eq.s32.totalorder %v2474_v49, %v2215_v11  ;;  %vm772_vm13 = vcmp.eq.s32.totalorder %v2474_v49, %v2217_v12  ;;  %v1789_v36 = vsel %vm1725_vm10, 0.11111111, %v2159_v18 }
  0x57   :  { %v1645_v33 = vadd.f32 %v1581_v3, %v1451_v30  ;;  %v1077_v34 = vadd.f32 %v1013_v28, %v883_v31  ;;  %v448_v35 = vsel %vm384_vm11, 0.11111111, %v2159_v18  ;;  %v642_v8 = vsel %vm578_vm12, 0.11111111, %v2159_v18 }
  0x58   :  { %v512_v37 = vadd.f32 %v448_v35, %v254_v5  ;;  %vm966_vm14 = vcmp.eq.s32.totalorder %v2474_v49, %v2222_v13  ;;  %vm1160_vm15 = vcmp.eq.s32.totalorder %v2474_v49, %v2224_v14  ;;  %v836_v40 = vsel %vm772_vm13, 0.11111111, %v2159_v18 }
  0x59   :  { %v1839_v38 = vadd.f32 %v1775_v26, %v1645_v33  ;;  %v1271_v39 = vadd.f32 %v1207_v4, %v1077_v34  ;;  %v1030_v41 = vsel %vm966_vm14, 0.11111111, %v2159_v18  ;;  %v1224_v43 = vsel %vm1160_vm15, 0.11111111, %v2159_v18 }
  0x5a   :  { %v706_v42 = vadd.f32 %v642_v8, %v512_v37  ;;  %vm1354_vm0 = vcmp.eq.s32.totalorder %v2474_v49, %v2232_v15  ;;  %vm1548_vm2 = vcmp.eq.s32.totalorder %v2474_v49, %v2241_v16  ;;  %vm1742_vm3 = vcmp.eq.s32.totalorder %v2474_v49, %v2243_v17 }
  0x5b   :  { %1905 = vmatpush.msra.mxu1 %v1839_v38  ;;  %v1465_v44 = vadd.f32 %v1401_v29, %v1271_v39  ;;  %v1418_v45 = vsel %vm1354_vm0, 0.11111111, %v2159_v18  ;;  %v1612_v46 = vsel %vm1548_vm2, 0.11111111, %v2159_v18  ;;  %vm142_vm1 = vcmp.eq.s32.totalorder %v2477_v6, %v2211_v9 }
  0x5c   :  { %v900_v47 = vadd.f32 %v836_v40, %v706_v42  ;;  %vm336_vm4 = vcmp.eq.s32.totalorder %v2477_v6, %v2213_v10  ;;  %vm530_vm6 = vcmp.eq.s32.totalorder %v2477_v6, %v2215_v11  ;;  %v206_v50 = vsel %vm142_vm1, 0.11111111, %v2159_v18 }
  0x5d   :  { %v1659_v48 = vadd.f32 %v1595_v32, %v1465_v44  ;;  %v400_v51 = vsel %vm336_vm4, 0.11111111, %v2159_v18  ;;  %v594_v52 = vsel %vm530_vm6, 0.11111111, %v2159_v18  ;;  %vm724_vm7 = vcmp.eq.s32.totalorder %v2477_v6, %v2217_v12 }
  0x5e   :  { %v1094_v53 = vadd.f32 %v1030_v41, %v900_v47  ;;  %v464_v54 = vadd.f32 %v400_v51, %v206_v50  ;;  %vm918_vm5 = vcmp.eq.s32.totalorder %v2477_v6, %v2222_v13  ;;  %v1806_v55 = vsel %vm1742_vm3, 0.11111111, %v2159_v18 }
  0x5f   :  { %v1853_v49 = vadd.f32 %v1789_v36, %v1659_v48  ;;  %v788_v56 = vsel %vm724_vm7, 0.11111111, %v2159_v18  ;;  %vm1112_vm8 = vcmp.eq.s32.totalorder %v2477_v6, %v2224_v14  ;;  %v982_v60 = vsel %vm918_vm5, 0.11111111, %v2159_v18 }
  0x60   :  { %v1288_v57 = vadd.f32 %v1224_v43, %v1094_v53  ;;  %v658_v59 = vadd.f32 %v594_v52, %v464_v54  ;;  %vm1306_vm9 = vcmp.eq.s32.totalorder %v2477_v6, %v2232_v15  ;;  %v1176_v61 = vsel %vm1112_vm8, 0.11111111, %v2159_v18 }
  0x61   :  { %1930 = vmatpush.msra.mxu2 %v1853_v49  ;;  %v1370_v62 = vsel %vm1306_vm9, 0.11111111, %v2159_v18  ;;  %vm1500_vm10 = vcmp.eq.s32.totalorder %v2477_v6, %v2241_v16  ;;  %vm158_vm11 = vcmp.eq.s32.totalorder %v2491_v58, %v2211_v9  ;;  %vm1694_vm12 = vcmp.eq.s32.totalorder %v2477_v6, %v2243_v17 }
  0x62   :  { %v1482_v63 = vadd.f32 %v1418_v45, %v1288_v57  ;;  %v852_v0 = vadd.f32 %v788_v56, %v658_v59  ;;  %v1564_v2 = vsel %vm1500_vm10, 0.11111111, %v2159_v18  ;;  %v222_v3 = vsel %vm158_vm11, 0.11111111, %v2159_v18 }
  0x63   :  { %vm352_vm13 = vcmp.eq.s32.totalorder %v2491_v58, %v2213_v10  ;;  %vm546_vm14 = vcmp.eq.s32.totalorder %v2491_v58, %v2215_v11  ;;  %vm740_vm15 = vcmp.eq.s32.totalorder %v2491_v58, %v2217_v12  ;;  %v1758_v22 = vsel %vm1694_vm12, 0.11111111, %v2159_v18 }
  0x64   :  { %v1676_v19 = vadd.f32 %v1612_v46, %v1482_v63  ;;  %v1046_v7 = vadd.f32 %v982_v60, %v852_v0  ;;  %v416_v20 = vsel %vm352_vm13, 0.11111111, %v2159_v18  ;;  %v610_v21 = vsel %vm546_vm14, 0.11111111, %v2159_v18 }
  0x65   :  { %v480_v6 = vadd.f32 %v416_v20, %v222_v3  ;;  %vm934_vm0 = vcmp.eq.s32.totalorder %v2491_v58, %v2222_v13  ;;  %vm1128_vm2 = vcmp.eq.s32.totalorder %v2491_v58, %v2224_v14  ;;  %v804_v25 = vsel %vm740_vm15, 0.11111111, %v2159_v18 }
  0x66   :  { %v1870_v23 = vadd.f32 %v1806_v55, %v1676_v19  ;;  %v1240_v24 = vadd.f32 %v1176_v61, %v1046_v7  ;;  %v998_v26 = vsel %vm934_vm0, 0.11111111, %v2159_v18  ;;  %vm1322_vm3 = vcmp.eq.s32.totalorder %v2491_v58, %v2232_v15 }
  0x67   :  { %v674_v27 = vadd.f32 %v610_v21, %v480_v6  ;;  %vm1516_vm1 = vcmp.eq.s32.totalorder %v2491_v58, %v2241_v16  ;;  %vm1710_vm4 = vcmp.eq.s32.totalorder %v2491_v58, %v2243_v17  ;;  %v1192_v4 = vsel %vm1128_vm2, 0.11111111, %v2159_v18 }
  0x68   :  { %1952 = vmatpush.msra.mxu3 %v1870_v23  ;;  %v1434_v28 = vadd.f32 %v1370_v62, %v1240_v24  ;;  %v1386_v29 = vsel %vm1322_vm3, 0.11111111, %v2159_v18  ;;  %v1580_v30 = vsel %vm1516_vm1, 0.11111111, %v2159_v18  ;;  %v1774_v32 = vsel %vm1710_vm4, 0.11111111, %v2159_v18 }
  0x69   :  { %v868_v31 = vadd.f32 %v804_v25, %v674_v27  ;;  %v106_v5 = vadd.s32 344, %v2190_v1  ;;  %v2610_v33 = vadd.s32 480, %v2190_v1  ;;  %v2613_v35 = vadd.s32 96, %v2190_v1 }
  0x6a   :  { %v1628_v34 = vadd.f32 %v1564_v2, %v1434_v28  ;;  %v2616_v58 = vadd.s32 224, %v2190_v1  ;;  %v2619_v8 = vadd.s32 336, %v2190_v1  ;;  %v2633_v44 = vadd.s32 472, %v2190_v1 }
  0x6b   :  { %v1062_v36 = vadd.f32 %v998_v26, %v868_v31  ;;  %vm172_vm6 = vcmp.eq.s32.totalorder %v106_v5, %v2211_v9  ;;  %vm366_vm7 = vcmp.eq.s32.totalorder %v106_v5, %v2213_v10  ;;  %vm560_vm5 = vcmp.eq.s32.totalorder %v106_v5, %v2215_v11 }
  0x6c   :  { %v1822_v37 = vadd.f32 %v1758_v22, %v1628_v34  ;;  %v236_v38 = vsel %vm172_vm6, 0.11111111, %v2159_v18  ;;  %v430_v39 = vsel %vm366_vm7, 0.11111111, %v2159_v18  ;;  %v624_v40 = vsel %vm560_vm5, 0.11111111, %v2159_v18 }
  0x6d   :  { %v1256_v41 = vadd.f32 %v1192_v4, %v1062_v36  ;;  %v494_v42 = vadd.f32 %v430_v39, %v236_v38  ;;  %vm754_vm8 = vcmp.eq.s32.totalorder %v106_v5, %v2217_v12  ;;  %vm948_vm9 = vcmp.eq.s32.totalorder %v106_v5, %v2222_v13 }
  0x6e   :  { %1883 = vmatpush.msra.mxu0 %v1822_v37  ;;  %v818_v43 = vsel %vm754_vm8, 0.11111111, %v2159_v18  ;;  %vm1142_vm10 = vcmp.eq.s32.totalorder %v106_v5, %v2224_v14  ;;  %vm1336_vm11 = vcmp.eq.s32.totalorder %v106_v5, %v2232_v15  ;;  %v1012_v47 = vsel %vm948_vm9, 0.11111111, %v2159_v18 }
  0x6f   :  { %v1450_v45 = vadd.f32 %v1386_v29, %v1256_v41  ;;  %v688_v46 = vadd.f32 %v624_v40, %v494_v42  ;;  %v1206_v48 = vsel %vm1142_vm10, 0.11111111, %v2159_v18  ;;  %v1400_v50 = vsel %vm1336_vm11, 0.11111111, %v2159_v18 }
  0x70   :  { %vm1530_vm12 = vcmp.eq.s32.totalorder %v106_v5, %v2241_v16  ;;  %vm189_vm13 = vcmp.eq.s32.totalorder %v2610_v33, %v2211_v9  ;;  %vm383_vm14 = vcmp.eq.s32.totalorder %v2610_v33, %v2213_v10  ;;  %vm1724_vm15 = vcmp.eq.s32.totalorder %v106_v5, %v2243_v17 }
  0x71   :  { %v1644_v51 = vadd.f32 %v1580_v30, %v1450_v45  ;;  %v882_v52 = vadd.f32 %v818_v43, %v688_v46  ;;  %v1594_v53 = vsel %vm1530_vm12, 0.11111111, %v2159_v18  ;;  %v253_v54 = vsel %vm189_vm13, 0.11111111, %v2159_v18 }
  0x72   :  { %v447_v49 = vsel %vm383_vm14, 0.11111111, %v2159_v18  ;;  %vm577_vm0 = vcmp.eq.s32.totalorder %v2610_v33, %v2215_v11  ;;  %vm771_vm2 = vcmp.eq.s32.totalorder %v2610_v33, %v2217_v12  ;;  %vm965_vm3 = vcmp.eq.s32.totalorder %v2610_v33, %v2222_v13 }
  0x73   :  { %v1838_v55 = vadd.f32 %v1774_v32, %v1644_v51  ;;  %v1076_v56 = vadd.f32 %v1012_v47, %v882_v52  ;;  %v511_v57 = vadd.f32 %v447_v49, %v253_v54  ;;  %v641_v59 = vsel %vm577_vm0, 0.11111111, %v2159_v18 }
  0x74   :  { %v835_v60 = vsel %vm771_vm2, 0.11111111, %v2159_v18  ;;  %vm1159_vm1 = vcmp.eq.s32.totalorder %v2610_v33, %v2224_v14  ;;  %vm1353_vm4 = vcmp.eq.s32.totalorder %v2610_v33, %v2232_v15  ;;  %v1788_v62 = vsel %vm1724_vm15, 0.11111111, %v2159_v18 }
  0x75   :  { %1906 = vmatpush.msra.mxu1 %v1838_v55  ;;  %v1270_v61 = vadd.f32 %v1206_v48, %v1076_v56  ;;  %v705_v63 = vadd.f32 %v641_v59, %v511_v57  ;;  %v1029_v0 = vsel %vm965_vm3, 0.11111111, %v2159_v18  ;;  %v1223_v2 = vsel %vm1159_vm1, 0.11111111, %v2159_v18 }
  0x76   :  { %v1417_v3 = vsel %vm1353_vm4, 0.11111111, %v2159_v18  ;;  %vm1547_vm6 = vcmp.eq.s32.totalorder %v2610_v33, %v2241_v16  ;;  %vm141_vm7 = vcmp.eq.s32.totalorder %v2613_v35, %v2211_v9  ;;  %vm1741_vm5 = vcmp.eq.s32.totalorder %v2610_v33, %v2243_v17 }
  0x77   :  { %v1464_v19 = vadd.f32 %v1400_v50, %v1270_v61  ;;  %v899_v7 = vadd.f32 %v835_v60, %v705_v63  ;;  %v1611_v20 = vsel %vm1547_vm6, 0.11111111, %v2159_v18  ;;  %v205_v21 = vsel %vm141_vm7, 0.11111111, %v2159_v18 }
  0x78   :  { %vm335_vm8 = vcmp.eq.s32.totalorder %v2613_v35, %v2213_v10  ;;  %vm529_vm9 = vcmp.eq.s32.totalorder %v2613_v35, %v2215_v11  ;;  %vm723_vm10 = vcmp.eq.s32.totalorder %v2613_v35, %v2217_v12  ;;  %v1805_v25 = vsel %vm1741_vm5, 0.11111111, %v2159_v18 }
  0x79   :  { %v1658_v22 = vadd.f32 %v1594_v53, %v1464_v19  ;;  %v1093_v6 = vadd.f32 %v1029_v0, %v899_v7  ;;  %v399_v23 = vsel %vm335_vm8, 0.11111111, %v2159_v18  ;;  %v593_v24 = vsel %vm529_vm9, 0.11111111, %v2159_v18 }
  0x7a   :  { %v463_v26 = vadd.f32 %v399_v23, %v205_v21  ;;  %vm917_vm11 = vcmp.eq.s32.totalorder %v2613_v35, %v2222_v13  ;;  %vm1111_vm12 = vcmp.eq.s32.totalorder %v2613_v35, %v2224_v14  ;;  %v787_v4 = vsel %vm723_vm10, 0.11111111, %v2159_v18 }
  0x7b   :  { %v1852_v27 = vadd.f32 %v1788_v62, %v1658_v22  ;;  %v1287_v28 = vadd.f32 %v1223_v2, %v1093_v6  ;;  %v981_v29 = vsel %vm917_vm11, 0.11111111, %v2159_v18  ;;  %v1175_v31 = vsel %vm1111_vm12, 0.11111111, %v2159_v18 }
  0x7c   :  { %v657_v30 = vadd.f32 %v593_v24, %v463_v26  ;;  %vm1305_vm13 = vcmp.eq.s32.totalorder %v2613_v35, %v2232_v15  ;;  %vm1499_vm14 = vcmp.eq.s32.totalorder %v2613_v35, %v2241_v16  ;;  %vm1693_vm15 = vcmp.eq.s32.totalorder %v2613_v35, %v2243_v17 }
  0x7d   :  { %1931 = vmatpush.msra.mxu2 %v1852_v27  ;;  %v1481_v32 = vadd.f32 %v1417_v3, %v1287_v28  ;;  %v1369_v5 = vsel %vm1305_vm13, 0.11111111, %v2159_v18  ;;  %v1563_v33 = vsel %vm1499_vm14, 0.11111111, %v2159_v18  ;;  %vm157_vm0 = vcmp.eq.s32.totalorder %v2616_v58, %v2211_v9 }
  0x7e   :  { %v851_v34 = vadd.f32 %v787_v4, %v657_v30  ;;  %vm351_vm2 = vcmp.eq.s32.totalorder %v2616_v58, %v2213_v10  ;;  %vm545_vm3 = vcmp.eq.s32.totalorder %v2616_v58, %v2215_v11  ;;  %v221_v37 = vsel %vm157_vm0, 0.11111111, %v2159_v18  ;;  %v2777_v30 = vld [vmem:[#allocation2] ss:$0 sm:$0xff] }
  0x7f   :  { %v1675_v36 = vadd.f32 %v1611_v20, %v1481_v32  ;;  %v415_v38 = vsel %vm351_vm2, 0.11111111, %v2159_v18  ;;  %v609_v39 = vsel %vm545_vm3, 0.11111111, %v2159_v18  ;;  %vm739_vm1 = vcmp.eq.s32.totalorder %v2616_v58, %v2217_v12 }
  0x80   :  { %v1045_v40 = vadd.f32 %v981_v29, %v851_v34  ;;  %v479_v41 = vadd.f32 %v415_v38, %v221_v37  ;;  %vm933_vm4 = vcmp.eq.s32.totalorder %v2616_v58, %v2222_v13  ;;  %v1757_v42 = vsel %vm1693_vm15, 0.11111111, %v2159_v18  ;;  %v2793_v37 = vld [vmem:[#allocation2 + $0x4] ss:$0 sm:$0xff] }
  0x81   :  { %v1869_v35 = vadd.f32 %v1805_v25, %v1675_v36  ;;  %v803_v43 = vsel %vm739_vm1, 0.11111111, %v2159_v18  ;;  %vm1127_vm6 = vcmp.eq.s32.totalorder %v2616_v58, %v2224_v14  ;;  %v997_v47 = vsel %vm933_vm4, 0.11111111, %v2159_v18 }
  0x82   :  { %v1239_v45 = vadd.f32 %v1175_v31, %v1045_v40  ;;  %v673_v46 = vadd.f32 %v609_v39, %v479_v41  ;;  %vm1321_vm7 = vcmp.eq.s32.totalorder %v2616_v58, %v2232_v15  ;;  %v1191_v48 = vsel %vm1127_vm6, 0.11111111, %v2159_v18  ;;  %v2783_v31 = vld [vmem:[#allocation2 + $0x2] ss:$0 sm:$0xff]  ;;  %v2797_v41 = vld [vmem:[#allocation2 + $0x5] ss:$0 sm:$0xff] }
  0x83   :  { %1953 = vmatpush.msra.mxu3 %v1869_v35  ;;  %v1385_v50 = vsel %vm1321_vm7, 0.11111111, %v2159_v18  ;;  %vm1515_vm5 = vcmp.eq.s32.totalorder %v2616_v58, %v2241_v16  ;;  %vm171_vm8 = vcmp.eq.s32.totalorder %v2619_v8, %v2211_v9  ;;  %vm1709_vm9 = vcmp.eq.s32.totalorder %v2616_v58, %v2243_v17 }
  0x84   :  { %v1433_v51 = vadd.f32 %v1369_v5, %v1239_v45  ;;  %v867_v52 = vadd.f32 %v803_v43, %v673_v46  ;;  %v1579_v53 = vsel %vm1515_vm5, 0.11111111, %v2159_v18  ;;  %v235_v54 = vsel %vm171_vm8, 0.11111111, %v2159_v18  ;;  %v2801_v43 = vld [vmem:[#allocation2 + $0x6] ss:$0 sm:$0xff] }
  0x85   :  { %vm365_vm10 = vcmp.eq.s32.totalorder %v2619_v8, %v2213_v10  ;;  %vm559_vm11 = vcmp.eq.s32.totalorder %v2619_v8, %v2215_v11  ;;  %vm753_vm12 = vcmp.eq.s32.totalorder %v2619_v8, %v2217_v12  ;;  %v1773_v59 = vsel %vm1709_vm9, 0.11111111, %v2159_v18  ;;  %v2804_v45 = vld [vmem:[#allocation2 + $0x7] ss:$0 sm:$0xff] }
  0x86   :  { %v1627_v49 = vadd.f32 %v1563_v33, %v1433_v51  ;;  %v1061_v55 = vadd.f32 %v997_v47, %v867_v52  ;;  %v429_v56 = vsel %vm365_vm10, 0.11111111, %v2159_v18  ;;  %v623_v57 = vsel %vm559_vm11, 0.11111111, %v2159_v18 }
  0x87   :  { %v493_v58 = vadd.f32 %v429_v56, %v235_v54  ;;  %vm947_vm13 = vcmp.eq.s32.totalorder %v2619_v8, %v2222_v13  ;;  %vm1141_vm14 = vcmp.eq.s32.totalorder %v2619_v8, %v2224_v14  ;;  %v817_v62 = vsel %vm753_vm12, 0.11111111, %v2159_v18 }
  0x88   :  { %v1821_v60 = vadd.f32 %v1757_v42, %v1627_v49  ;;  %v1255_v61 = vadd.f32 %v1191_v48, %v1061_v55  ;;  %v1011_v63 = vsel %vm947_vm13, 0.11111111, %v2159_v18  ;;  %v1205_v2 = vsel %vm1141_vm14, 0.11111111, %v2159_v18 }
  0x89   :  { %v687_v0 = vadd.f32 %v623_v57, %v493_v58  ;;  %vm1335_vm15 = vcmp.eq.s32.totalorder %v2619_v8, %v2232_v15  ;;  %vm1529_vm0 = vcmp.eq.s32.totalorder %v2619_v8, %v2241_v16  ;;  %vm1723_vm2 = vcmp.eq.s32.totalorder %v2619_v8, %v2243_v17 }
  0x8a   :  { %1884 = vmatpush.msra.mxu0 %v1821_v60  ;;  %v1449_v3 = vadd.f32 %v1385_v50, %v1255_v61  ;;  %v1399_v19 = vsel %vm1335_vm15, 0.11111111, %v2159_v18  ;;  %v1593_v7 = vsel %vm1529_vm0, 0.11111111, %v2159_v18  ;;  %vm188_vm3 = vcmp.eq.s32.totalorder %v2633_v44, %v2211_v9  ;;  %v2809_v50 = vld [vmem:[#allocation2 + $0x8] ss:$0 sm:$0xff] }
  0x8b   :  { %v881_v20 = vadd.f32 %v817_v62, %v687_v0  ;;  %vm382_vm1 = vcmp.eq.s32.totalorder %v2633_v44, %v2213_v10  ;;  %vm576_vm4 = vcmp.eq.s32.totalorder %v2633_v44, %v2215_v11  ;;  %v252_v22 = vsel %vm188_vm3, 0.11111111, %v2159_v18 }
  0x8c   :  { %v1643_v21 = vadd.f32 %v1579_v53, %v1449_v3  ;;  %v446_v6 = vsel %vm382_vm1, 0.11111111, %v2159_v18  ;;  %v640_v23 = vsel %vm576_vm4, 0.11111111, %v2159_v18  ;;  %vm770_vm6 = vcmp.eq.s32.totalorder %v2633_v44, %v2217_v12 }
  0x8d   :  { %v1075_v24 = vadd.f32 %v1011_v63, %v881_v20  ;;  %v510_v25 = vadd.f32 %v446_v6, %v252_v22  ;;  %vm964_vm7 = vcmp.eq.s32.totalorder %v2633_v44, %v2222_v13  ;;  %v1787_v10 = vsel %vm1723_vm2, 0.11111111, %v2159_v18 }
  0x8e   :  { %v1837_v9 = vadd.f32 %v1773_v59, %v1643_v21  ;;  %v834_v11 = vsel %vm770_vm6, 0.11111111, %v2159_v18  ;;  %vm1158_vm5 = vcmp.eq.s32.totalorder %v2633_v44, %v2224_v14  ;;  %v1028_v27 = vsel %vm964_vm7, 0.11111111, %v2159_v18 }
  0x8f   :  { %v1269_v8 = vadd.f32 %v1205_v2, %v1075_v24  ;;  %v704_v26 = vadd.f32 %v640_v23, %v510_v25  ;;  %vm1352_vm8 = vcmp.eq.s32.totalorder %v2633_v44, %v2232_v15  ;;  %v1222_v12 = vsel %vm1158_vm5, 0.11111111, %v2159_v18  ;;  %v2780_v15 = vld [vmem:[#allocation2 + $0x1] ss:$0 sm:$0xff] }
  0x90   :  { %1907 = vmatpush.msra.mxu1 %v1837_v9  ;;  %v1416_v13 = vsel %vm1352_vm8, 0.11111111, %v2159_v18  ;;  %vm1546_vm9 = vcmp.eq.s32.totalorder %v2633_v44, %v2241_v16  ;;  %v74_v28 = vadd.s32 88, %v2190_v1  ;;  %vm1740_vm10 = vcmp.eq.s32.totalorder %v2633_v44, %v2243_v17  ;;  %v2786_v16 = vld [vmem:[#allocation2 + $0x3] ss:$0 sm:$0xff] }
  0x91   :  { %v1463_v4 = vadd.f32 %v1399_v19, %v1269_v8  ;;  %v898_v29 = vadd.f32 %v834_v11, %v704_v26  ;;  %v1610_v14 = vsel %vm1546_vm9, 0.11111111, %v2159_v18  ;;  %v1804_v33 = vsel %vm1740_vm10, 0.11111111, %v2159_v18 }
  0x92   :  { %vm140_vm11 = vcmp.eq.s32.totalorder %v74_v28, %v2777_v30  ;;  %vm334_vm12 = vcmp.eq.s32.totalorder %v74_v28, %v2780_v15  ;;  %vm528_vm13 = vcmp.eq.s32.totalorder %v74_v28, %v2783_v31  ;;  %vm722_vm14 = vcmp.eq.s32.totalorder %v74_v28, %v2786_v16 }
  0x93   :  { %v1657_v32 = vadd.f32 %v1593_v7, %v1463_v4  ;;  %v1092_v5 = vadd.f32 %v1028_v27, %v898_v29  ;;  %v204_v17 = vsel %vm140_vm11, 0.11111111, %v2159_v18  ;;  %v398_v44 = vsel %vm334_vm12, 0.11111111, %v2159_v18 }
  0x94   :  { %v462_v34 = vadd.f32 %v398_v44, %v204_v17  ;;  %v592_v36 = vsel %vm528_vm13, 0.11111111, %v2159_v18  ;;  %vm916_vm15 = vcmp.eq.s32.totalorder %v74_v28, %v2793_v37  ;;  %v786_v40 = vsel %vm722_vm14, 0.11111111, %v2159_v18 }
  0x95   :  { %v1851_v38 = vadd.f32 %v1787_v10, %v1657_v32  ;;  %v1286_v39 = vadd.f32 %v1222_v12, %v1092_v5  ;;  %vm1110_vm0 = vcmp.eq.s32.totalorder %v74_v28, %v2797_v41  ;;  %v980_v42 = vsel %vm916_vm15, 0.11111111, %v2159_v18 }
  0x96   :  { %v656_v35 = vadd.f32 %v592_v36, %v462_v34  ;;  %vm1304_vm2 = vcmp.eq.s32.totalorder %v74_v28, %v2801_v43  ;;  %vm1498_vm3 = vcmp.eq.s32.totalorder %v74_v28, %v2804_v45  ;;  %v1174_v47 = vsel %vm1110_vm0, 0.11111111, %v2159_v18 }
  0x97   :  { %1932 = vmatpush.msra.mxu2 %v1851_v38  ;;  %v1480_v46 = vadd.f32 %v1416_v13, %v1286_v39  ;;  %v1368_v48 = vsel %vm1304_vm2, 0.11111111, %v2159_v18  ;;  %vm1692_vm1 = vcmp.eq.s32.totalorder %v74_v28, %v2809_v50  ;;  %v1562_v52 = vsel %vm1498_vm3, 0.11111111, %v2159_v18 }
  0x98   :  { %v850_v51 = vadd.f32 %v786_v40, %v656_v35  ;;  %v1756_v53 = vsel %vm1692_vm1, 0.11111111, %v2159_v18  ;;  %v90_v54 = vadd.s32 216, %v2190_v1  ;;  %v2816_v55 = vadd.s32 328, %v2190_v1 }
  0x99   :  { %v1674_v49 = vadd.f32 %v1610_v14, %v1480_v46  ;;  %v2819_v56 = vadd.s32 464, %v2190_v1  ;;  %v2822_v57 = vadd.s32 80, %v2190_v1  ;;  %v2836_v3 = vadd.s32 208, %v2190_v1 }
  0x9a   :  { %v1044_v59 = vadd.f32 %v980_v42, %v850_v51  ;;  %vm156_vm4 = vcmp.eq.s32.totalorder %v90_v54, %v2777_v30  ;;  %vm350_vm6 = vcmp.eq.s32.totalorder %v90_v54, %v2780_v15  ;;  %vm544_vm7 = vcmp.eq.s32.totalorder %v90_v54, %v2783_v31 }
  0x9b   :  { %v1868_v58 = vadd.f32 %v1804_v33, %v1674_v49  ;;  %v220_v60 = vsel %vm156_vm4, 0.11111111, %v2159_v18  ;;  %v414_v61 = vsel %vm350_vm6, 0.11111111, %v2159_v18  ;;  %v608_v62 = vsel %vm544_vm7, 0.11111111, %v2159_v18 }
  0x9c   :  { %v1238_v63 = vadd.f32 %v1174_v47, %v1044_v59  ;;  %v478_v0 = vadd.f32 %v414_v61, %v220_v60  ;;  %vm738_vm5 = vcmp.eq.s32.totalorder %v90_v54, %v2786_v16  ;;  %vm932_vm8 = vcmp.eq.s32.totalorder %v90_v54, %v2793_v37 }
  0x9d   :  { %1954 = vmatpush.msra.mxu3 %v1868_v58  ;;  %v802_v2 = vsel %vm738_vm5, 0.11111111, %v2159_v18  ;;  %vm1126_vm9 = vcmp.eq.s32.totalorder %v90_v54, %v2797_v41  ;;  %vm1320_vm10 = vcmp.eq.s32.totalorder %v90_v54, %v2801_v43  ;;  %v996_v20 = vsel %vm932_vm8, 0.11111111, %v2159_v18 }
  0x9e   :  { %v1432_v19 = vadd.f32 %v1368_v48, %v1238_v63  ;;  %v672_v7 = vadd.f32 %v608_v62, %v478_v0  ;;  %v1190_v21 = vsel %vm1126_vm9, 0.11111111, %v2159_v18  ;;  %v1384_v22 = vsel %vm1320_vm10, 0.11111111, %v2159_v18 }
  0x9f   :  { %vm1514_vm11 = vcmp.eq.s32.totalorder %v90_v54, %v2804_v45  ;;  %vm170_vm12 = vcmp.eq.s32.totalorder %v2816_v55, %v2777_v30  ;;  %vm364_vm13 = vcmp.eq.s32.totalorder %v2816_v55, %v2780_v15  ;;  %vm1708_vm14 = vcmp.eq.s32.totalorder %v90_v54, %v2809_v50 }
  0xa0   :  { %v1626_v6 = vadd.f32 %v1562_v52, %v1432_v19  ;;  %v866_v23 = vadd.f32 %v802_v2, %v672_v7  ;;  %v1578_v24 = vsel %vm1514_vm11, 0.11111111, %v2159_v18  ;;  %v234_v25 = vsel %vm170_vm12, 0.11111111, %v2159_v18 }
  0xa1   :  { %v428_v9 = vsel %vm364_vm13, 0.11111111, %v2159_v18  ;;  %vm558_vm15 = vcmp.eq.s32.totalorder %v2816_v55, %v2783_v31  ;;  %vm752_vm0 = vcmp.eq.s32.totalorder %v2816_v55, %v2786_v16  ;;  %vm946_vm2 = vcmp.eq.s32.totalorder %v2816_v55, %v2793_v37 }
  0xa2   :  { %v1820_v10 = vadd.f32 %v1756_v53, %v1626_v6  ;;  %v1060_v11 = vadd.f32 %v996_v20, %v866_v23  ;;  %v492_v8 = vadd.f32 %v428_v9, %v234_v25  ;;  %v622_v26 = vsel %vm558_vm15, 0.11111111, %v2159_v18 }
  0xa3   :  { %v816_v27 = vsel %vm752_vm0, 0.11111111, %v2159_v18  ;;  %vm1140_vm3 = vcmp.eq.s32.totalorder %v2816_v55, %v2797_v41  ;;  %vm1334_vm1 = vcmp.eq.s32.totalorder %v2816_v55, %v2801_v43  ;;  %v1772_v13 = vsel %vm1708_vm14, 0.11111111, %v2159_v18 }
  0xa4   :  { %1885 = vmatpush.msra.mxu0 %v1820_v10  ;;  %v1254_v12 = vadd.f32 %v1190_v21, %v1060_v11  ;;  %v686_v28 = vadd.f32 %v622_v26, %v492_v8  ;;  %v1010_v4 = vsel %vm946_vm2, 0.11111111, %v2159_v18  ;;  %v1204_v29 = vsel %vm1140_vm3, 0.11111111, %v2159_v18 }
  0xa5   :  { %v1398_v14 = vsel %vm1334_vm1, 0.11111111, %v2159_v18  ;;  %vm1528_vm4 = vcmp.eq.s32.totalorder %v2816_v55, %v2804_v45  ;;  %vm187_vm6 = vcmp.eq.s32.totalorder %v2819_v56, %v2777_v30  ;;  %vm1722_vm7 = vcmp.eq.s32.totalorder %v2816_v55, %v2809_v50 }
  0xa6   :  { %v1448_v32 = vadd.f32 %v1384_v22, %v1254_v12  ;;  %v880_v5 = vadd.f32 %v816_v27, %v686_v28  ;;  %v1592_v17 = vsel %vm1528_vm4, 0.11111111, %v2159_v18  ;;  %v251_v44 = vsel %vm187_vm6, 0.11111111, %v2159_v18 }
  0xa7   :  { %vm381_vm5 = vcmp.eq.s32.totalorder %v2819_v56, %v2780_v15  ;;  %vm575_vm8 = vcmp.eq.s32.totalorder %v2819_v56, %v2783_v31  ;;  %vm769_vm9 = vcmp.eq.s32.totalorder %v2819_v56, %v2786_v16  ;;  %v1786_v39 = vsel %vm1722_vm7, 0.11111111, %v2159_v18 }
  0xa8   :  { %v1642_v33 = vadd.f32 %v1578_v24, %v1448_v32  ;;  %v1074_v34 = vadd.f32 %v1010_v4, %v880_v5  ;;  %v445_v36 = vsel %vm381_vm5, 0.11111111, %v2159_v18  ;;  %v639_v38 = vsel %vm575_vm8, 0.11111111, %v2159_v18 }
  0xa9   :  { %v509_v40 = vadd.f32 %v445_v36, %v251_v44  ;;  %vm963_vm10 = vcmp.eq.s32.totalorder %v2819_v56, %v2793_v37  ;;  %vm1157_vm11 = vcmp.eq.s32.totalorder %v2819_v56, %v2797_v41  ;;  %v833_v46 = vsel %vm769_vm9, 0.11111111, %v2159_v18 }
  0xaa   :  { %v1836_v35 = vadd.f32 %v1772_v13, %v1642_v33  ;;  %v1268_v42 = vadd.f32 %v1204_v29, %v1074_v34  ;;  %v1027_v47 = vsel %vm963_vm10, 0.11111111, %v2159_v18  ;;  %v1221_v51 = vsel %vm1157_vm11, 0.11111111, %v2159_v18 }
  0xab   :  { %v703_v48 = vadd.f32 %v639_v38, %v509_v40  ;;  %vm1351_vm12 = vcmp.eq.s32.totalorder %v2819_v56, %v2801_v43  ;;  %vm1545_vm13 = vcmp.eq.s32.totalorder %v2819_v56, %v2804_v45  ;;  %vm1739_vm14 = vcmp.eq.s32.totalorder %v2819_v56, %v2809_v50 }
  0xac   :  { %1908 = vmatpush.msra.mxu1 %v1836_v35  ;;  %v1462_v52 = vadd.f32 %v1398_v14, %v1268_v42  ;;  %v1415_v53 = vsel %vm1351_vm12, 0.11111111, %v2159_v18  ;;  %v1609_v54 = vsel %vm1545_vm13, 0.11111111, %v2159_v18  ;;  %vm139_vm15 = vcmp.eq.s32.totalorder %v2822_v57, %v2777_v30 }
  0xad   :  { %v897_v49 = vadd.f32 %v833_v46, %v703_v48  ;;  %vm333_vm0 = vcmp.eq.s32.totalorder %v2822_v57, %v2780_v15  ;;  %vm527_vm2 = vcmp.eq.s32.totalorder %v2822_v57, %v2783_v31  ;;  %v203_v59 = vsel %vm139_vm15, 0.11111111, %v2159_v18 }
  0xae   :  { %v1656_v55 = vadd.f32 %v1592_v17, %v1462_v52  ;;  %v397_v58 = vsel %vm333_vm0, 0.11111111, %v2159_v18  ;;  %v591_v60 = vsel %vm527_vm2, 0.11111111, %v2159_v18  ;;  %vm721_vm3 = vcmp.eq.s32.totalorder %v2822_v57, %v2786_v16 }
  0xaf   :  { %v1091_v61 = vadd.f32 %v1027_v47, %v897_v49  ;;  %v461_v62 = vadd.f32 %v397_v58, %v203_v59  ;;  %vm915_vm1 = vcmp.eq.s32.totalorder %v2822_v57, %v2793_v37  ;;  %v1803_v63 = vsel %vm1739_vm14, 0.11111111, %v2159_v18 }
  0xb0   :  { %v1850_v56 = vadd.f32 %v1786_v39, %v1656_v55  ;;  %v785_v0 = vsel %vm721_vm3, 0.11111111, %v2159_v18  ;;  %vm1109_vm4 = vcmp.eq.s32.totalorder %v2822_v57, %v2797_v41  ;;  %v979_v7 = vsel %vm915_vm1, 0.11111111, %v2159_v18 }
  0xb1   :  { %v1285_v2 = vadd.f32 %v1221_v51, %v1091_v61  ;;  %v655_v19 = vadd.f32 %v591_v60, %v461_v62  ;;  %vm1303_vm6 = vcmp.eq.s32.totalorder %v2822_v57, %v2801_v43  ;;  %v1173_v20 = vsel %vm1109_vm4, 0.11111111, %v2159_v18 }
  0xb2   :  { %1933 = vmatpush.msra.mxu2 %v1850_v56  ;;  %v1367_v21 = vsel %vm1303_vm6, 0.11111111, %v2159_v18  ;;  %vm1497_vm7 = vcmp.eq.s32.totalorder %v2822_v57, %v2804_v45  ;;  %vm155_vm5 = vcmp.eq.s32.totalorder %v2836_v3, %v2777_v30  ;;  %vm1691_vm8 = vcmp.eq.s32.totalorder %v2822_v57, %v2809_v50 }
  0xb3   :  { %v1479_v22 = vadd.f32 %v1415_v53, %v1285_v2  ;;  %v849_v6 = vadd.f32 %v785_v0, %v655_v19  ;;  %v1561_v23 = vsel %vm1497_vm7, 0.11111111, %v2159_v18  ;;  %v219_v24 = vsel %vm155_vm5, 0.11111111, %v2159_v18 }
  0xb4   :  { %vm349_vm9 = vcmp.eq.s32.totalorder %v2836_v3, %v2780_v15  ;;  %vm543_vm10 = vcmp.eq.s32.totalorder %v2836_v3, %v2783_v31  ;;  %vm737_vm11 = vcmp.eq.s32.totalorder %v2836_v3, %v2786_v16  ;;  %v1755_v8 = vsel %vm1691_vm8, 0.11111111, %v2159_v18 }
  0xb5   :  { %v1673_v25 = vadd.f32 %v1609_v54, %v1479_v22  ;;  %v1043_v9 = vadd.f32 %v979_v7, %v849_v6  ;;  %v413_v10 = vsel %vm349_vm9, 0.11111111, %v2159_v18  ;;  %v607_v11 = vsel %vm543_vm10, 0.11111111, %v2159_v18 }
  0xb6   :  { %v477_v57 = vadd.f32 %v413_v10, %v219_v24  ;;  %vm931_vm12 = vcmp.eq.s32.totalorder %v2836_v3, %v2793_v37  ;;  %vm1125_vm13 = vcmp.eq.s32.totalorder %v2836_v3, %v2797_v41  ;;  %v801_v12 = vsel %vm737_vm11, 0.11111111, %v2159_v18 }
  0xb7   :  { %v1867_v26 = vadd.f32 %v1803_v63, %v1673_v25  ;;  %v1237_v27 = vadd.f32 %v1173_v20, %v1043_v9  ;;  %v995_v13 = vsel %vm931_vm12, 0.11111111, %v2159_v18  ;;  %vm1319_vm14 = vcmp.eq.s32.totalorder %v2836_v3, %v2801_v43 }
  0xb8   :  { %v671_v28 = vadd.f32 %v607_v11, %v477_v57  ;;  %vm1513_vm15 = vcmp.eq.s32.totalorder %v2836_v3, %v2804_v45  ;;  %vm1707_vm0 = vcmp.eq.s32.totalorder %v2836_v3, %v2809_v50  ;;  %v1189_v29 = vsel %vm1125_vm13, 0.11111111, %v2159_v18 }
  0xb9   :  { %1955 = vmatpush.msra.mxu3 %v1867_v26  ;;  %v1431_v4 = vadd.f32 %v1367_v21, %v1237_v27  ;;  %v1383_v14 = vsel %vm1319_vm14, 0.11111111, %v2159_v18  ;;  %v1577_v32 = vsel %vm1513_vm15, 0.11111111, %v2159_v18  ;;  %v1771_v17 = vsel %vm1707_vm0, 0.11111111, %v2159_v18 }
  0xba   :  { %v865_v5 = vadd.f32 %v801_v12, %v671_v28  ;;  %v103_v44 = vadd.s32 320, %v2190_v1  ;;  %v2955_v33 = vadd.s32 456, %v2190_v1  ;;  %v2958_v36 = vadd.s32 72, %v2190_v1 }
  0xbb   :  { %v1625_v34 = vadd.f32 %v1561_v23, %v1431_v4  ;;  %v2961_v3 = vadd.s32 200, %v2190_v1  ;;  %v2964_v38 = vadd.s32 312, %v2190_v1  ;;  %v2978_v52 = vadd.s32 448, %v2190_v1 }
  0xbc   :  { %v1059_v39 = vadd.f32 %v995_v13, %v865_v5  ;;  %vm169_vm2 = vcmp.eq.s32.totalorder %v103_v44, %v2777_v30  ;;  %vm363_vm3 = vcmp.eq.s32.totalorder %v103_v44, %v2780_v15  ;;  %vm557_vm1 = vcmp.eq.s32.totalorder %v103_v44, %v2783_v31 }
  0xbd   :  { %v1819_v40 = vadd.f32 %v1755_v8, %v1625_v34  ;;  %v233_v35 = vsel %vm169_vm2, 0.11111111, %v2159_v18  ;;  %v427_v42 = vsel %vm363_vm3, 0.11111111, %v2159_v18  ;;  %v621_v46 = vsel %vm557_vm1, 0.11111111, %v2159_v18 }
  0xbe   :  { %v1253_v47 = vadd.f32 %v1189_v29, %v1059_v39  ;;  %v491_v48 = vadd.f32 %v427_v42, %v233_v35  ;;  %vm751_vm4 = vcmp.eq.s32.totalorder %v103_v44, %v2786_v16  ;;  %vm945_vm6 = vcmp.eq.s32.totalorder %v103_v44, %v2793_v37 }
  0xbf   :  { %1886 = vmatpush.msra.mxu0 %v1819_v40  ;;  %v815_v51 = vsel %vm751_vm4, 0.11111111, %v2159_v18  ;;  %vm1139_vm7 = vcmp.eq.s32.totalorder %v103_v44, %v2797_v41  ;;  %vm1333_vm5 = vcmp.eq.s32.totalorder %v103_v44, %v2801_v43  ;;  %v1009_v49 = vsel %vm945_vm6, 0.11111111, %v2159_v18 }
  0xc0   :  { %v1447_v53 = vadd.f32 %v1383_v14, %v1253_v47  ;;  %v685_v54 = vadd.f32 %v621_v46, %v491_v48  ;;  %v1203_v55 = vsel %vm1139_vm7, 0.11111111, %v2159_v18  ;;  %v1397_v59 = vsel %vm1333_vm5, 0.11111111, %v2159_v18 }
  0xc1   :  { %vm1527_vm8 = vcmp.eq.s32.totalorder %v103_v44, %v2804_v45  ;;  %vm186_vm9 = vcmp.eq.s32.totalorder %v2955_v33, %v2777_v30  ;;  %vm380_vm10 = vcmp.eq.s32.totalorder %v2955_v33, %v2780_v15  ;;  %vm1721_vm11 = vcmp.eq.s32.totalorder %v103_v44, %v2809_v50 }
  0xc2   :  { %v1641_v58 = vadd.f32 %v1577_v32, %v1447_v53  ;;  %v879_v60 = vadd.f32 %v815_v51, %v685_v54  ;;  %v1591_v61 = vsel %vm1527_vm8, 0.11111111, %v2159_v18  ;;  %v250_v62 = vsel %vm186_vm9, 0.11111111, %v2159_v18 }
  0xc3   :  { %v444_v56 = vsel %vm380_vm10, 0.11111111, %v2159_v18  ;;  %vm574_vm12 = vcmp.eq.s32.totalorder %v2955_v33, %v2783_v31  ;;  %vm768_vm13 = vcmp.eq.s32.totalorder %v2955_v33, %v2786_v16  ;;  %vm962_vm14 = vcmp.eq.s32.totalorder %v2955_v33, %v2793_v37 }
  0xc4   :  { %v1835_v63 = vadd.f32 %v1771_v17, %v1641_v58  ;;  %v1073_v0 = vadd.f32 %v1009_v49, %v879_v60  ;;  %v508_v2 = vadd.f32 %v444_v56, %v250_v62  ;;  %v638_v19 = vsel %vm574_vm12, 0.11111111, %v2159_v18 }
  0xc5   :  { %v832_v7 = vsel %vm768_vm13, 0.11111111, %v2159_v18  ;;  %vm1156_vm15 = vcmp.eq.s32.totalorder %v2955_v33, %v2797_v41  ;;  %vm1350_vm0 = vcmp.eq.s32.totalorder %v2955_v33, %v2801_v43  ;;  %v1785_v21 = vsel %vm1721_vm11, 0.11111111, %v2159_v18 }
  0xc6   :  { %1909 = vmatpush.msra.mxu1 %v1835_v63  ;;  %v1267_v20 = vadd.f32 %v1203_v55, %v1073_v0  ;;  %v702_v22 = vadd.f32 %v638_v19, %v508_v2  ;;  %v1026_v6 = vsel %vm962_vm14, 0.11111111, %v2159_v18  ;;  %v1220_v23 = vsel %vm1156_vm15, 0.11111111, %v2159_v18 }
  0xc7   :  { %v1414_v24 = vsel %vm1350_vm0, 0.11111111, %v2159_v18  ;;  %vm1544_vm2 = vcmp.eq.s32.totalorder %v2955_v33, %v2804_v45  ;;  %vm138_vm3 = vcmp.eq.s32.totalorder %v2958_v36, %v2777_v30  ;;  %vm1738_vm1 = vcmp.eq.s32.totalorder %v2955_v33, %v2809_v50 }
  0xc8   :  { %v1461_v25 = vadd.f32 %v1397_v59, %v1267_v20  ;;  %v896_v9 = vadd.f32 %v832_v7, %v702_v22  ;;  %v1608_v10 = vsel %vm1544_vm2, 0.11111111, %v2159_v18  ;;  %v202_v11 = vsel %vm138_vm3, 0.11111111, %v2159_v18 }
  0xc9   :  { %vm332_vm4 = vcmp.eq.s32.totalorder %v2958_v36, %v2780_v15  ;;  %vm526_vm6 = vcmp.eq.s32.totalorder %v2958_v36, %v2783_v31  ;;  %vm720_vm7 = vcmp.eq.s32.totalorder %v2958_v36, %v2786_v16  ;;  %v1802_v12 = vsel %vm1738_vm1, 0.11111111, %v2159_v18 }
  0xca   :  { %v1655_v8 = vadd.f32 %v1591_v61, %v1461_v25  ;;  %v1090_v57 = vadd.f32 %v1026_v6, %v896_v9  ;;  %v396_v26 = vsel %vm332_vm4, 0.11111111, %v2159_v18  ;;  %v590_v27 = vsel %vm526_vm6, 0.11111111, %v2159_v18 }
  0xcb   :  { %v460_v13 = vadd.f32 %v396_v26, %v202_v11  ;;  %vm914_vm5 = vcmp.eq.s32.totalorder %v2958_v36, %v2793_v37  ;;  %vm1108_vm8 = vcmp.eq.s32.totalorder %v2958_v36, %v2797_v41  ;;  %v784_v29 = vsel %vm720_vm7, 0.11111111, %v2159_v18 }
  0xcc   :  { %v1849_v28 = vadd.f32 %v1785_v21, %v1655_v8  ;;  %v1284_v4 = vadd.f32 %v1220_v23, %v1090_v57  ;;  %v978_v14 = vsel %vm914_vm5, 0.11111111, %v2159_v18  ;;  %v1172_v5 = vsel %vm1108_vm8, 0.11111111, %v2159_v18 }
  0xcd   :  { %v654_v32 = vadd.f32 %v590_v27, %v460_v13  ;;  %vm1302_vm9 = vcmp.eq.s32.totalorder %v2958_v36, %v2801_v43  ;;  %vm1496_vm10 = vcmp.eq.s32.totalorder %v2958_v36, %v2804_v45  ;;  %vm1690_vm11 = vcmp.eq.s32.totalorder %v2958_v36, %v2809_v50 }
  0xce   :  { %1934 = vmatpush.msra.mxu2 %v1849_v28  ;;  %v1478_v17 = vadd.f32 %v1414_v24, %v1284_v4  ;;  %v1366_v44 = vsel %vm1302_vm9, 0.11111111, %v2159_v18  ;;  %v1560_v33 = vsel %vm1496_vm10, 0.11111111, %v2159_v18  ;;  %vm154_vm12 = vcmp.eq.s32.totalorder %v2961_v3, %v2777_v30 }
  0xcf   :  { %v848_v34 = vadd.f32 %v784_v29, %v654_v32  ;;  %vm348_vm13 = vcmp.eq.s32.totalorder %v2961_v3, %v2780_v15  ;;  %vm542_vm14 = vcmp.eq.s32.totalorder %v2961_v3, %v2783_v31  ;;  %v218_v40 = vsel %vm154_vm12, 0.11111111, %v2159_v18 }
  0xd0   :  { %v1672_v39 = vadd.f32 %v1608_v10, %v1478_v17  ;;  %v412_v35 = vsel %vm348_vm13, 0.11111111, %v2159_v18  ;;  %v606_v42 = vsel %vm542_vm14, 0.11111111, %v2159_v18  ;;  %vm736_vm15 = vcmp.eq.s32.totalorder %v2961_v3, %v2786_v16 }
  0xd1   :  { %v1042_v46 = vadd.f32 %v978_v14, %v848_v34  ;;  %v476_v47 = vadd.f32 %v412_v35, %v218_v40  ;;  %vm930_vm0 = vcmp.eq.s32.totalorder %v2961_v3, %v2793_v37  ;;  %v1754_v48 = vsel %vm1690_vm11, 0.11111111, %v2159_v18 }
  0xd2   :  { %v1866_v36 = vadd.f32 %v1802_v12, %v1672_v39  ;;  %v800_v51 = vsel %vm736_vm15, 0.11111111, %v2159_v18  ;;  %vm1124_vm2 = vcmp.eq.s32.totalorder %v2961_v3, %v2797_v41  ;;  %v994_v49 = vsel %vm930_vm0, 0.11111111, %v2159_v18 }
  0xd3   :  { %v1236_v53 = vadd.f32 %v1172_v5, %v1042_v46  ;;  %v670_v54 = vadd.f32 %v606_v42, %v476_v47  ;;  %vm1318_vm3 = vcmp.eq.s32.totalorder %v2961_v3, %v2801_v43  ;;  %v1188_v55 = vsel %vm1124_vm2, 0.11111111, %v2159_v18 }
  0xd4   :  { %1956 = vmatpush.msra.mxu3 %v1866_v36  ;;  %v1382_v59 = vsel %vm1318_vm3, 0.11111111, %v2159_v18  ;;  %vm1512_vm1 = vcmp.eq.s32.totalorder %v2961_v3, %v2804_v45  ;;  %vm168_vm4 = vcmp.eq.s32.totalorder %v2964_v38, %v2777_v30  ;;  %vm1706_vm6 = vcmp.eq.s32.totalorder %v2961_v3, %v2809_v50 }
  0xd5   :  { %v1430_v58 = vadd.f32 %v1366_v44, %v1236_v53  ;;  %v864_v60 = vadd.f32 %v800_v51, %v670_v54  ;;  %v1576_v61 = vsel %vm1512_vm1, 0.11111111, %v2159_v18  ;;  %v232_v62 = vsel %vm168_vm4, 0.11111111, %v2159_v18 }
  0xd6   :  { %vm362_vm7 = vcmp.eq.s32.totalorder %v2964_v38, %v2780_v15  ;;  %vm556_vm5 = vcmp.eq.s32.totalorder %v2964_v38, %v2783_v31  ;;  %vm750_vm8 = vcmp.eq.s32.totalorder %v2964_v38, %v2786_v16  ;;  %v1770_v19 = vsel %vm1706_vm6, 0.11111111, %v2159_v18 }
  0xd7   :  { %v1624_v56 = vadd.f32 %v1560_v33, %v1430_v58  ;;  %v1058_v63 = vadd.f32 %v994_v49, %v864_v60  ;;  %v426_v0 = vsel %vm362_vm7, 0.11111111, %v2159_v18  ;;  %v620_v2 = vsel %vm556_vm5, 0.11111111, %v2159_v18 }
  0xd8   :  { %v490_v3 = vadd.f32 %v426_v0, %v232_v62  ;;  %vm944_vm9 = vcmp.eq.s32.totalorder %v2964_v38, %v2793_v37  ;;  %vm1138_vm10 = vcmp.eq.s32.totalorder %v2964_v38, %v2797_v41  ;;  %v814_v21 = vsel %vm750_vm8, 0.11111111, %v2159_v18 }
  0xd9   :  { %v1818_v7 = vadd.f32 %v1754_v48, %v1624_v56  ;;  %v1252_v20 = vadd.f32 %v1188_v55, %v1058_v63  ;;  %v1008_v22 = vsel %vm944_vm9, 0.11111111, %v2159_v18  ;;  %v1202_v23 = vsel %vm1138_vm10, 0.11111111, %v2159_v18 }
  0xda   :  { %v684_v6 = vadd.f32 %v620_v2, %v490_v3  ;;  %vm1332_vm11 = vcmp.eq.s32.totalorder %v2964_v38, %v2801_v43  ;;  %vm1526_vm12 = vcmp.eq.s32.totalorder %v2964_v38, %v2804_v45  ;;  %vm1720_vm13 = vcmp.eq.s32.totalorder %v2964_v38, %v2809_v50 }
  0xdb   :  { %1887 = vmatpush.msra.mxu0 %v1818_v7  ;;  %v1446_v24 = vadd.f32 %v1382_v59, %v1252_v20  ;;  %v1396_v25 = vsel %vm1332_vm11, 0.11111111, %v2159_v18  ;;  %v1590_v9 = vsel %vm1526_vm12, 0.11111111, %v2159_v18  ;;  %vm185_vm14 = vcmp.eq.s32.totalorder %v2978_v52, %v2777_v30 }
  0xdc   :  { %v878_v10 = vadd.f32 %v814_v21, %v684_v6  ;;  %vm379_vm15 = vcmp.eq.s32.totalorder %v2978_v52, %v2780_v15  ;;  %vm573_vm0 = vcmp.eq.s32.totalorder %v2978_v52, %v2783_v31  ;;  %v249_v8 = vsel %vm185_vm14, 0.11111111, %v2159_v18 }
  0xdd   :  { %v1640_v11 = vadd.f32 %v1576_v61, %v1446_v24  ;;  %v443_v57 = vsel %vm379_vm15, 0.11111111, %v2159_v18  ;;  %v637_v26 = vsel %vm573_vm0, 0.11111111, %v2159_v18  ;;  %vm767_vm2 = vcmp.eq.s32.totalorder %v2978_v52, %v2786_v16 }
  0xde   :  { %v1072_v27 = vadd.f32 %v1008_v22, %v878_v10  ;;  %v507_v12 = vadd.f32 %v443_v57, %v249_v8  ;;  %vm961_vm3 = vcmp.eq.s32.totalorder %v2978_v52, %v2793_v37  ;;  %v1784_v13 = vsel %vm1720_vm13, 0.11111111, %v2159_v18 }
  0xdf   :  { %v1834_v38 = vadd.f32 %v1770_v19, %v1640_v11  ;;  %v831_v28 = vsel %vm767_vm2, 0.11111111, %v2159_v18  ;;  %vm1155_vm1 = vcmp.eq.s32.totalorder %v2978_v52, %v2797_v41  ;;  %v1025_v14 = vsel %vm961_vm3, 0.11111111, %v2159_v18 }
  0xe0   :  { %v1266_v4 = vadd.f32 %v1202_v23, %v1072_v27  ;;  %v701_v29 = vadd.f32 %v637_v26, %v507_v12  ;;  %vm1349_vm4 = vcmp.eq.s32.totalorder %v2978_v52, %v2801_v43  ;;  %v1219_v32 = vsel %vm1155_vm1, 0.11111111, %v2159_v18 }
  0xe1   :  { %1910 = vmatpush.msra.mxu1 %v1834_v38  ;;  %v1413_v5 = vsel %vm1349_vm4, 0.11111111, %v2159_v18  ;;  %vm1543_vm6 = vcmp.eq.s32.totalorder %v2978_v52, %v2804_v45  ;;  %v71_v17 = vadd.s32 64, %v2190_v1  ;;  %vm1737_vm7 = vcmp.eq.s32.totalorder %v2978_v52, %v2809_v50 }
  0xe2   :  { %v1460_v44 = vadd.f32 %v1396_v25, %v1266_v4  ;;  %v895_v33 = vadd.f32 %v831_v28, %v701_v29  ;;  %v1607_v34 = vsel %vm1543_vm6, 0.11111111, %v2159_v18  ;;  %v1801_v46 = vsel %vm1737_vm7, 0.11111111, %v2159_v18 }
  0xe3   :  { %vm137_vm5 = vcmp.eq.s32.totalorder %v71_v17, %v2777_v30  ;;  %vm331_vm8 = vcmp.eq.s32.totalorder %v71_v17, %v2780_v15  ;;  %vm525_vm9 = vcmp.eq.s32.totalorder %v71_v17, %v2783_v31  ;;  %vm719_vm10 = vcmp.eq.s32.totalorder %v71_v17, %v2786_v16 }
  0xe4   :  { %v1654_v39 = vadd.f32 %v1590_v9, %v1460_v44  ;;  %v1089_v40 = vadd.f32 %v1025_v14, %v895_v33  ;;  %v201_v35 = vsel %vm137_vm5, 0.11111111, %v2159_v18  ;;  %v395_v42 = vsel %vm331_vm8, 0.11111111, %v2159_v18 }
  0xe5   :  { %v459_v47 = vadd.f32 %v395_v42, %v201_v35  ;;  %v589_v36 = vsel %vm525_vm9, 0.11111111, %v2159_v18  ;;  %vm913_vm11 = vcmp.eq.s32.totalorder %v71_v17, %v2793_v37  ;;  %v783_v51 = vsel %vm719_vm10, 0.11111111, %v2159_v18 }
  0xe6   :  { %v1848_v52 = vadd.f32 %v1784_v13, %v1654_v39  ;;  %v1283_v48 = vadd.f32 %v1219_v32, %v1089_v40  ;;  %vm1107_vm12 = vcmp.eq.s32.totalorder %v71_v17, %v2797_v41  ;;  %v977_v54 = vsel %vm913_vm11, 0.11111111, %v2159_v18 }
  0xe7   :  { %v653_v53 = vadd.f32 %v589_v36, %v459_v47  ;;  %vm1301_vm13 = vcmp.eq.s32.totalorder %v71_v17, %v2801_v43  ;;  %vm1495_vm14 = vcmp.eq.s32.totalorder %v71_v17, %v2804_v45  ;;  %v1171_v55 = vsel %vm1107_vm12, 0.11111111, %v2159_v18 }
  0xe8   :  { %1935 = vmatpush.msra.mxu2 %v1848_v52  ;;  %v1477_v49 = vadd.f32 %v1413_v5, %v1283_v48  ;;  %v1365_v59 = vsel %vm1301_vm13, 0.11111111, %v2159_v18  ;;  %vm1689_vm15 = vcmp.eq.s32.totalorder %v71_v17, %v2809_v50  ;;  %v1559_v60 = vsel %vm1495_vm14, 0.11111111, %v2159_v18 }
  0xe9   :  { %v847_v58 = vadd.f32 %v783_v51, %v653_v53  ;;  %v1753_v61 = vsel %vm1689_vm15, 0.11111111, %v2159_v18  ;;  %v87_v62 = vadd.s32 192, %v2190_v1  ;;  %v3143_v63 = vadd.s32 304, %v2190_v1 }
  0xea   :  { %v1671_v56 = vadd.f32 %v1607_v34, %v1477_v49  ;;  %v3146_v0 = vadd.s32 440, %v2190_v1  ;;  %v3149_v2 = vadd.s32 56, %v2190_v1  ;;  %v3163_v24 = vadd.s32 184, %v2190_v1 }
  0xeb   :  { %v1041_v19 = vadd.f32 %v977_v54, %v847_v58  ;;  %vm153_vm0 = vcmp.eq.s32.totalorder %v87_v62, %v2777_v30  ;;  %vm347_vm2 = vcmp.eq.s32.totalorder %v87_v62, %v2780_v15  ;;  %vm541_vm3 = vcmp.eq.s32.totalorder %v87_v62, %v2783_v31 }
  0xec   :  { %v1865_v3 = vadd.f32 %v1801_v46, %v1671_v56  ;;  %v217_v7 = vsel %vm153_vm0, 0.11111111, %v2159_v18  ;;  %v411_v20 = vsel %vm347_vm2, 0.11111111, %v2159_v18  ;;  %v605_v21 = vsel %vm541_vm3, 0.11111111, %v2159_v18 }
  0xed   :  { %v1235_v22 = vadd.f32 %v1171_v55, %v1041_v19  ;;  %v475_v6 = vadd.f32 %v411_v20, %v217_v7  ;;  %vm735_vm1 = vcmp.eq.s32.totalorder %v87_v62, %v2786_v16  ;;  %vm929_vm4 = vcmp.eq.s32.totalorder %v87_v62, %v2793_v37 }
  0xee   :  { %1957 = vmatpush.msra.mxu3 %v1865_v3  ;;  %v799_v23 = vsel %vm735_vm1, 0.11111111, %v2159_v18  ;;  %vm1123_vm6 = vcmp.eq.s32.totalorder %v87_v62, %v2797_v41  ;;  %vm1317_vm7 = vcmp.eq.s32.totalorder %v87_v62, %v2801_v43  ;;  %v993_v10 = vsel %vm929_vm4, 0.11111111, %v2159_v18 }
  0xef   :  { %v1429_v25 = vadd.f32 %v1365_v59, %v1235_v22  ;;  %v669_v9 = vadd.f32 %v605_v21, %v475_v6  ;;  %v1187_v11 = vsel %vm1123_vm6, 0.11111111, %v2159_v18  ;;  %v1381_v8 = vsel %vm1317_vm7, 0.11111111, %v2159_v18 }
  0xf0   :  { %vm1511_vm5 = vcmp.eq.s32.totalorder %v87_v62, %v2804_v45  ;;  %vm167_vm8 = vcmp.eq.s32.totalorder %v3143_v63, %v2777_v30  ;;  %vm361_vm9 = vcmp.eq.s32.totalorder %v3143_v63, %v2780_v15  ;;  %vm1705_vm10 = vcmp.eq.s32.totalorder %v87_v62, %v2809_v50 }
  0xf1   :  { %v1623_v57 = vadd.f32 %v1559_v60, %v1429_v25  ;;  %v863_v26 = vadd.f32 %v799_v23, %v669_v9  ;;  %v1575_v27 = vsel %vm1511_vm5, 0.11111111, %v2159_v18  ;;  %v231_v12 = vsel %vm167_vm8, 0.11111111, %v2159_v18 }
  0xf2   :  { %v425_v38 = vsel %vm361_vm9, 0.11111111, %v2159_v18  ;;  %vm555_vm11 = vcmp.eq.s32.totalorder %v3143_v63, %v2783_v31  ;;  %vm749_vm12 = vcmp.eq.s32.totalorder %v3143_v63, %v2786_v16  ;;  %vm943_vm13 = vcmp.eq.s32.totalorder %v3143_v63, %v2793_v37 }
  0xf3   :  { %v1817_v13 = vadd.f32 %v1753_v61, %v1623_v57  ;;  %v1057_v28 = vadd.f32 %v993_v10, %v863_v26  ;;  %v489_v4 = vadd.f32 %v425_v38, %v231_v12  ;;  %v619_v29 = vsel %vm555_vm11, 0.11111111, %v2159_v18 }
  0xf4   :  { %v813_v14 = vsel %vm749_vm12, 0.11111111, %v2159_v18  ;;  %vm1137_vm14 = vcmp.eq.s32.totalorder %v3143_v63, %v2797_v41  ;;  %vm1331_vm15 = vcmp.eq.s32.totalorder %v3143_v63, %v2801_v43  ;;  %v1769_v5 = vsel %vm1705_vm10, 0.11111111, %v2159_v18 }
  0xf5   :  { %1888 = vmatpush.msra.mxu0 %v1817_v13  ;;  %v1251_v32 = vadd.f32 %v1187_v11, %v1057_v28  ;;  %v683_v17 = vadd.f32 %v619_v29, %v489_v4  ;;  %v1007_v44 = vsel %vm943_vm13, 0.11111111, %v2159_v18  ;;  %v1201_v33 = vsel %vm1137_vm14, 0.11111111, %v2159_v18 }
  0xf6   :  { %v1395_v34 = vsel %vm1331_vm15, 0.11111111, %v2159_v18  ;;  %vm1525_vm0 = vcmp.eq.s32.totalorder %v3143_v63, %v2804_v45  ;;  %vm184_vm2 = vcmp.eq.s32.totalorder %v3146_v0, %v2777_v30  ;;  %vm1719_vm3 = vcmp.eq.s32.totalorder %v3143_v63, %v2809_v50 }
  0xf7   :  { %v1445_v39 = vadd.f32 %v1381_v8, %v1251_v32  ;;  %v877_v40 = vadd.f32 %v813_v14, %v683_v17  ;;  %v1589_v35 = vsel %vm1525_vm0, 0.11111111, %v2159_v18  ;;  %v248_v42 = vsel %vm184_vm2, 0.11111111, %v2159_v18 }
  0xf8   :  { %vm378_vm1 = vcmp.eq.s32.totalorder %v3146_v0, %v2780_v15  ;;  %vm572_vm4 = vcmp.eq.s32.totalorder %v3146_v0, %v2783_v31  ;;  %vm766_vm6 = vcmp.eq.s32.totalorder %v3146_v0, %v2786_v16  ;;  %v1783_v48 = vsel %vm1719_vm3, 0.11111111, %v2159_v18 }
  0xf9   :  { %v1639_v46 = vadd.f32 %v1575_v27, %v1445_v39  ;;  %v1071_v47 = vadd.f32 %v1007_v44, %v877_v40  ;;  %v442_v36 = vsel %vm378_vm1, 0.11111111, %v2159_v18  ;;  %v636_v52 = vsel %vm572_vm4, 0.11111111, %v2159_v18 }
  0xfa   :  { %v506_v51 = vadd.f32 %v442_v36, %v248_v42  ;;  %vm960_vm7 = vcmp.eq.s32.totalorder %v3146_v0, %v2793_v37  ;;  %vm1154_vm5 = vcmp.eq.s32.totalorder %v3146_v0, %v2797_v41  ;;  %v830_v49 = vsel %vm766_vm6, 0.11111111, %v2159_v18 }
  0xfb   :  { %v1833_v53 = vadd.f32 %v1769_v5, %v1639_v46  ;;  %v1265_v54 = vadd.f32 %v1201_v33, %v1071_v47  ;;  %v1024_v55 = vsel %vm960_vm7, 0.11111111, %v2159_v18  ;;  %v1218_v58 = vsel %vm1154_vm5, 0.11111111, %v2159_v18 }
  0xfc   :  { %v700_v59 = vadd.f32 %v636_v52, %v506_v51  ;;  %vm1348_vm8 = vcmp.eq.s32.totalorder %v3146_v0, %v2801_v43  ;;  %vm1542_vm9 = vcmp.eq.s32.totalorder %v3146_v0, %v2804_v45  ;;  %vm1736_vm10 = vcmp.eq.s32.totalorder %v3146_v0, %v2809_v50 }
  0xfd   :  { %1911 = vmatpush.msra.mxu1 %v1833_v53  ;;  %v1459_v60 = vadd.f32 %v1395_v34, %v1265_v54  ;;  %v1412_v61 = vsel %vm1348_vm8, 0.11111111, %v2159_v18  ;;  %v1606_v62 = vsel %vm1542_vm9, 0.11111111, %v2159_v18  ;;  %vm136_vm11 = vcmp.eq.s32.totalorder %v3149_v2, %v2777_v30 }
  0xfe   :  { %v894_v56 = vadd.f32 %v830_v49, %v700_v59  ;;  %vm330_vm12 = vcmp.eq.s32.totalorder %v3149_v2, %v2780_v15  ;;  %vm524_vm13 = vcmp.eq.s32.totalorder %v3149_v2, %v2783_v31  ;;  %v200_v19 = vsel %vm136_vm11, 0.11111111, %v2159_v18  ;;  %v3299_v49 = vld [vmem:[#allocation2 + $0x3] ss:$0 sm:$0xff] }
  0xff   :  { %v1653_v63 = vadd.f32 %v1589_v35, %v1459_v60  ;;  %v394_v3 = vsel %vm330_vm12, 0.11111111, %v2159_v18  ;;  %v588_v7 = vsel %vm524_vm13, 0.11111111, %v2159_v18  ;;  %vm718_vm14 = vcmp.eq.s32.totalorder %v3149_v2, %v2786_v16 }
 0x100   :  { %v1088_v20 = vadd.f32 %v1024_v55, %v894_v56  ;;  %v458_v21 = vadd.f32 %v394_v3, %v200_v19  ;;  %vm912_vm15 = vcmp.eq.s32.totalorder %v3149_v2, %v2793_v37  ;;  %v1800_v22 = vsel %vm1736_vm10, 0.11111111, %v2159_v18 }
 0x101   :  { %v1847_v0 = vadd.f32 %v1783_v48, %v1653_v63  ;;  %v782_v6 = vsel %vm718_vm14, 0.11111111, %v2159_v18  ;;  %vm1106_vm0 = vcmp.eq.s32.totalorder %v3149_v2, %v2797_v41  ;;  %v976_v9 = vsel %vm912_vm15, 0.11111111, %v2159_v18  ;;  %v3324_v63 = vld [vmem:[#allocation2 + $0x8] ss:$0 sm:$0xff] }
 0x102   :  { %v1282_v23 = vadd.f32 %v1218_v58, %v1088_v20  ;;  %v652_v25 = vadd.f32 %v588_v7, %v458_v21  ;;  %vm1300_vm2 = vcmp.eq.s32.totalorder %v3149_v2, %v2801_v43  ;;  %v1170_v10 = vsel %vm1106_vm0, 0.11111111, %v2159_v18  ;;  %v3329_v7 = vld [vmem:[#allocation2 + $0x2] ss:$0 sm:$0xff] }
 0x103   :  { %1936 = vmatpush.msra.mxu2 %v1847_v0  ;;  %v1364_v11 = vsel %vm1300_vm2, 0.11111111, %v2159_v18  ;;  %vm1494_vm3 = vcmp.eq.s32.totalorder %v3149_v2, %v2804_v45  ;;  %vm152_vm1 = vcmp.eq.s32.totalorder %v3163_v24, %v2777_v30  ;;  %vm1688_vm4 = vcmp.eq.s32.totalorder %v3149_v2, %v2809_v50 }
 0x104   :  { %v1476_v8 = vadd.f32 %v1412_v61, %v1282_v23  ;;  %v846_v57 = vadd.f32 %v782_v6, %v652_v25  ;;  %v1558_v26 = vsel %vm1494_vm3, 0.11111111, %v2159_v18  ;;  %v216_v27 = vsel %vm152_vm1, 0.11111111, %v2159_v18  ;;  %v3312_v61 = vld [vmem:[#allocation2 + $0x7] ss:$0 sm:$0xff] }
 0x105   :  { %vm346_vm6 = vcmp.eq.s32.totalorder %v3163_v24, %v2780_v15  ;;  %vm540_vm7 = vcmp.eq.s32.totalorder %v3163_v24, %v2783_v31  ;;  %vm734_vm5 = vcmp.eq.s32.totalorder %v3163_v24, %v2786_v16  ;;  %v1752_v4 = vsel %vm1688_vm4, 0.11111111, %v2159_v18  ;;  %v3337_v23 = vld [vmem:[#allocation2 + $0x4] ss:$0 sm:$0xff]  ;;  %v3341_v25 = vld [vmem:[#allocation2 + $0x5] ss:$0 sm:$0xff] }
 0x106   :  { %v1670_v12 = vadd.f32 %v1606_v62, %v1476_v8  ;;  %v1040_v38 = vadd.f32 %v976_v9, %v846_v57  ;;  %v410_v13 = vsel %vm346_vm6, 0.11111111, %v2159_v18  ;;  %v604_v28 = vsel %vm540_vm7, 0.11111111, %v2159_v18  ;;  %v3345_v9 = vld [vmem:[#allocation2 + $0x6] ss:$0 sm:$0xff] }
 0x107   :  { %v474_v2 = vadd.f32 %v410_v13, %v216_v27  ;;  %vm928_vm8 = vcmp.eq.s32.totalorder %v3163_v24, %v2793_v37  ;;  %vm1122_vm9 = vcmp.eq.s32.totalorder %v3163_v24, %v2797_v41  ;;  %v798_v32 = vsel %vm734_vm5, 0.11111111, %v2159_v18 }
 0x108   :  { %v1864_v29 = vadd.f32 %v1800_v22, %v1670_v12  ;;  %v1234_v14 = vadd.f32 %v1170_v10, %v1040_v38  ;;  %v992_v16 = vsel %vm928_vm8, 0.11111111, %v2159_v18  ;;  %vm1316_vm10 = vcmp.eq.s32.totalorder %v3163_v24, %v2801_v43 }
 0x109   :  { %v668_v5 = vadd.f32 %v604_v28, %v474_v2  ;;  %vm1510_vm11 = vcmp.eq.s32.totalorder %v3163_v24, %v2804_v45  ;;  %vm1704_vm12 = vcmp.eq.s32.totalorder %v3163_v24, %v2809_v50  ;;  %v1186_v44 = vsel %vm1122_vm9, 0.11111111, %v2159_v18 }
 0x10a   :  { %1958 = vmatpush.msra.mxu3 %v1864_v29  ;;  %v1428_v17 = vadd.f32 %v1364_v11, %v1234_v14  ;;  %v1380_v33 = vsel %vm1316_vm10, 0.11111111, %v2159_v18  ;;  %v1574_v34 = vsel %vm1510_vm11, 0.11111111, %v2159_v18  ;;  %v1768_v40 = vsel %vm1704_vm12, 0.11111111, %v2159_v18 }
 0x10b   :  { %v862_v39 = vadd.f32 %v798_v32, %v668_v5  ;;  %v100_v35 = vadd.s32 296, %v2190_v1  ;;  %v3282_v42 = vadd.s32 432, %v2190_v1  ;;  %v3285_v46 = vadd.s32 48, %v2190_v1 }
 0x10c   :  { %v1622_v45 = vadd.f32 %v1558_v26, %v1428_v17  ;;  %v3288_v50 = vadd.s32 176, %v2190_v1  ;;  %v3291_v24 = vadd.s32 288, %v2190_v1 }
 0x10d   :  { %v1056_v47 = vadd.f32 %v992_v16, %v862_v39  ;;  %vm166_vm13 = vcmp.eq.s32.totalorder %v100_v35, %v2777_v30  ;;  %vm360_vm14 = vcmp.eq.s32.totalorder %v100_v35, %v2780_v15  ;;  %vm554_vm15 = vcmp.eq.s32.totalorder %v100_v35, %v2783_v31 }
 0x10e   :  { %v1816_v36 = vadd.f32 %v1752_v4, %v1622_v45  ;;  %v230_v52 = vsel %vm166_vm13, 0.11111111, %v2159_v18  ;;  %v424_v48 = vsel %vm360_vm14, 0.11111111, %v2159_v18  ;;  %v618_v51 = vsel %vm554_vm15, 0.11111111, %v2159_v18 }
 0x10f   :  { %v1250_v53 = vadd.f32 %v1186_v44, %v1056_v47  ;;  %v488_v54 = vadd.f32 %v424_v48, %v230_v52  ;;  %vm748_vm0 = vcmp.eq.s32.totalorder %v100_v35, %v3299_v49  ;;  %vm942_vm2 = vcmp.eq.s32.totalorder %v100_v35, %v2793_v37  ;;  %v3315_v37 = vld [vmem:[#allocation2] ss:$0 sm:$0xff] }
 0x110   :  { %1889 = vmatpush.msra.mxu0 %v1816_v36  ;;  %v812_v30 = vsel %vm748_vm0, 0.11111111, %v2159_v18  ;;  %vm1136_vm3 = vcmp.eq.s32.totalorder %v100_v35, %v2797_v41  ;;  %vm1330_vm1 = vcmp.eq.s32.totalorder %v100_v35, %v2801_v43  ;;  %v3307_v15 = vadd.s32 424, %v2190_v1  ;;  %v3319_v41 = vld [vmem:[#allocation2 + $0x1] ss:$0 sm:$0xff] }
 0x111   :  { %v1444_v31 = vadd.f32 %v1380_v33, %v1250_v53  ;;  %v682_v55 = vadd.f32 %v618_v51, %v488_v54  ;;  %v1006_v59 = vsel %vm942_vm2, 0.11111111, %v2159_v18  ;;  %v1200_v58 = vsel %vm1136_vm3, 0.11111111, %v2159_v18 }
 0x112   :  { %v1394_v60 = vsel %vm1330_vm1, 0.11111111, %v2159_v18  ;;  %vm1524_vm4 = vcmp.eq.s32.totalorder %v100_v35, %v3312_v61  ;;  %vm183_vm6 = vcmp.eq.s32.totalorder %v3282_v42, %v3315_v37  ;;  %vm377_vm7 = vcmp.eq.s32.totalorder %v3282_v42, %v3319_v41 }
 0x113   :  { %v1638_v43 = vadd.f32 %v1574_v34, %v1444_v31  ;;  %v876_v62 = vadd.f32 %v812_v30, %v682_v55  ;;  %v1588_v56 = vsel %vm1524_vm4, 0.11111111, %v2159_v18  ;;  %vm1718_vm5 = vcmp.eq.s32.totalorder %v100_v35, %v3324_v63 }
 0x114   :  { %v247_v19 = vsel %vm183_vm6, 0.11111111, %v2159_v18  ;;  %v441_v3 = vsel %vm377_vm7, 0.11111111, %v2159_v18  ;;  %vm571_vm8 = vcmp.eq.s32.totalorder %v3282_v42, %v3329_v7  ;;  %vm765_vm9 = vcmp.eq.s32.totalorder %v3282_v42, %v3299_v49 }
 0x115   :  { %v1832_v20 = vadd.f32 %v1768_v40, %v1638_v43  ;;  %v1070_v21 = vadd.f32 %v1006_v59, %v876_v62  ;;  %v505_v0 = vadd.f32 %v441_v3, %v247_v19  ;;  %v635_v22 = vsel %vm571_vm8, 0.11111111, %v2159_v18 }
 0x116   :  { %v829_v6 = vsel %vm765_vm9, 0.11111111, %v2159_v18  ;;  %vm959_vm10 = vcmp.eq.s32.totalorder %v3282_v42, %v3337_v23  ;;  %vm1153_vm11 = vcmp.eq.s32.totalorder %v3282_v42, %v3341_v25  ;;  %vm1347_vm12 = vcmp.eq.s32.totalorder %v3282_v42, %v3345_v9 }
 0x117   :  { %1912 = vmatpush.msra.mxu1 %v1832_v20  ;;  %v1264_v10 = vadd.f32 %v1200_v58, %v1070_v21  ;;  %v1782_v11 = vsel %vm1718_vm5, 0.11111111, %v2159_v18  ;;  %v699_v8 = vadd.f32 %v635_v22, %v505_v0  ;;  %v1023_v57 = vsel %vm959_vm10, 0.11111111, %v2159_v18 }
 0x118   :  { %v1217_v26 = vsel %vm1153_vm11, 0.11111111, %v2159_v18  ;;  %v1411_v27 = vsel %vm1347_vm12, 0.11111111, %v2159_v18  ;;  %vm1541_vm13 = vcmp.eq.s32.totalorder %v3282_v42, %v3312_v61  ;;  %vm135_vm14 = vcmp.eq.s32.totalorder %v3285_v46, %v3315_v37 }
 0x119   :  { %v1458_v12 = vadd.f32 %v1394_v60, %v1264_v10  ;;  %v893_v38 = vadd.f32 %v829_v6, %v699_v8  ;;  %v1605_v13 = vsel %vm1541_vm13, 0.11111111, %v2159_v18  ;;  %vm1735_vm15 = vcmp.eq.s32.totalorder %v3282_v42, %v3324_v63 }
 0x11a   :  { %v199_v28 = vsel %vm135_vm14, 0.11111111, %v2159_v18  ;;  %vm329_vm0 = vcmp.eq.s32.totalorder %v3285_v46, %v3319_v41  ;;  %vm523_vm2 = vcmp.eq.s32.totalorder %v3285_v46, %v3329_v7  ;;  %vm717_vm3 = vcmp.eq.s32.totalorder %v3285_v46, %v3299_v49 }
 0x11b   :  { %v1652_v4 = vadd.f32 %v1588_v56, %v1458_v12  ;;  %v1087_v2 = vadd.f32 %v1023_v57, %v893_v38  ;;  %v393_v29 = vsel %vm329_vm0, 0.11111111, %v2159_v18  ;;  %v587_v14 = vsel %vm523_vm2, 0.11111111, %v2159_v18 }
 0x11c   :  { %v1799_v32 = vsel %vm1735_vm15, 0.11111111, %v2159_v18  ;;  %v457_v16 = vadd.f32 %v393_v29, %v199_v28  ;;  %vm911_vm1 = vcmp.eq.s32.totalorder %v3285_v46, %v3337_v23  ;;  %vm1105_vm4 = vcmp.eq.s32.totalorder %v3285_v46, %v3341_v25 }
 0x11d   :  { %v1846_v5 = vadd.f32 %v1782_v11, %v1652_v4  ;;  %v1281_v17 = vadd.f32 %v1217_v26, %v1087_v2  ;;  %v781_v44 = vsel %vm717_vm3, 0.11111111, %v2159_v18  ;;  %v975_v33 = vsel %vm911_vm1, 0.11111111, %v2159_v18 }
 0x11e   :  { %v651_v34 = vadd.f32 %v587_v14, %v457_v16  ;;  %v1169_v39 = vsel %vm1105_vm4, 0.11111111, %v2159_v18  ;;  %vm1299_vm6 = vcmp.eq.s32.totalorder %v3285_v46, %v3345_v9  ;;  %vm1493_vm7 = vcmp.eq.s32.totalorder %v3285_v46, %v3312_v61 }
 0x11f   :  { %1937 = vmatpush.msra.mxu2 %v1846_v5  ;;  %v1475_v40 = vadd.f32 %v1411_v27, %v1281_v17  ;;  %v1363_v35 = vsel %vm1299_vm6, 0.11111111, %v2159_v18  ;;  %v1557_v42 = vsel %vm1493_vm7, 0.11111111, %v2159_v18  ;;  %vm1687_vm5 = vcmp.eq.s32.totalorder %v3285_v46, %v3324_v63 }
 0x120   :  { %v845_v45 = vadd.f32 %v781_v44, %v651_v34  ;;  %vm151_vm8 = vcmp.eq.s32.totalorder %v3288_v50, %v3315_v37  ;;  %vm345_vm9 = vcmp.eq.s32.totalorder %v3288_v50, %v3319_v41  ;;  %vm539_vm10 = vcmp.eq.s32.totalorder %v3288_v50, %v3329_v7 }
 0x121   :  { %v1669_v47 = vadd.f32 %v1605_v13, %v1475_v40  ;;  %v215_v36 = vsel %vm151_vm8, 0.11111111, %v2159_v18  ;;  %v409_v52 = vsel %vm345_vm9, 0.11111111, %v2159_v18  ;;  %v603_v48 = vsel %vm539_vm10, 0.11111111, %v2159_v18 }
 0x122   :  { %v1039_v51 = vadd.f32 %v975_v33, %v845_v45  ;;  %v473_v53 = vadd.f32 %v409_v52, %v215_v36  ;;  %vm733_vm11 = vcmp.eq.s32.totalorder %v3288_v50, %v3299_v49  ;;  %vm927_vm12 = vcmp.eq.s32.totalorder %v3288_v50, %v3337_v23 }
 0x123   :  { %v1863_v46 = vadd.f32 %v1799_v32, %v1669_v47  ;;  %v1751_v54 = vsel %vm1687_vm5, 0.11111111, %v2159_v18  ;;  %v797_v30 = vsel %vm733_vm11, 0.11111111, %v2159_v18  ;;  %vm1121_vm13 = vcmp.eq.s32.totalorder %v3288_v50, %v3341_v25 }
 0x124   :  { %v1233_v31 = vadd.f32 %v1169_v39, %v1039_v51  ;;  %v667_v55 = vadd.f32 %v603_v48, %v473_v53  ;;  %v991_v59 = vsel %vm927_vm12, 0.11111111, %v2159_v18  ;;  %vm1315_vm14 = vcmp.eq.s32.totalorder %v3288_v50, %v3345_v9 }
 0x125   :  { %1959 = vmatpush.msra.mxu3 %v1863_v46  ;;  %v1185_v58 = vsel %vm1121_vm13, 0.11111111, %v2159_v18  ;;  %v1379_v60 = vsel %vm1315_vm14, 0.11111111, %v2159_v18  ;;  %vm1509_vm15 = vcmp.eq.s32.totalorder %v3288_v50, %v3312_v61  ;;  %vm165_vm0 = vcmp.eq.s32.totalorder %v3291_v24, %v3315_v37 }
 0x126   :  { %v1427_v43 = vadd.f32 %v1363_v35, %v1233_v31  ;;  %v861_v62 = vadd.f32 %v797_v30, %v667_v55  ;;  %v1573_v56 = vsel %vm1509_vm15, 0.11111111, %v2159_v18  ;;  %vm1703_vm2 = vcmp.eq.s32.totalorder %v3288_v50, %v3324_v63 }
 0x127   :  { %v229_v19 = vsel %vm165_vm0, 0.11111111, %v2159_v18  ;;  %vm359_vm3 = vcmp.eq.s32.totalorder %v3291_v24, %v3319_v41  ;;  %vm553_vm1 = vcmp.eq.s32.totalorder %v3291_v24, %v3329_v7  ;;  %vm747_vm4 = vcmp.eq.s32.totalorder %v3291_v24, %v3299_v49 }
 0x128   :  { %v1621_v3 = vadd.f32 %v1557_v42, %v1427_v43  ;;  %v1055_v20 = vadd.f32 %v991_v59, %v861_v62  ;;  %v423_v21 = vsel %vm359_vm3, 0.11111111, %v2159_v18  ;;  %v617_v0 = vsel %vm553_vm1, 0.11111111, %v2159_v18 }
 0x129   :  { %v1767_v22 = vsel %vm1703_vm2, 0.11111111, %v2159_v18  ;;  %v487_v50 = vadd.f32 %v423_v21, %v229_v19  ;;  %vm941_vm6 = vcmp.eq.s32.totalorder %v3291_v24, %v3337_v23  ;;  %vm1135_vm7 = vcmp.eq.s32.totalorder %v3291_v24, %v3341_v25 }
 0x12a   :  { %v1815_v6 = vadd.f32 %v1751_v54, %v1621_v3  ;;  %v1249_v10 = vadd.f32 %v1185_v58, %v1055_v20  ;;  %v811_v11 = vsel %vm747_vm4, 0.11111111, %v2159_v18  ;;  %v1005_v8 = vsel %vm941_vm6, 0.11111111, %v2159_v18 }
 0x12b   :  { %v681_v57 = vadd.f32 %v617_v0, %v487_v50  ;;  %v1199_v26 = vsel %vm1135_vm7, 0.11111111, %v2159_v18  ;;  %vm1329_vm5 = vcmp.eq.s32.totalorder %v3291_v24, %v3345_v9  ;;  %vm1523_vm8 = vcmp.eq.s32.totalorder %v3291_v24, %v3312_v61 }
 0x12c   :  { %1890 = vmatpush.msra.mxu0 %v1815_v6  ;;  %v1443_v27 = vadd.f32 %v1379_v60, %v1249_v10  ;;  %v1393_v12 = vsel %vm1329_vm5, 0.11111111, %v2159_v18  ;;  %v1587_v38 = vsel %vm1523_vm8, 0.11111111, %v2159_v18  ;;  %vm1717_vm9 = vcmp.eq.s32.totalorder %v3291_v24, %v3324_v63 }
 0x12d   :  { %v875_v13 = vadd.f32 %v811_v11, %v681_v57  ;;  %vm182_vm10 = vcmp.eq.s32.totalorder %v3307_v15, %v3315_v37  ;;  %vm376_vm11 = vcmp.eq.s32.totalorder %v3307_v15, %v3319_v41  ;;  %vm570_vm12 = vcmp.eq.s32.totalorder %v3307_v15, %v3329_v7 }
 0x12e   :  { %v1637_v28 = vadd.f32 %v1573_v56, %v1443_v27  ;;  %v246_v4 = vsel %vm182_vm10, 0.11111111, %v2159_v18  ;;  %v440_v2 = vsel %vm376_vm11, 0.11111111, %v2159_v18  ;;  %v634_v29 = vsel %vm570_vm12, 0.11111111, %v2159_v18 }
 0x12f   :  { %v1069_v14 = vadd.f32 %v1005_v8, %v875_v13  ;;  %v504_v32 = vadd.f32 %v440_v2, %v246_v4  ;;  %vm764_vm13 = vcmp.eq.s32.totalorder %v3307_v15, %v3299_v49  ;;  %vm958_vm14 = vcmp.eq.s32.totalorder %v3307_v15, %v3337_v23 }
 0x130   :  { %v1831_v24 = vadd.f32 %v1767_v22, %v1637_v28  ;;  %v1781_v16 = vsel %vm1717_vm9, 0.11111111, %v2159_v18  ;;  %v828_v5 = vsel %vm764_vm13, 0.11111111, %v2159_v18  ;;  %vm1152_vm15 = vcmp.eq.s32.totalorder %v3307_v15, %v3341_v25 }
 0x131   :  { %v1263_v17 = vadd.f32 %v1199_v26, %v1069_v14  ;;  %v698_v44 = vadd.f32 %v634_v29, %v504_v32  ;;  %v1022_v33 = vsel %vm958_vm14, 0.11111111, %v2159_v18  ;;  %vm1346_vm0 = vcmp.eq.s32.totalorder %v3307_v15, %v3345_v9 }
 0x132   :  { %1913 = vmatpush.msra.mxu1 %v1831_v24  ;;  %v1216_v34 = vsel %vm1152_vm15, 0.11111111, %v2159_v18  ;;  %v1410_v39 = vsel %vm1346_vm0, 0.11111111, %v2159_v18  ;;  %vm1540_vm2 = vcmp.eq.s32.totalorder %v3307_v15, %v3312_v61  ;;  %v68_v40 = vadd.s32 40, %v2190_v1 }
 0x133   :  { %v1457_v35 = vadd.f32 %v1393_v12, %v1263_v17  ;;  %v892_v42 = vadd.f32 %v828_v5, %v698_v44  ;;  %v1604_v45 = vsel %vm1540_vm2, 0.11111111, %v2159_v18  ;;  %vm1734_vm3 = vcmp.eq.s32.totalorder %v3307_v15, %v3324_v63 }
 0x134   :  { %vm134_vm1 = vcmp.eq.s32.totalorder %v68_v40, %v3315_v37  ;;  %vm328_vm4 = vcmp.eq.s32.totalorder %v68_v40, %v3319_v41  ;;  %vm522_vm6 = vcmp.eq.s32.totalorder %v68_v40, %v3329_v7  ;;  %vm716_vm7 = vcmp.eq.s32.totalorder %v68_v40, %v3299_v49 }
 0x135   :  { %v1651_v47 = vadd.f32 %v1587_v38, %v1457_v35  ;;  %v1086_v36 = vadd.f32 %v1022_v33, %v892_v42  ;;  %v198_v52 = vsel %vm134_vm1, 0.11111111, %v2159_v18  ;;  %v392_v48 = vsel %vm328_vm4, 0.11111111, %v2159_v18 }
 0x136   :  { %v1798_v51 = vsel %vm1734_vm3, 0.11111111, %v2159_v18  ;;  %v456_v53 = vadd.f32 %v392_v48, %v198_v52  ;;  %v586_v46 = vsel %vm522_vm6, 0.11111111, %v2159_v18  ;;  %vm910_vm5 = vcmp.eq.s32.totalorder %v68_v40, %v3337_v23 }
 0x137   :  { %v1845_v15 = vadd.f32 %v1781_v16, %v1651_v47  ;;  %v1280_v54 = vadd.f32 %v1216_v34, %v1086_v36  ;;  %v780_v30 = vsel %vm716_vm7, 0.11111111, %v2159_v18  ;;  %vm1104_vm8 = vcmp.eq.s32.totalorder %v68_v40, %v3341_v25 }
 0x138   :  { %v650_v31 = vadd.f32 %v586_v46, %v456_v53  ;;  %v974_v55 = vsel %vm910_vm5, 0.11111111, %v2159_v18  ;;  %vm1298_vm9 = vcmp.eq.s32.totalorder %v68_v40, %v3345_v9  ;;  %vm1492_vm10 = vcmp.eq.s32.totalorder %v68_v40, %v3312_v61 }
 0x139   :  { %1938 = vmatpush.msra.mxu2 %v1845_v15  ;;  %v1474_v59 = vadd.f32 %v1410_v39, %v1280_v54  ;;  %v1168_v58 = vsel %vm1104_vm8, 0.11111111, %v2159_v18  ;;  %v1362_v60 = vsel %vm1298_vm9, 0.11111111, %v2159_v18  ;;  %vm1686_vm11 = vcmp.eq.s32.totalorder %v68_v40, %v3324_v63 }
 0x13a   :  { %v844_v43 = vadd.f32 %v780_v30, %v650_v31  ;;  %v1556_v62 = vsel %vm1492_vm10, 0.11111111, %v2159_v18  ;;  %v1750_v56 = vsel %vm1686_vm11, 0.11111111, %v2159_v18  ;;  %v84_v19 = vadd.s32 168, %v2190_v1 }
 0x13b   :  { %v1668_v3 = vadd.f32 %v1604_v45, %v1474_v59  ;;  %v3490_v20 = vadd.s32 280, %v2190_v1  ;;  %v3493_v21 = vadd.s32 416, %v2190_v1  ;;  %v3496_v0 = vadd.s32 32, %v2190_v1 }
 0x13c   :  { %v1038_v22 = vadd.f32 %v974_v55, %v844_v43  ;;  %vm150_vm12 = vcmp.eq.s32.totalorder %v84_v19, %v3315_v37  ;;  %vm344_vm13 = vcmp.eq.s32.totalorder %v84_v19, %v3319_v41  ;;  %vm538_vm14 = vcmp.eq.s32.totalorder %v84_v19, %v3329_v7 }
 0x13d   :  { %v1862_v50 = vadd.f32 %v1798_v51, %v1668_v3  ;;  %v214_v6 = vsel %vm150_vm12, 0.11111111, %v2159_v18  ;;  %v408_v10 = vsel %vm344_vm13, 0.11111111, %v2159_v18  ;;  %v602_v11 = vsel %vm538_vm14, 0.11111111, %v2159_v18 }
 0x13e   :  { %v1232_v8 = vadd.f32 %v1168_v58, %v1038_v22  ;;  %v472_v57 = vadd.f32 %v408_v10, %v214_v6  ;;  %vm732_vm15 = vcmp.eq.s32.totalorder %v84_v19, %v3299_v49  ;;  %vm926_vm0 = vcmp.eq.s32.totalorder %v84_v19, %v3337_v23 }
 0x13f   :  { %1960 = vmatpush.msra.mxu3 %v1862_v50  ;;  %v796_v26 = vsel %vm732_vm15, 0.11111111, %v2159_v18  ;;  %vm1120_vm2 = vcmp.eq.s32.totalorder %v84_v19, %v3341_v25  ;;  %vm1314_vm3 = vcmp.eq.s32.totalorder %v84_v19, %v3345_v9  ;;  %v3510_v27 = vadd.s32 160, %v2190_v1 }
 0x140   :  { %v1426_v12 = vadd.f32 %v1362_v60, %v1232_v8  ;;  %v666_v38 = vadd.f32 %v602_v11, %v472_v57  ;;  %v990_v13 = vsel %vm926_vm0, 0.11111111, %v2159_v18  ;;  %v1184_v28 = vsel %vm1120_vm2, 0.11111111, %v2159_v18 }
 0x141   :  { %v1378_v4 = vsel %vm1314_vm3, 0.11111111, %v2159_v18  ;;  %vm1508_vm1 = vcmp.eq.s32.totalorder %v84_v19, %v3312_v61  ;;  %vm164_vm4 = vcmp.eq.s32.totalorder %v3490_v20, %v3315_v37  ;;  %vm358_vm6 = vcmp.eq.s32.totalorder %v3490_v20, %v3319_v41 }
 0x142   :  { %v1620_v2 = vadd.f32 %v1556_v62, %v1426_v12  ;;  %v860_v29 = vadd.f32 %v796_v26, %v666_v38  ;;  %v1572_v14 = vsel %vm1508_vm1, 0.11111111, %v2159_v18  ;;  %vm1702_vm7 = vcmp.eq.s32.totalorder %v84_v19, %v3324_v63 }
 0x143   :  { %v228_v32 = vsel %vm164_vm4, 0.11111111, %v2159_v18  ;;  %v422_v24 = vsel %vm358_vm6, 0.11111111, %v2159_v18  ;;  %vm552_vm5 = vcmp.eq.s32.totalorder %v3490_v20, %v3329_v7  ;;  %vm746_vm8 = vcmp.eq.s32.totalorder %v3490_v20, %v3299_v49 }
 0x144   :  { %v1814_v16 = vadd.f32 %v1750_v56, %v1620_v2  ;;  %v1054_v5 = vadd.f32 %v990_v13, %v860_v29  ;;  %v486_v17 = vadd.f32 %v422_v24, %v228_v32  ;;  %v616_v44 = vsel %vm552_vm5, 0.11111111, %v2159_v18 }
 0x145   :  { %v810_v33 = vsel %vm746_vm8, 0.11111111, %v2159_v18  ;;  %vm940_vm9 = vcmp.eq.s32.totalorder %v3490_v20, %v3337_v23  ;;  %vm1134_vm10 = vcmp.eq.s32.totalorder %v3490_v20, %v3341_v25  ;;  %vm1328_vm11 = vcmp.eq.s32.totalorder %v3490_v20, %v3345_v9 }
 0x146   :  { %1891 = vmatpush.msra.mxu0 %v1814_v16  ;;  %v1248_v34 = vadd.f32 %v1184_v28, %v1054_v5  ;;  %v1766_v39 = vsel %vm1702_vm7, 0.11111111, %v2159_v18  ;;  %v680_v40 = vadd.f32 %v616_v44, %v486_v17  ;;  %v1004_v35 = vsel %vm940_vm9, 0.11111111, %v2159_v18 }
 0x147   :  { %v1198_v42 = vsel %vm1134_vm10, 0.11111111, %v2159_v18  ;;  %v1392_v45 = vsel %vm1328_vm11, 0.11111111, %v2159_v18  ;;  %vm1522_vm12 = vcmp.eq.s32.totalorder %v3490_v20, %v3312_v61  ;;  %vm181_vm13 = vcmp.eq.s32.totalorder %v3493_v21, %v3315_v37 }
 0x148   :  { %v1442_v47 = vadd.f32 %v1378_v4, %v1248_v34  ;;  %v874_v36 = vadd.f32 %v810_v33, %v680_v40  ;;  %v1586_v52 = vsel %vm1522_vm12, 0.11111111, %v2159_v18  ;;  %vm1716_vm14 = vcmp.eq.s32.totalorder %v3490_v20, %v3324_v63 }
 0x149   :  { %v245_v48 = vsel %vm181_vm13, 0.11111111, %v2159_v18  ;;  %vm375_vm15 = vcmp.eq.s32.totalorder %v3493_v21, %v3319_v41  ;;  %vm569_vm0 = vcmp.eq.s32.totalorder %v3493_v21, %v3329_v7  ;;  %vm763_vm2 = vcmp.eq.s32.totalorder %v3493_v21, %v3299_v49 }
 0x14a   :  { %v1636_v51 = vadd.f32 %v1572_v14, %v1442_v47  ;;  %v1068_v53 = vadd.f32 %v1004_v35, %v874_v36  ;;  %v439_v46 = vsel %vm375_vm15, 0.11111111, %v2159_v18  ;;  %v633_v15 = vsel %vm569_vm0, 0.11111111, %v2159_v18 }
 0x14b   :  { %v1780_v54 = vsel %vm1716_vm14, 0.11111111, %v2159_v18  ;;  %v503_v30 = vadd.f32 %v439_v46, %v245_v48  ;;  %vm957_vm3 = vcmp.eq.s32.totalorder %v3493_v21, %v3337_v23  ;;  %vm1151_vm1 = vcmp.eq.s32.totalorder %v3493_v21, %v3341_v25 }
 0x14c   :  { %v1830_v31 = vadd.f32 %v1766_v39, %v1636_v51  ;;  %v1262_v55 = vadd.f32 %v1198_v42, %v1068_v53  ;;  %v827_v59 = vsel %vm763_vm2, 0.11111111, %v2159_v18  ;;  %v1021_v58 = vsel %vm957_vm3, 0.11111111, %v2159_v18 }
 0x14d   :  { %v697_v60 = vadd.f32 %v633_v15, %v503_v30  ;;  %v1215_v43 = vsel %vm1151_vm1, 0.11111111, %v2159_v18  ;;  %vm1345_vm4 = vcmp.eq.s32.totalorder %v3493_v21, %v3345_v9  ;;  %vm1539_vm6 = vcmp.eq.s32.totalorder %v3493_v21, %v3312_v61 }
 0x14e   :  { %1914 = vmatpush.msra.mxu1 %v1830_v31  ;;  %v1456_v62 = vadd.f32 %v1392_v45, %v1262_v55  ;;  %v1409_v56 = vsel %vm1345_vm4, 0.11111111, %v2159_v18  ;;  %v1603_v19 = vsel %vm1539_vm6, 0.11111111, %v2159_v18  ;;  %vm1733_vm7 = vcmp.eq.s32.totalorder %v3493_v21, %v3324_v63 }
 0x14f   :  { %v891_v3 = vadd.f32 %v827_v59, %v697_v60  ;;  %vm133_vm5 = vcmp.eq.s32.totalorder %v3496_v0, %v3315_v37  ;;  %vm327_vm8 = vcmp.eq.s32.totalorder %v3496_v0, %v3319_v41  ;;  %vm521_vm9 = vcmp.eq.s32.totalorder %v3496_v0, %v3329_v7 }
 0x150   :  { %v1650_v20 = vadd.f32 %v1586_v52, %v1456_v62  ;;  %v197_v22 = vsel %vm133_vm5, 0.11111111, %v2159_v18  ;;  %v391_v50 = vsel %vm327_vm8, 0.11111111, %v2159_v18  ;;  %v585_v6 = vsel %vm521_vm9, 0.11111111, %v2159_v18 }
 0x151   :  { %v1085_v10 = vadd.f32 %v1021_v58, %v891_v3  ;;  %v455_v11 = vadd.f32 %v391_v50, %v197_v22  ;;  %vm715_vm10 = vcmp.eq.s32.totalorder %v3496_v0, %v3299_v49  ;;  %vm909_vm11 = vcmp.eq.s32.totalorder %v3496_v0, %v3337_v23 }
 0x152   :  { %v1844_v21 = vadd.f32 %v1780_v54, %v1650_v20  ;;  %v1797_v8 = vsel %vm1733_vm7, 0.11111111, %v2159_v18  ;;  %v779_v57 = vsel %vm715_vm10, 0.11111111, %v2159_v18  ;;  %vm1103_vm12 = vcmp.eq.s32.totalorder %v3496_v0, %v3341_v25 }
 0x153   :  { %v1279_v26 = vadd.f32 %v1215_v43, %v1085_v10  ;;  %v649_v12 = vadd.f32 %v585_v6, %v455_v11  ;;  %v973_v38 = vsel %vm909_vm11, 0.11111111, %v2159_v18  ;;  %vm1297_vm13 = vcmp.eq.s32.totalorder %v3496_v0, %v3345_v9 }
 0x154   :  { %1939 = vmatpush.msra.mxu2 %v1844_v21  ;;  %v1167_v13 = vsel %vm1103_vm12, 0.11111111, %v2159_v18  ;;  %v1361_v28 = vsel %vm1297_vm13, 0.11111111, %v2159_v18  ;;  %vm1491_vm14 = vcmp.eq.s32.totalorder %v3496_v0, %v3312_v61  ;;  %vm149_vm15 = vcmp.eq.s32.totalorder %v3510_v27, %v3315_v37 }
 0x155   :  { %v1473_v4 = vadd.f32 %v1409_v56, %v1279_v26  ;;  %v843_v2 = vadd.f32 %v779_v57, %v649_v12  ;;  %v1555_v29 = vsel %vm1491_vm14, 0.11111111, %v2159_v18  ;;  %vm1685_vm0 = vcmp.eq.s32.totalorder %v3496_v0, %v3324_v63 }
 0x156   :  { %v213_v14 = vsel %vm149_vm15, 0.11111111, %v2159_v18  ;;  %vm343_vm2 = vcmp.eq.s32.totalorder %v3510_v27, %v3319_v41  ;;  %vm537_vm3 = vcmp.eq.s32.totalorder %v3510_v27, %v3329_v7  ;;  %vm731_vm1 = vcmp.eq.s32.totalorder %v3510_v27, %v3299_v49 }
 0x157   :  { %v1667_v32 = vadd.f32 %v1603_v19, %v1473_v4  ;;  %v1037_v24 = vadd.f32 %v973_v38, %v843_v2  ;;  %v407_v16 = vsel %vm343_vm2, 0.11111111, %v2159_v18  ;;  %v601_v5 = vsel %vm537_vm3, 0.11111111, %v2159_v18 }
 0x158   :  { %v1749_v17 = vsel %vm1685_vm0, 0.11111111, %v2159_v18  ;;  %v471_v0 = vadd.f32 %v407_v16, %v213_v14  ;;  %vm925_vm4 = vcmp.eq.s32.totalorder %v3510_v27, %v3337_v23  ;;  %vm1119_vm6 = vcmp.eq.s32.totalorder %v3510_v27, %v3341_v25 }
 0x159   :  { %v1861_v44 = vadd.f32 %v1797_v8, %v1667_v32  ;;  %v1231_v33 = vadd.f32 %v1167_v13, %v1037_v24  ;;  %v795_v34 = vsel %vm731_vm1, 0.11111111, %v2159_v18  ;;  %v989_v39 = vsel %vm925_vm4, 0.11111111, %v2159_v18 }
 0x15a   :  { %v665_v40 = vadd.f32 %v601_v5, %v471_v0  ;;  %vm1313_vm7 = vcmp.eq.s32.totalorder %v3510_v27, %v3345_v9  ;;  %vm1507_vm5 = vcmp.eq.s32.totalorder %v3510_v27, %v3312_v61  ;;  %vm1701_vm8 = vcmp.eq.s32.totalorder %v3510_v27, %v3324_v63 }
 0x15b   :  { %1961 = vmatpush.msra.mxu3 %v1861_v44  ;;  %v1425_v35 = vadd.f32 %v1361_v28, %v1231_v33  ;;  %v1183_v42 = vsel %vm1119_vm6, 0.11111111, %v2159_v18  ;;  %v1377_v45 = vsel %vm1313_vm7, 0.11111111, %v2159_v18  ;;  %v1571_v47 = vsel %vm1507_vm5, 0.11111111, %v2159_v18 }
 0x15c   :  { %v859_v36 = vadd.f32 %v795_v34, %v665_v40  ;;  %v1765_v52 = vsel %vm1701_vm8, 0.11111111, %v2159_v18  ;;  %v97_v48 = vadd.s32 272, %v2190_v1  ;;  %v3629_v51 = vadd.s32 408, %v2190_v1 }
 0x15d   :  { %v1619_v53 = vadd.f32 %v1555_v29, %v1425_v35  ;;  %v3632_v46 = vadd.s32 24, %v2190_v1  ;;  %v3635_v27 = vadd.s32 152, %v2190_v1  ;;  %v3638_v15 = vadd.s32 264, %v2190_v1 }
 0x15e   :  { %v1053_v54 = vadd.f32 %v989_v39, %v859_v36  ;;  %vm163_vm9 = vcmp.eq.s32.totalorder %v97_v48, %v3315_v37  ;;  %vm357_vm10 = vcmp.eq.s32.totalorder %v97_v48, %v3319_v41  ;;  %vm551_vm11 = vcmp.eq.s32.totalorder %v97_v48, %v3329_v7 }
 0x15f   :  { %v1813_v30 = vadd.f32 %v1749_v17, %v1619_v53  ;;  %v227_v31 = vsel %vm163_vm9, 0.11111111, %v2159_v18  ;;  %v421_v55 = vsel %vm357_vm10, 0.11111111, %v2159_v18  ;;  %v615_v59 = vsel %vm551_vm11, 0.11111111, %v2159_v18 }
 0x160   :  { %v1247_v58 = vadd.f32 %v1183_v42, %v1053_v54  ;;  %v485_v60 = vadd.f32 %v421_v55, %v227_v31  ;;  %vm745_vm12 = vcmp.eq.s32.totalorder %v97_v48, %v3299_v49  ;;  %vm939_vm13 = vcmp.eq.s32.totalorder %v97_v48, %v3337_v23 }
 0x161   :  { %1892 = vmatpush.msra.mxu0 %v1813_v30  ;;  %v809_v43 = vsel %vm745_vm12, 0.11111111, %v2159_v18  ;;  %vm1133_vm14 = vcmp.eq.s32.totalorder %v97_v48, %v3341_v25  ;;  %vm1327_vm15 = vcmp.eq.s32.totalorder %v97_v48, %v3345_v9  ;;  %v3652_v62 = vadd.s32 400, %v2190_v1 }
 0x162   :  { %v1441_v56 = vadd.f32 %v1377_v45, %v1247_v58  ;;  %v679_v19 = vadd.f32 %v615_v59, %v485_v60  ;;  %v1003_v3 = vsel %vm939_vm13, 0.11111111, %v2159_v18  ;;  %v1197_v20 = vsel %vm1133_vm14, 0.11111111, %v2159_v18 }
 0x163   :  { %v1391_v22 = vsel %vm1327_vm15, 0.11111111, %v2159_v18  ;;  %vm1521_vm0 = vcmp.eq.s32.totalorder %v97_v48, %v3312_v61  ;;  %vm180_vm2 = vcmp.eq.s32.totalorder %v3629_v51, %v3315_v37  ;;  %vm374_vm3 = vcmp.eq.s32.totalorder %v3629_v51, %v3319_v41 }
 0x164   :  { %v1635_v50 = vadd.f32 %v1571_v47, %v1441_v56  ;;  %v873_v6 = vadd.f32 %v809_v43, %v679_v19  ;;  %v1585_v10 = vsel %vm1521_vm0, 0.11111111, %v2159_v18  ;;  %vm1715_vm1 = vcmp.eq.s32.totalorder %v97_v48, %v3324_v63 }
 0x165   :  { %v244_v11 = vsel %vm180_vm2, 0.11111111, %v2159_v18  ;;  %v438_v21 = vsel %vm374_vm3, 0.11111111, %v2159_v18  ;;  %vm568_vm4 = vcmp.eq.s32.totalorder %v3629_v51, %v3329_v7  ;;  %vm762_vm6 = vcmp.eq.s32.totalorder %v3629_v51, %v3299_v49 }
 0x166   :  { %v1829_v8 = vadd.f32 %v1765_v52, %v1635_v50  ;;  %v1067_v57 = vadd.f32 %v1003_v3, %v873_v6  ;;  %v502_v26 = vadd.f32 %v438_v21, %v244_v11  ;;  %v632_v12 = vsel %vm568_vm4, 0.11111111, %v2159_v18 }
 0x167   :  { %v826_v38 = vsel %vm762_vm6, 0.11111111, %v2159_v18  ;;  %vm956_vm7 = vcmp.eq.s32.totalorder %v3629_v51, %v3337_v23  ;;  %vm1150_vm5 = vcmp.eq.s32.totalorder %v3629_v51, %v3341_v25  ;;  %vm1344_vm8 = vcmp.eq.s32.totalorder %v3629_v51, %v3345_v9 }
 0x168   :  { %1915 = vmatpush.msra.mxu1 %v1829_v8  ;;  %v1261_v13 = vadd.f32 %v1197_v20, %v1067_v57  ;;  %v1779_v28 = vsel %vm1715_vm1, 0.11111111, %v2159_v18  ;;  %v696_v4 = vadd.f32 %v632_v12, %v502_v26  ;;  %v1020_v2 = vsel %vm956_vm7, 0.11111111, %v2159_v18 }
 0x169   :  { %v1214_v29 = vsel %vm1150_vm5, 0.11111111, %v2159_v18  ;;  %v1408_v14 = vsel %vm1344_vm8, 0.11111111, %v2159_v18  ;;  %vm1538_vm9 = vcmp.eq.s32.totalorder %v3629_v51, %v3312_v61  ;;  %vm132_vm10 = vcmp.eq.s32.totalorder %v3632_v46, %v3315_v37 }
 0x16a   :  { %v1455_v32 = vadd.f32 %v1391_v22, %v1261_v13  ;;  %v890_v24 = vadd.f32 %v826_v38, %v696_v4  ;;  %v1602_v16 = vsel %vm1538_vm9, 0.11111111, %v2159_v18  ;;  %vm1732_vm11 = vcmp.eq.s32.totalorder %v3629_v51, %v3324_v63 }
 0x16b   :  { %v196_v5 = vsel %vm132_vm10, 0.11111111, %v2159_v18  ;;  %vm326_vm12 = vcmp.eq.s32.totalorder %v3632_v46, %v3319_v41  ;;  %vm520_vm13 = vcmp.eq.s32.totalorder %v3632_v46, %v3329_v7  ;;  %vm714_vm14 = vcmp.eq.s32.totalorder %v3632_v46, %v3299_v49 }
 0x16c   :  { %v1649_v17 = vadd.f32 %v1585_v10, %v1455_v32  ;;  %v1084_v0 = vadd.f32 %v1020_v2, %v890_v24  ;;  %v390_v44 = vsel %vm326_vm12, 0.11111111, %v2159_v18  ;;  %v584_v33 = vsel %vm520_vm13, 0.11111111, %v2159_v18 }
 0x16d   :  { %v1796_v34 = vsel %vm1732_vm11, 0.11111111, %v2159_v18  ;;  %v454_v39 = vadd.f32 %v390_v44, %v196_v5  ;;  %vm908_vm15 = vcmp.eq.s32.totalorder %v3632_v46, %v3337_v23  ;;  %vm1102_vm0 = vcmp.eq.s32.totalorder %v3632_v46, %v3341_v25 }
 0x16e   :  { %v1843_v40 = vadd.f32 %v1779_v28, %v1649_v17  ;;  %v1278_v35 = vadd.f32 %v1214_v29, %v1084_v0  ;;  %v778_v42 = vsel %vm714_vm14, 0.11111111, %v2159_v18  ;;  %v972_v45 = vsel %vm908_vm15, 0.11111111, %v2159_v18 }
 0x16f   :  { %v648_v47 = vadd.f32 %v584_v33, %v454_v39  ;;  %v1166_v36 = vsel %vm1102_vm0, 0.11111111, %v2159_v18  ;;  %vm1296_vm2 = vcmp.eq.s32.totalorder %v3632_v46, %v3345_v9  ;;  %vm1490_vm3 = vcmp.eq.s32.totalorder %v3632_v46, %v3312_v61 }
 0x170   :  { %1940 = vmatpush.msra.mxu2 %v1843_v40  ;;  %v1472_v52 = vadd.f32 %v1408_v14, %v1278_v35  ;;  %v1360_v48 = vsel %vm1296_vm2, 0.11111111, %v2159_v18  ;;  %v1554_v51 = vsel %vm1490_vm3, 0.11111111, %v2159_v18  ;;  %vm1684_vm1 = vcmp.eq.s32.totalorder %v3632_v46, %v3324_v63 }
 0x171   :  { %v842_v53 = vadd.f32 %v778_v42, %v648_v47  ;;  %vm148_vm4 = vcmp.eq.s32.totalorder %v3635_v27, %v3315_v37  ;;  %vm342_vm6 = vcmp.eq.s32.totalorder %v3635_v27, %v3319_v41  ;;  %vm536_vm7 = vcmp.eq.s32.totalorder %v3635_v27, %v3329_v7 }
 0x172   :  { %v1666_v54 = vadd.f32 %v1602_v16, %v1472_v52  ;;  %v212_v30 = vsel %vm148_vm4, 0.11111111, %v2159_v18  ;;  %v406_v31 = vsel %vm342_vm6, 0.11111111, %v2159_v18  ;;  %v600_v55 = vsel %vm536_vm7, 0.11111111, %v2159_v18 }
 0x173   :  { %v1036_v59 = vadd.f32 %v972_v45, %v842_v53  ;;  %v470_v58 = vadd.f32 %v406_v31, %v212_v30  ;;  %vm730_vm5 = vcmp.eq.s32.totalorder %v3635_v27, %v3299_v49  ;;  %vm924_vm8 = vcmp.eq.s32.totalorder %v3635_v27, %v3337_v23 }
 0x174   :  { %v1860_v46 = vadd.f32 %v1796_v34, %v1666_v54  ;;  %v1748_v60 = vsel %vm1684_vm1, 0.11111111, %v2159_v18  ;;  %v794_v43 = vsel %vm730_vm5, 0.11111111, %v2159_v18  ;;  %vm1118_vm9 = vcmp.eq.s32.totalorder %v3635_v27, %v3341_v25 }
 0x175   :  { %v1230_v56 = vadd.f32 %v1166_v36, %v1036_v59  ;;  %v664_v19 = vadd.f32 %v600_v55, %v470_v58  ;;  %v988_v3 = vsel %vm924_vm8, 0.11111111, %v2159_v18  ;;  %vm1312_vm10 = vcmp.eq.s32.totalorder %v3635_v27, %v3345_v9 }
 0x176   :  { %1962 = vmatpush.msra.mxu3 %v1860_v46  ;;  %v1182_v20 = vsel %vm1118_vm9, 0.11111111, %v2159_v18  ;;  %v1376_v22 = vsel %vm1312_vm10, 0.11111111, %v2159_v18  ;;  %vm1506_vm11 = vcmp.eq.s32.totalorder %v3635_v27, %v3312_v61  ;;  %vm162_vm12 = vcmp.eq.s32.totalorder %v3638_v15, %v3315_v37 }
 0x177   :  { %v1424_v50 = vadd.f32 %v1360_v48, %v1230_v56  ;;  %v858_v6 = vadd.f32 %v794_v43, %v664_v19  ;;  %v1570_v10 = vsel %vm1506_vm11, 0.11111111, %v2159_v18  ;;  %vm1700_vm13 = vcmp.eq.s32.totalorder %v3635_v27, %v3324_v63 }
 0x178   :  { %v226_v11 = vsel %vm162_vm12, 0.11111111, %v2159_v18  ;;  %vm356_vm14 = vcmp.eq.s32.totalorder %v3638_v15, %v3319_v41  ;;  %vm550_vm15 = vcmp.eq.s32.totalorder %v3638_v15, %v3329_v7  ;;  %vm744_vm0 = vcmp.eq.s32.totalorder %v3638_v15, %v3299_v49 }
 0x179   :  { %v1618_v21 = vadd.f32 %v1554_v51, %v1424_v50  ;;  %v1052_v8 = vadd.f32 %v988_v3, %v858_v6  ;;  %v420_v57 = vsel %vm356_vm14, 0.11111111, %v2159_v18  ;;  %v614_v26 = vsel %vm550_vm15, 0.11111111, %v2159_v18 }
 0x17a   :  { %v1764_v12 = vsel %vm1700_vm13, 0.11111111, %v2159_v18  ;;  %v484_v27 = vadd.f32 %v420_v57, %v226_v11  ;;  %vm938_vm2 = vcmp.eq.s32.totalorder %v3638_v15, %v3337_v23  ;;  %vm1132_vm3 = vcmp.eq.s32.totalorder %v3638_v15, %v3341_v25 }
 0x17b   :  { %v1812_v38 = vadd.f32 %v1748_v60, %v1618_v21  ;;  %v1246_v13 = vadd.f32 %v1182_v20, %v1052_v8  ;;  %v808_v28 = vsel %vm744_vm0, 0.11111111, %v2159_v18  ;;  %v1002_v4 = vsel %vm938_vm2, 0.11111111, %v2159_v18 }
 0x17c   :  { %v678_v2 = vadd.f32 %v614_v26, %v484_v27  ;;  %v1196_v29 = vsel %vm1132_vm3, 0.11111111, %v2159_v18  ;;  %vm1326_vm1 = vcmp.eq.s32.totalorder %v3638_v15, %v3345_v9  ;;  %vm1520_vm4 = vcmp.eq.s32.totalorder %v3638_v15, %v3312_v61 }
 0x17d   :  { %1893 = vmatpush.msra.mxu0 %v1812_v38  ;;  %v1440_v14 = vadd.f32 %v1376_v22, %v1246_v13  ;;  %v1390_v32 = vsel %vm1326_vm1, 0.11111111, %v2159_v18  ;;  %v1584_v24 = vsel %vm1520_vm4, 0.11111111, %v2159_v18  ;;  %vm1714_vm6 = vcmp.eq.s32.totalorder %v3638_v15, %v3324_v63  ;;  %v3831_v13 = vld [vmem:[#allocation2 + $0x3] ss:$0 sm:$0xff] }
 0x17e   :  { %v872_v16 = vadd.f32 %v808_v28, %v678_v2  ;;  %vm179_vm7 = vcmp.eq.s32.totalorder %v3652_v62, %v3315_v37  ;;  %vm373_vm5 = vcmp.eq.s32.totalorder %v3652_v62, %v3319_v41  ;;  %vm567_vm8 = vcmp.eq.s32.totalorder %v3652_v62, %v3329_v7 }
 0x17f   :  { %v1634_v5 = vadd.f32 %v1570_v10, %v1440_v14  ;;  %v243_v17 = vsel %vm179_vm7, 0.11111111, %v2159_v18  ;;  %v437_v0 = vsel %vm373_vm5, 0.11111111, %v2159_v18  ;;  %v631_v44 = vsel %vm567_vm8, 0.11111111, %v2159_v18 }
 0x180   :  { %v1066_v33 = vadd.f32 %v1002_v4, %v872_v16  ;;  %v501_v34 = vadd.f32 %v437_v0, %v243_v17  ;;  %vm761_vm9 = vcmp.eq.s32.totalorder %v3652_v62, %v3299_v49  ;;  %vm955_vm10 = vcmp.eq.s32.totalorder %v3652_v62, %v3337_v23  ;;  %v3847_v14 = vld [vmem:[#allocation2] ss:$0 sm:$0xff]  ;;  %v3858_v16 = vld [vmem:[#allocation2 + $0x8] ss:$0 sm:$0xff]  ;;  %v3863_v0 = vld [vmem:[#allocation2 + $0x2] ss:$0 sm:$0xff] }
 0x181   :  { %v1828_v15 = vadd.f32 %v1764_v12, %v1634_v5  ;;  %v1778_v39 = vsel %vm1714_vm6, 0.11111111, %v2159_v18  ;;  %v825_v40 = vsel %vm761_vm9, 0.11111111, %v2159_v18  ;;  %vm1149_vm11 = vcmp.eq.s32.totalorder %v3652_v62, %v3341_v25 }
 0x182   :  { %v1260_v35 = vadd.f32 %v1196_v29, %v1066_v33  ;;  %v695_v42 = vadd.f32 %v631_v44, %v501_v34  ;;  %v1019_v45 = vsel %vm955_vm10, 0.11111111, %v2159_v18  ;;  %vm1343_vm12 = vcmp.eq.s32.totalorder %v3652_v62, %v3345_v9 }
 0x183   :  { %1916 = vmatpush.msra.mxu1 %v1828_v15  ;;  %v1213_v47 = vsel %vm1149_vm11, 0.11111111, %v2159_v18  ;;  %v1407_v36 = vsel %vm1343_vm12, 0.11111111, %v2159_v18  ;;  %v65_v52 = vadd.s32 16, %v2190_v1  ;;  %vm1537_vm13 = vcmp.eq.s32.totalorder %v3652_v62, %v3312_v61 }
 0x184   :  { %v1454_v48 = vadd.f32 %v1390_v32, %v1260_v35  ;;  %v889_v51 = vadd.f32 %v825_v40, %v695_v42  ;;  %vm1731_vm14 = vcmp.eq.s32.totalorder %v3652_v62, %v3324_v63  ;;  %v1601_v55 = vsel %vm1537_vm13, 0.11111111, %v2159_v18  ;;  %v3871_v40 = vld [vmem:[#allocation2 + $0x4] ss:$0 sm:$0xff]  ;;  %v3875_v35 = vld [vmem:[#allocation2 + $0x5] ss:$0 sm:$0xff] }
 0x185   :  { %vm131_vm15 = vcmp.eq.s32.totalorder %v65_v52, %v3315_v37  ;;  %vm325_vm0 = vcmp.eq.s32.totalorder %v65_v52, %v3319_v41  ;;  %vm519_vm2 = vcmp.eq.s32.totalorder %v65_v52, %v3329_v7  ;;  %vm713_vm3 = vcmp.eq.s32.totalorder %v65_v52, %v3299_v49  ;;  %v3879_v42 = vld [vmem:[#allocation2 + $0x6] ss:$0 sm:$0xff] }
 0x186   :  { %v1648_v53 = vadd.f32 %v1584_v24, %v1454_v48  ;;  %v1083_v54 = vadd.f32 %v1019_v45, %v889_v51  ;;  %v195_v30 = vsel %vm131_vm15, 0.11111111, %v2159_v18  ;;  %v389_v31 = vsel %vm325_vm0, 0.11111111, %v2159_v18  ;;  %v3855_v24 = vld [vmem:[#allocation2 + $0x7] ss:$0 sm:$0xff] }
 0x187   :  { %v453_v59 = vadd.f32 %v389_v31, %v195_v30  ;;  %v583_v58 = vsel %vm519_vm2, 0.11111111, %v2159_v18  ;;  %vm907_vm1 = vcmp.eq.s32.totalorder %v65_v52, %v3337_v23  ;;  %v777_v43 = vsel %vm713_vm3, 0.11111111, %v2159_v18 }
 0x188   :  { %v1842_v46 = vadd.f32 %v1778_v39, %v1648_v53  ;;  %v1277_v60 = vadd.f32 %v1213_v47, %v1083_v54  ;;  %vm1101_vm4 = vcmp.eq.s32.totalorder %v65_v52, %v3341_v25  ;;  %v1795_v49 = vsel %vm1731_vm14, 0.11111111, %v2159_v18 }
 0x189   :  { %v647_v56 = vadd.f32 %v583_v58, %v453_v59  ;;  %vm1295_vm6 = vcmp.eq.s32.totalorder %v65_v52, %v3345_v9  ;;  %vm1489_vm7 = vcmp.eq.s32.totalorder %v65_v52, %v3312_v61  ;;  %v971_v3 = vsel %vm907_vm1, 0.11111111, %v2159_v18 }
 0x18a   :  { %1941 = vmatpush.msra.mxu2 %v1842_v46  ;;  %v1471_v19 = vadd.f32 %v1407_v36, %v1277_v60  ;;  %v1165_v20 = vsel %vm1101_vm4, 0.11111111, %v2159_v18  ;;  %vm1683_vm5 = vcmp.eq.s32.totalorder %v65_v52, %v3324_v63  ;;  %v1359_v50 = vsel %vm1295_vm6, 0.11111111, %v2159_v18 }
 0x18b   :  { %v841_v22 = vadd.f32 %v777_v43, %v647_v56  ;;  %v1553_v6 = vsel %vm1489_vm7, 0.11111111, %v2159_v18  ;;  %v81_v62 = vadd.s32 144, %v2190_v1  ;;  %v1747_v11 = vsel %vm1683_vm5, 0.11111111, %v2159_v18 }
 0x18c   :  { %v1665_v10 = vadd.f32 %v1601_v55, %v1471_v19  ;;  %v3820_v61 = vadd.s32 256, %v2190_v1  ;;  %v3823_v21 = vadd.s32 392, %v2190_v1  ;;  %v3843_v2 = vadd.s32 136, %v2190_v1 }
 0x18d   :  { %v1035_v8 = vadd.f32 %v971_v3, %v841_v22  ;;  %vm147_vm8 = vcmp.eq.s32.totalorder %v81_v62, %v3315_v37  ;;  %vm341_vm9 = vcmp.eq.s32.totalorder %v81_v62, %v3319_v41  ;;  %vm535_vm10 = vcmp.eq.s32.totalorder %v81_v62, %v3329_v7 }
 0x18e   :  { %v1859_v63 = vadd.f32 %v1795_v49, %v1665_v10  ;;  %v211_v57 = vsel %vm147_vm8, 0.11111111, %v2159_v18  ;;  %v405_v26 = vsel %vm341_vm9, 0.11111111, %v2159_v18  ;;  %v599_v12 = vsel %vm535_vm10, 0.11111111, %v2159_v18 }
 0x18f   :  { %v1229_v27 = vadd.f32 %v1165_v20, %v1035_v8  ;;  %v469_v38 = vadd.f32 %v405_v26, %v211_v57  ;;  %vm729_vm11 = vcmp.eq.s32.totalorder %v81_v62, %v3831_v13  ;;  %vm923_vm12 = vcmp.eq.s32.totalorder %v81_v62, %v3337_v23 }
 0x190   :  { %1963 = vmatpush.msra.mxu3 %v1859_v63  ;;  %v793_v37 = vsel %vm729_vm11, 0.11111111, %v2159_v18  ;;  %vm1117_vm13 = vcmp.eq.s32.totalorder %v81_v62, %v3341_v25  ;;  %vm1311_vm14 = vcmp.eq.s32.totalorder %v81_v62, %v3345_v9  ;;  %v3839_v41 = vadd.s32 8, %v2190_v1  ;;  %v3851_v25 = vld [vmem:[#allocation2 + $0x1] ss:$0 sm:$0xff] }
 0x191   :  { %v1423_v7 = vadd.f32 %v1359_v50, %v1229_v27  ;;  %v663_v28 = vadd.f32 %v599_v12, %v469_v38  ;;  %v987_v4 = vsel %vm923_vm12, 0.11111111, %v2159_v18  ;;  %v1181_v29 = vsel %vm1117_vm13, 0.11111111, %v2159_v18  ;;  %v1875_v38 = vld [vmem:[#allocation7 + $0x10] sm:$0xff] }
 0x192   :  { %v1375_v23 = vsel %vm1311_vm14, 0.11111111, %v2159_v18  ;;  %vm161_vm15 = vcmp.eq.s32.totalorder %v3820_v61, %v3847_v14  ;;  %vm355_vm0 = vcmp.eq.s32.totalorder %v3820_v61, %v3851_v25  ;;  %vm1505_vm2 = vcmp.eq.s32.totalorder %v81_v62, %v3855_v24 }
 0x193   :  { %v1617_v9 = vadd.f32 %v1553_v6, %v1423_v7  ;;  %v857_v32 = vadd.f32 %v793_v37, %v663_v28  ;;  %vm1699_vm3 = vcmp.eq.s32.totalorder %v81_v62, %v3858_v16  ;;  %v225_v5 = vsel %vm161_vm15, 0.11111111, %v2159_v18 }
 0x194   :  { %v419_v17 = vsel %vm355_vm0, 0.11111111, %v2159_v18  ;;  %vm549_vm1 = vcmp.eq.s32.totalorder %v3820_v61, %v3863_v0  ;;  %vm743_vm4 = vcmp.eq.s32.totalorder %v3820_v61, %v3831_v13  ;;  %vm937_vm6 = vcmp.eq.s32.totalorder %v3820_v61, %v3871_v40 }
 0x195   :  { %v1811_v44 = vadd.f32 %v1747_v11, %v1617_v9  ;;  %v1051_v33 = vadd.f32 %v987_v4, %v857_v32  ;;  %v483_v34 = vadd.f32 %v419_v17, %v225_v5  ;;  %v613_v15 = vsel %vm549_vm1, 0.11111111, %v2159_v18 }
 0x196   :  { %v807_v39 = vsel %vm743_vm4, 0.11111111, %v2159_v18  ;;  %vm1131_vm7 = vcmp.eq.s32.totalorder %v3820_v61, %v3875_v35  ;;  %vm1325_vm5 = vcmp.eq.s32.totalorder %v3820_v61, %v3879_v42  ;;  %v1569_v47 = vsel %vm1505_vm2, 0.11111111, %v2159_v18 }
 0x197   :  { %1894 = vmatpush.msra.mxu0 %v1811_v44  ;;  %v1245_v45 = vadd.f32 %v1181_v29, %v1051_v33  ;;  %v1763_v36 = vsel %vm1699_vm3, 0.11111111, %v2159_v18  ;;  %v677_v52 = vadd.f32 %v613_v15, %v483_v34  ;;  %v1001_v48 = vsel %vm937_vm6, 0.11111111, %v2159_v18 }
 0x198   :  { %v1195_v51 = vsel %vm1131_vm7, 0.11111111, %v2159_v18  ;;  %v1389_v53 = vsel %vm1325_vm5, 0.11111111, %v2159_v18  ;;  %vm178_vm8 = vcmp.eq.s32.totalorder %v3823_v21, %v3847_v14  ;;  %vm1519_vm9 = vcmp.eq.s32.totalorder %v3820_v61, %v3855_v24 }
 0x199   :  { %v1439_v54 = vadd.f32 %v1375_v23, %v1245_v45  ;;  %v871_v30 = vadd.f32 %v807_v39, %v677_v52  ;;  %vm1713_vm10 = vcmp.eq.s32.totalorder %v3820_v61, %v3858_v16  ;;  %v242_v31 = vsel %vm178_vm8, 0.11111111, %v2159_v18 }
 0x19a   :  { %vm372_vm11 = vcmp.eq.s32.totalorder %v3823_v21, %v3851_v25  ;;  %vm566_vm12 = vcmp.eq.s32.totalorder %v3823_v21, %v3863_v0  ;;  %vm760_vm13 = vcmp.eq.s32.totalorder %v3823_v21, %v3831_v13  ;;  %v1583_v60 = vsel %vm1519_vm9, 0.11111111, %v2159_v18 }
 0x19b   :  { %v1633_v55 = vadd.f32 %v1569_v47, %v1439_v54  ;;  %v1065_v59 = vadd.f32 %v1001_v48, %v871_v30  ;;  %v436_v58 = vsel %vm372_vm11, 0.11111111, %v2159_v18  ;;  %v630_v46 = vsel %vm566_vm12, 0.11111111, %v2159_v18 }
 0x19c   :  { %v500_v43 = vadd.f32 %v436_v58, %v242_v31  ;;  %vm954_vm14 = vcmp.eq.s32.totalorder %v3823_v21, %v3871_v40  ;;  %vm1148_vm15 = vcmp.eq.s32.totalorder %v3823_v21, %v3875_v35  ;;  %v1777_v19 = vsel %vm1713_vm10, 0.11111111, %v2159_v18 }
 0x19d   :  { %v1827_v49 = vadd.f32 %v1763_v36, %v1633_v55  ;;  %v1259_v56 = vadd.f32 %v1195_v51, %v1065_v59  ;;  %v824_v3 = vsel %vm760_vm13, 0.11111111, %v2159_v18  ;;  %v1018_v22 = vsel %vm954_vm14, 0.11111111, %v2159_v18 }
 0x19e   :  { %v694_v20 = vadd.f32 %v630_v46, %v500_v43  ;;  %v1212_v50 = vsel %vm1148_vm15, 0.11111111, %v2159_v18  ;;  %vm1342_vm0 = vcmp.eq.s32.totalorder %v3823_v21, %v3879_v42  ;;  %vm1536_vm2 = vcmp.eq.s32.totalorder %v3823_v21, %v3855_v24 }
 0x19f   :  { %1917 = vmatpush.msra.mxu1 %v1827_v49  ;;  %v1453_v6 = vadd.f32 %v1389_v53, %v1259_v56  ;;  %v1406_v62 = vsel %vm1342_vm0, 0.11111111, %v2159_v18  ;;  %vm1730_vm3 = vcmp.eq.s32.totalorder %v3823_v21, %v3858_v16  ;;  %vm130_vm1 = vcmp.eq.s32.totalorder %v3839_v41, %v3847_v14 }
 0x1a0   :  { %v888_v10 = vadd.f32 %v824_v3, %v694_v20  ;;  %vm324_vm4 = vcmp.eq.s32.totalorder %v3839_v41, %v3851_v25  ;;  %vm518_vm6 = vcmp.eq.s32.totalorder %v3839_v41, %v3863_v0  ;;  %v194_v61 = vsel %vm130_vm1, 0.11111111, %v2159_v18 }
 0x1a1   :  { %v1647_v11 = vadd.f32 %v1583_v60, %v1453_v6  ;;  %v388_v8 = vsel %vm324_vm4, 0.11111111, %v2159_v18  ;;  %v582_v63 = vsel %vm518_vm6, 0.11111111, %v2159_v18  ;;  %vm712_vm7 = vcmp.eq.s32.totalorder %v3839_v41, %v3831_v13  ;;  %v1879_v60 = vld [vmem:[#allocation7 + $0x30] sm:$0x1] }
 0x1a2   :  { %v1082_v57 = vadd.f32 %v1018_v22, %v888_v10  ;;  %v452_v26 = vadd.f32 %v388_v8, %v194_v61  ;;  %vm906_vm5 = vcmp.eq.s32.totalorder %v3839_v41, %v3871_v40  ;;  %v1600_v27 = vsel %vm1536_vm2, 0.11111111, %v2159_v18 }
 0x1a3   :  { %v1841_v12 = vadd.f32 %v1777_v19, %v1647_v11  ;;  %v776_v37 = vsel %vm712_vm7, 0.11111111, %v2159_v18  ;;  %vm1100_vm8 = vcmp.eq.s32.totalorder %v3839_v41, %v3875_v35  ;;  %v1794_v28 = vsel %vm1730_vm3, 0.11111111, %v2159_v18 }
 0x1a4   :  { %v1276_v7 = vadd.f32 %v1212_v50, %v1082_v57  ;;  %v646_v4 = vadd.f32 %v582_v63, %v452_v26  ;;  %vm1294_vm9 = vcmp.eq.s32.totalorder %v3839_v41, %v3879_v42  ;;  %v970_v29 = vsel %vm906_vm5, 0.11111111, %v2159_v18 }
 0x1a5   :  { %1942 = vmatpush.msra.mxu2 %v1841_v12  ;;  %v1164_v23 = vsel %vm1100_vm8, 0.11111111, %v2159_v18  ;;  %v1358_v9 = vsel %vm1294_vm9, 0.11111111, %v2159_v18  ;;  %vm146_vm10 = vcmp.eq.s32.totalorder %v3843_v2, %v3847_v14  ;;  %vm1488_vm11 = vcmp.eq.s32.totalorder %v3839_v41, %v3855_v24 }
 0x1a6   :  { %v1470_v32 = vadd.f32 %v1406_v62, %v1276_v7  ;;  %1943 = vmatmul.f32.vlgmr.msra.gmra.mxu2 %v1875_v38  ;;  %v840_v5 = vadd.f32 %v776_v37, %v646_v4  ;;  %vm1682_vm12 = vcmp.eq.s32.totalorder %v3839_v41, %v3858_v16  ;;  %v210_v21 = vsel %vm146_vm10, 0.11111111, %v2159_v18 }
 0x1a7   :  { %vm340_vm13 = vcmp.eq.s32.totalorder %v3843_v2, %v3851_v25  ;;  %vm534_vm14 = vcmp.eq.s32.totalorder %v3843_v2, %v3863_v0  ;;  %vm728_vm15 = vcmp.eq.s32.totalorder %v3843_v2, %v3831_v13  ;;  %v1552_v15 = vsel %vm1488_vm11, 0.11111111, %v2159_v18 }
 0x1a8   :  { %v1664_v17 = vadd.f32 %v1600_v27, %v1470_v32  ;;  %v1034_v44 = vadd.f32 %v970_v29, %v840_v5  ;;  %v404_v33 = vsel %vm340_vm13, 0.11111111, %v2159_v18  ;;  %v598_v34 = vsel %vm534_vm14, 0.11111111, %v2159_v18 }
 0x1a9   :  { %v468_v41 = vadd.f32 %v404_v33, %v210_v21  ;;  %vm922_vm0 = vcmp.eq.s32.totalorder %v3843_v2, %v3871_v40  ;;  %vm1116_vm2 = vcmp.eq.s32.totalorder %v3843_v2, %v3875_v35  ;;  %v1746_v47 = vsel %vm1682_vm12, 0.11111111, %v2159_v18 }
 0x1aa   :  { %v1858_v39 = vadd.f32 %v1794_v28, %v1664_v17  ;;  %v1228_v45 = vadd.f32 %v1164_v23, %v1034_v44  ;;  %v792_v36 = vsel %vm728_vm15, 0.11111111, %v2159_v18  ;;  %v986_v48 = vsel %vm922_vm0, 0.11111111, %v2159_v18 }
 0x1ab   :  { %v662_v52 = vadd.f32 %v598_v34, %v468_v41  ;;  %v1180_v51 = vsel %vm1116_vm2, 0.11111111, %v2159_v18  ;;  %vm1310_vm3 = vcmp.eq.s32.totalorder %v3843_v2, %v3879_v42  ;;  %vm1504_vm1 = vcmp.eq.s32.totalorder %v3843_v2, %v3855_v24 }
 0x1ac   :  { %1964 = vmatpush.msra.mxu3 %v1858_v39  ;;  %v1422_v53 = vadd.f32 %v1358_v9, %v1228_v45  ;;  %v1374_v54 = vsel %vm1310_vm3, 0.11111111, %v2159_v18  ;;  %vm1698_vm4 = vcmp.eq.s32.totalorder %v3843_v2, %v3858_v16  ;;  %v111_v31 = vadd.s32 384, %v2190_v1 }
 0x1ad   :  { %v856_v30 = vadd.f32 %v792_v36, %v662_v52  ;;  %vm129_vm6 = vcmp.eq.s32.totalorder %v2190_v1, %v3847_v14  ;;  %vm323_vm7 = vcmp.eq.s32.totalorder %v2190_v1, %v3851_v25  ;;  %vm517_vm5 = vcmp.eq.s32.totalorder %v2190_v1, %v3863_v0  ;;  %v1876_v36 = vld [vmem:[#allocation7 + $0x18] sm:$0xff] }
 0x1ae   :  { %v1616_v55 = vadd.f32 %v1552_v15, %v1422_v53  ;;  %v193_v59 = vsel %vm129_vm6, 0.11111111, %v2159_v18  ;;  %v387_v58 = vsel %vm323_vm7, 0.11111111, %v2159_v18  ;;  %vm177_vm8 = vcmp.eq.s32.totalorder %v111_v31, %v3847_v14  ;;  %1946 = vmatmul.f32.gmra.mxu2 %v1879_v60 }
 0x1af   :  { %v1050_v46 = vadd.f32 %v986_v48, %v856_v30  ;;  %vm371_vm9 = vcmp.eq.s32.totalorder %v111_v31, %v3851_v25  ;;  %vm565_vm10 = vcmp.eq.s32.totalorder %v111_v31, %v3863_v0  ;;  %v241_v49 = vsel %vm177_vm8, 0.11111111, %v2159_v18 }
 0x1b0   :  { %v1810_v43 = vadd.f32 %v1746_v47, %v1616_v55  ;;  %v435_v56 = vsel %vm371_vm9, 0.11111111, %v2159_v18  ;;  %v629_v19 = vsel %vm565_vm10, 0.11111111, %v2159_v18  ;;  %vm759_vm11 = vcmp.eq.s32.totalorder %v111_v31, %v3831_v13  ;;  %v1880_v55 = vld [vmem:[#allocation7 + $0x38] sm:$0x1] }
 0x1b1   :  { %v1244_v3 = vadd.f32 %v1180_v51, %v1050_v46  ;;  %v499_v20 = vadd.f32 %v435_v56, %v241_v49  ;;  %vm953_vm12 = vcmp.eq.s32.totalorder %v111_v31, %v3871_v40  ;;  %v1568_v22 = vsel %vm1504_vm1, 0.11111111, %v2159_v18  ;;  %v1877_v46 = vld [vmem:[#allocation7 + $0x20] sm:$0x1] }
 0x1b2   :  { %1895 = vmatpush.msra.mxu0 %v1810_v43  ;;  %v823_v50 = vsel %vm759_vm11, 0.11111111, %v2159_v18  ;;  %vm1147_vm13 = vcmp.eq.s32.totalorder %v111_v31, %v3875_v35  ;;  %v1762_v62 = vsel %vm1698_vm4, 0.11111111, %v2159_v18  ;;  %v1017_v11 = vsel %vm953_vm12, 0.11111111, %v2159_v18 }
 0x1b3   :  { %v1438_v6 = vadd.f32 %v1374_v54, %v1244_v3  ;;  %v693_v10 = vadd.f32 %v629_v19, %v499_v20  ;;  %v1211_v61 = vsel %vm1147_vm13, 0.11111111, %v2159_v18  ;;  %vm1341_vm14 = vcmp.eq.s32.totalorder %v111_v31, %v3879_v42  ;;  %v1874_v43 = vld [vmem:[#allocation7 + $0x8] sm:$0xff] }
 0x1b4   :  { %v451_v8 = vadd.f32 %v387_v58, %v193_v59  ;;  %v581_v63 = vsel %vm517_vm5, 0.11111111, %v2159_v18  ;;  %vm1535_vm15 = vcmp.eq.s32.totalorder %v111_v31, %v3855_v24  ;;  %vm1729_vm0 = vcmp.eq.s32.totalorder %v111_v31, %v3858_v16 }
 0x1b5   :  { %v1632_v57 = vadd.f32 %v1568_v22, %v1438_v6  ;;  %v887_v26 = vadd.f32 %v823_v50, %v693_v10  ;;  %vm711_vm2 = vcmp.eq.s32.totalorder %v2190_v1, %v3831_v13  ;;  %vm905_vm3 = vcmp.eq.s32.totalorder %v2190_v1, %v3871_v40 }
 0x1b6   :  { %v645_v2 = vadd.f32 %v581_v63, %v451_v8  ;;  %vm1099_vm1 = vcmp.eq.s32.totalorder %v2190_v1, %v3875_v35  ;;  %v775_v38 = vsel %vm711_vm2, 0.11111111, %v2159_v18  ;;  %v969_v37 = vsel %vm905_vm3, 0.11111111, %v2159_v18  ;;  %v1973_v8 = vld [vmem:[#allocation5] sm:$0xff] }
 0x1b7   :  { %v1826_v12 = vadd.f32 %v1762_v62, %v1632_v57  ;;  %v1081_v27 = vadd.f32 %v1017_v11, %v887_v26  ;;  %v1405_v7 = vsel %vm1341_vm14, 0.11111111, %v2159_v18  ;;  %vm1293_vm4 = vcmp.eq.s32.totalorder %v2190_v1, %v3879_v42 }
 0x1b8   :  { %v839_v28 = vadd.f32 %v775_v38, %v645_v2  ;;  %vm1487_vm6 = vcmp.eq.s32.totalorder %v2190_v1, %v3855_v24  ;;  %v1163_v29 = vsel %vm1099_vm1, 0.11111111, %v2159_v18  ;;  %v1599_v23 = vsel %vm1535_vm15, 0.11111111, %v2159_v18 }
 0x1b9   :  { %1918 = vmatpush.msra.mxu1 %v1826_v12  ;;  %v1275_v4 = vadd.f32 %v1211_v61, %v1081_v27  ;;  %v1793_v9 = vsel %vm1729_vm0, 0.11111111, %v2159_v18  ;;  %v79_v5 = vadd.s32 128, %v2190_v1  ;;  %v1357_v17 = vsel %vm1293_vm4, 0.11111111, %v2159_v18 }
 0x1ba   :  { %v1033_v32 = vadd.f32 %v969_v37, %v839_v28  ;;  %v1551_v44 = vsel %vm1487_vm6, 0.11111111, %v2159_v18  ;;  %vm1681_vm7 = vcmp.eq.s32.totalorder %v2190_v1, %v3858_v16  ;;  %v1974_v61 = vld [vmem:[#allocation5 + $0x8] sm:$0x1]  ;;  %vm1977_vm0 = vcmask 1040384  }
 0x1bb   :  { %v1469_v21 = vadd.f32 %v1405_v7, %v1275_v4  ;;  %vm145_vm5 = vcmp.eq.s32.totalorder %v79_v5, %v3847_v14  ;;  %vm339_vm8 = vcmp.eq.s32.totalorder %v79_v5, %v3851_v25  ;;  %vm533_vm9 = vcmp.eq.s32.totalorder %v79_v5, %v3863_v0 }
 0x1bc   :  { %v1227_v33 = vadd.f32 %v1163_v29, %v1033_v32  ;;  %v209_v15 = vsel %vm145_vm5, 0.11111111, %v2159_v18  ;;  %v403_v41 = vsel %vm339_vm8, 0.11111111, %v2159_v18  ;;  %v597_v39 = vsel %vm533_vm9, 0.11111111, %v2159_v18 }
 0x1bd   :  { %v1663_v34 = vadd.f32 %v1599_v23, %v1469_v21  ;;  %v467_v47 = vadd.f32 %v403_v41, %v209_v15  ;;  %vm727_vm10 = vcmp.eq.s32.totalorder %v79_v5, %v3831_v13  ;;  %vm921_vm11 = vcmp.eq.s32.totalorder %v79_v5, %v3871_v40  ;;  %v1873_v13 = vld [vmem:[#allocation7] sm:$0xff] }
 0x1be   :  { %v1421_v45 = vadd.f32 %v1357_v17, %v1227_v33  ;;  %v1745_v14 = vsel %vm1681_vm7, 0.11111111, %v2159_v18  ;;  %v791_v25 = vsel %vm727_vm10, 0.11111111, %v2159_v18  ;;  %vm1115_vm12 = vcmp.eq.s32.totalorder %v79_v5, %v3875_v35 }
 0x1bf   :  { %v1857_v1 = vadd.f32 %v1793_v9, %v1663_v34  ;;  %v661_v52 = vadd.f32 %v597_v39, %v467_v47  ;;  %v985_v48 = vsel %vm921_vm11, 0.11111111, %v2159_v18  ;;  %vm1309_vm13 = vcmp.eq.s32.totalorder %v79_v5, %v3879_v42 }
 0x1c0   :  { %v1615_v0 = vadd.f32 %v1551_v44, %v1421_v45  ;;  %v1179_v40 = vsel %vm1115_vm12, 0.11111111, %v2159_v18  ;;  %vm1503_vm14 = vcmp.eq.s32.totalorder %v79_v5, %v3855_v24  ;;  %v1373_v30 = vsel %vm1309_vm13, 0.11111111, %v2159_v18  ;;  %v1878_v24 = vld [vmem:[#allocation7 + $0x28] sm:$0x1] }
 0x1c1   :  { %1965 = vmatpush.msra.mxu3 %v1857_v1  ;;  %v855_v53 = vadd.f32 %v791_v25, %v661_v52  ;;  %vm1697_vm15 = vcmp.eq.s32.totalorder %v79_v5, %v3858_v16  ;;  %v1567_v35 = vsel %vm1503_vm14, 0.11111111, %v2159_v18 }
 0x1c2   :  { %1966 = vmatmul.f32.vlgmr.msra.gmra.mxu3 %v1876_v36  ;;  %v1809_v51 = vadd.f32 %v1745_v14, %v1615_v0  ;;  %v1761_v58 = vsel %vm1697_vm15, 0.11111111, %v2159_v18 }
 0x1c3   :  { %v1049_v54 = vadd.f32 %v985_v48, %v855_v53 }
 0x1c4   :  { %1896 = vmatpush.msra.mxu0 %v1809_v51 }
 0x1c5   :  { %1897 = vmatmul.f32.vlgmr.msra.gmra.mxu0 %v1873_v13  ;;  %v1243_v31 = vadd.f32 %v1179_v40, %v1049_v54 }
 0x1c7   :  { %v1437_v59 = vadd.f32 %v1373_v30, %v1243_v31 }
 0x1c9   :  { %v1631_v42 = vadd.f32 %v1567_v35, %v1437_v59 }
 0x1ca   :  { %1969 = vmatmul.f32.gmra.mxu3 %v1880_v55 }
 0x1cb   :  { %v1825_v60 = vadd.f32 %v1761_v58, %v1631_v42 }
 0x1cd   :  { %1900 = vmatmul.f32.gmra.mxu0 %v1877_v46  ;;  %1919 = vmatpush.msra.mxu1 %v1825_v60 }
 0x1ce   :  { %1920 = vmatmul.f32.vlgmr.msra.gmra.mxu1 %v1874_v43 }
 0x1d6   :  { %1923 = vmatmul.f32.gmra.mxu1 %v1878_v24 }
 0x229   :  { %v1944_v56 = vpop.f32.mrf.mxu2 }
 0x231   :  { %v1947_v6 = vpop.f32.mrf.mxu2 }
 0x242   :  { %v1898_v49 = vpop.f32.mrf.mxu0 }
 0x245   :  { %v1967_v16 = vpop.f32.mrf.mxu3 }
 0x24a   :  { %v1901_v20 = vpop.f32.mrf.mxu0 }
 0x24b   :  { %v1921_v19 = vpop.f32.mrf.mxu1 }
 0x24c   :  { %v1922_v3 = vadd.f32 %v1921_v19, %v1898_v49 }
 0x24d   :  { %v1970_v62 = vpop.f32.mrf.mxu3 }
 0x24e   :  { %v1945_v22 = vadd.f32 %v1944_v56, %v1922_v3 }
 0x250   :  { %v1968_v11 = vadd.f32 %v1967_v16, %v1945_v22 }
 0x252   :  { %v1975_v26 = vmul.f32 %v1973_v8, %v1968_v11 }
 0x253   :  { %v1924_v50 = vpop.f32.mrf.mxu1 }
 0x254   :  { %v1925_v18 = vadd.f32 %v1924_v50, %v1901_v20 }
 0x256   :  { %v1948_v10 = vadd.f32 %v1947_v6, %v1925_v18 }
 0x258   :  { %v1971_v63 = vadd.f32 %v1970_v62, %v1948_v10 }
 0x25a   :  { %v1976_v57 = vmul.f32 %v1974_v61, %v1971_v63 }
 0x25c   :  { %v1978_v2 = vsel %vm1977_vm0, %v1976_v57, 0.0 }
 0x25d   :  { %v1979_v12 = vadd.f32 %v1978_v2, %v1975_v26 }
 0x25f   :  { %v1980_v27 = vrot.slane %v1979_v12, 4 }
 0x261   :  { %v1981_v38 = vadd.f32 %v1980_v27, %v1979_v12 }
 0x263   :  { %v1982_v37 = vrot.slane %v1981_v38, 2 }
 0x265   :  { %v1983_v7 = vadd.f32 %v1982_v37, %v1981_v38 }
 0x267   :  { %v1984_v28 = vrot.slane %v1983_v7, 1 }
 0x269   :  { %v1985_v4 = vadd.f32 %v1984_v28, %v1983_v7 }
 0x26b   :  { %1986 = vst [vmem:[#allocation8] sm:$0x1] %v1985_v4 }
 0x26c   :  { %1997 = dma.vmem_to_hbm [thread:$0]  %s1993_s2, 16, %s1995_s5, [#allocation4]  }
 0x26d   :  { %2150 = dma.done.wait [#allocation4], 16  }
 0x26e   :  { %2151 = vsyncadd [#allocation4], 4294967280 }
 0x26f   :  { %2002 = vsyncpa [#allocation3], 1 }
 0x270   :  { %2003 = vsyncpa [#allocation6], 1 }
 0x271   :  { %2004 = vsyncpa [#allocation4], 1 }

</bundles_post_ra>
